<compile_context>
chip_gen: v7x
topology: tpu7x:2x2x1
jax: 0.10.0
libtpu: 0.0.40
codegen_flags: <defaults>
</compile_context>

<pallas_src>
import jax
import jax.numpy as jnp
from jax.experimental import pallas as pl
from jax.experimental.pallas import tpu as pltpu

# Small, module-consistent sizes (scaled down from the resnet34 config).
N_INSTANCES = 8        # bag size (number of patches per bag)
FC_FEAT_IN = 64        # self.fc_feat_in (scaled down from 512)
E = 32                 # self.E  (embedding dim, scaled down from 128)
L = E                  # self.L = self.E
D = 16                 # self.D  (attention hidden, scaled down from 64)
K = 4                  # self.K = N_CLASSES

MAX_BAGS_PER_BLOCK = 512   # 512 bags -> 4096x64 f32 feature block (~1 MiB), far under VMEM

# ---- packed-parameter slab layout (single grid-invariant DMA, lane width 64) --------------
_P_LANES = 64
_ROW_W_CAT = 0                    # (64, 64)  [W_emb | W_emb@W_a1 | W_emb@W_big]
_ROW_B_CAT = 64                   # (1, 64)   [b_emb | b_emb@W_a1 + b_a1 | b_emb@W_big]
_ROW_W_A2 = 72                    # (16, 4)   attention[2].weight^T
_ROW_B_A2 = 88                    # (1, 4)
_ROW_B_CLS = 96                   # (1, 4)
_ROW_G = 104                      # (16, 4)   lane-group-sum matrix (j*K+k -> e_j)
_P_ROWS = 120


def _mil_kernel(feat_ref, p_ref, feats_ref, a_ref, y_ref):
    rows = feat_ref.shape[0]                     # TB * N_INSTANCES
    tb = rows // N_INSTANCES

    feat = feat_ref[...]                                                   # (R, F)

    # static slices of the packed-parameter slab (zero-cost views).
    w_cat = p_ref[_ROW_W_CAT:_ROW_W_CAT + FC_FEAT_IN, :]                   # (F, E + D + K*K)
    b_cat = p_ref[_ROW_B_CAT:_ROW_B_CAT + 1, :]                            # (1, 64)
    w_a2 = p_ref[_ROW_W_A2:_ROW_W_A2 + D, :K]                              # (D, K)
    b_a2 = p_ref[_ROW_B_A2:_ROW_B_A2 + 1, :K]                              # (1, K)
    b_cls = p_ref[_ROW_B_CLS:_ROW_B_CLS + 1, :K]                           # (1, K)
    g_sum = p_ref[_ROW_G:_ROW_G + K * K, :K]                               # (K*K, K)

    # ---- single fused MXU matmul: embedding + attention-hidden + classifier projection ----
    fused = jnp.dot(feat, w_cat, preferred_element_type=jnp.float32) + b_cat   # (R, 64)
    emb = fused[:, :E]                                                     # (R, E)  features
    h = jnp.tanh(fused[:, E:E + D])                                        # (R, D)
    proj = fused[:, E + D:E + D + K * K]                                   # (R, K*K): lane j*K+k

    # ---- attention scores: Linear(D -> K) --------------------------------------------------
    s = jnp.dot(h, w_a2, preferred_element_type=jnp.float32) + b_a2        # (R, K)

    # ---- per-bag softmax over the instance axis (torch: softmax(A.T, dim=1)) --------------
    s3 = s.reshape(tb, N_INSTANCES, K)
    s_max = jnp.max(s3, axis=1, keepdims=True)
    p = jnp.exp(s3 - s_max)
    denom = jnp.sum(p, axis=1, keepdims=True)
    a3 = p / denom                               # exact divide: weights sum to 1 exactly
    a2d = a3.reshape(rows, K)                                              # (R, K)

    # ---- attention pooling + classifier ----------------------------------------------------
    # y[b, j] = sum_{n,k,l} a[b,n,k] * emb[b,n,l] * Wc[k*L+l, j]
    #         = sum_{n,k}   a[b,n,k] * proj[b,n, j*K+k]
    a_rep = jnp.concatenate([a2d] * K, axis=-1)                            # (R, K*K): lane j*K+k -> a[:, k]
    weighted = (proj * a_rep).reshape(tb, N_INSTANCES, K * K)
    per_bag = jnp.sum(weighted, axis=1)                                    # (TB, K*K)  sum over instances
    y = jnp.dot(per_bag, g_sum, preferred_element_type=jnp.float32) + b_cls  # (TB, K)   sum over k

    # ---- sigmoid + clamp(1e-7, 1 - 1e-7) ---------------------------------------------------
    y = 1.0 / (1.0 + jnp.exp(-y))
    y = jnp.clip(y, 1e-7, 1.0 - 1e-7)

    # ---- dense outputs (no zero-pad lanes, y written once per bag) -------------------------
    feats_ref[...] = emb.astype(feats_ref.dtype)
    a_ref[...] = a2d.astype(a_ref.dtype)
    y_ref[...] = y.astype(y_ref.dtype)


@jax.jit
def mil_forward(conv_layers_out, packed_params):
    """conv_layers_out: (B, N_INSTANCES, FC_FEAT_IN) extracted patch features, per bag."""
    B, N, F = conv_layers_out.shape
    assert N == N_INSTANCES and F == FC_FEAT_IN

    # Keep the bag grid >= 2 steps (v7x has 2 TensorCores); otherwise as few, big steps as
    # possible (per-grid-step overhead dominates this tiny head).
    n_steps = max(2, pl.cdiv(B, MAX_BAGS_PER_BLOCK))
    tb = ((pl.cdiv(B, n_steps) + 7) // 8) * 8          # 8-row-aligned bag tile
    bp = n_steps * tb
    pad_bags = bp - B

    x = conv_layers_out
    if pad_bags:                                        # only taken for awkward B; B=128 -> no pad
        x = jnp.concatenate([x, jnp.zeros((pad_bags, N, F), x.dtype)], axis=0)
    flat = x.reshape(bp * N, F)
    rows = tb * N

    feats_flat, a_flat, y_bags = pl.pallas_call(
        _mil_kernel,
        out_shape=(
            jax.ShapeDtypeStruct((bp * N, E), jnp.float32),   # features_to_return
            jax.ShapeDtypeStruct((bp * N, K), jnp.float32),   # softmax attention (instance-major)
            jax.ShapeDtypeStruct((bp, K), jnp.float32),       # pooled prediction, one row per bag
        ),
        grid=(n_steps,),
        in_specs=[
            pl.BlockSpec((rows, F), lambda i: (i, 0)),               # per-step bag block
            pl.BlockSpec((_P_ROWS, _P_LANES), lambda i: (0, 0)),     # grid-invariant weights
        ],
        out_specs=(
            pl.BlockSpec((rows, E), lambda i: (i, 0)),
            pl.BlockSpec((rows, K), lambda i: (i, 0)),
            pl.BlockSpec((tb, K), lambda i: (i, 0)),
        ),
        compiler_params=pltpu.CompilerParams(
            dimension_semantics=("parallel",)),
    )(flat, packed_params)

    feats = feats_flat[:B * N].reshape(B, N, E)                        # features_to_return
    A = jnp.transpose(a_flat[:B * N].reshape(B, N, K), (0, 2, 1))      # (B, K, N) = softmax(A.T)
    out_pool = y_bags[:B]                                              # (B, K)
    return out_pool, A, feats


def init_params(key):
    """Deterministic synthetic weights (shapes match the torch module, pre-transposed)."""
    ks = jax.random.split(key, 8)

    def lin(k, fan_in, shape):
        return jax.random.normal(k, shape, jnp.float32) / jnp.sqrt(fan_in)

    w_emb = lin(ks[0], FC_FEAT_IN, (FC_FEAT_IN, E))   # embedding.weight^T
    b_emb = lin(ks[1], FC_FEAT_IN, (1, E))
    w_a1 = lin(ks[2], L, (L, D))                      # attention[0].weight^T
    b_a1 = lin(ks[3], L, (1, D))
    w_a2 = lin(ks[4], D, (D, K))                      # attention[2].weight^T
    b_a2 = lin(ks[5], D, (1, K))
    w_cls = lin(ks[6], L * K, (L * K, K))             # classifier[0].weight^T
    b_cls = lin(ks[7], L * K, (1, K))
    return (w_emb, b_emb, w_a1, b_a1, w_a2, b_a2, w_cls, b_cls)


def pack_params(params):
    """Fold the linear chains and pack everything into one (120, 64) f32 slab (single DMA)."""
    w_emb, b_emb, w_a1, b_a1, w_a2, b_a2, w_cls, b_cls = params
    hi = jax.lax.Precision.HIGHEST

    # classifier weight rearranged: w_big[l, j*K + k] = w_cls[k*L + l, j]
    wc3 = w_cls.reshape(K, L, K)                                   # [k, l, j]
    w_big = jnp.transpose(wc3, (1, 2, 0)).reshape(L, K * K)        # [l, j*K + k]

    # fold the embedding into the attention / classifier projections (exact-precision host matmuls)
    w_cat = jnp.concatenate(
        [w_emb,
         jnp.dot(w_emb, w_a1, precision=hi),
         jnp.dot(w_emb, w_big, precision=hi)], axis=1)             # (F, E + D + K*K) = (64, 64)
    b_cat = jnp.concatenate(
        [b_emb,
         jnp.dot(b_emb, w_a1, precision=hi) + b_a1,
         jnp.dot(b_emb, w_big, precision=hi)], axis=1)             # (1, 64)

    g = jnp.repeat(jnp.eye(K, dtype=jnp.float32), K, axis=0)       # (K*K, K): row j*K+k -> e_j

    slab = jnp.zeros((_P_ROWS, _P_LANES), jnp.float32)
    slab = slab.at[_ROW_W_CAT:_ROW_W_CAT + FC_FEAT_IN, :].set(w_cat)
    slab = slab.at[_ROW_B_CAT, :].set(b_cat[0])
    slab = slab.at[_ROW_W_A2:_ROW_W_A2 + D, :K].set(w_a2)
    slab = slab.at[_ROW_B_A2, :K].set(b_a2[0])
    slab = slab.at[_ROW_B_CLS, :K].set(b_cls[0])
    slab = slab.at[_ROW_G:_ROW_G + K * K, :K].set(g)
    return slab


def reference(bags, params):
    """Pure-JAX re-statement of the torch forward (x=None branch), vmapped over bags."""
    w_emb, b_emb, w_a1, b_a1, w_a2, b_a2, w_cls, b_cls = params

    def one_bag(f):                                           # f: (N, F)
        emb = f @ w_emb + b_emb                               # features_to_return (N, E)
        a_pre = jnp.tanh(emb @ w_a1 + b_a1) @ w_a2 + b_a2     # (N, K)
        a_t = jax.nn.softmax(a_pre.T, axis=1)                 # (K, N)
        m = a_t @ emb                                         # (K, L)
        y = m.reshape(1, L * K) @ w_cls + b_cls               # multilabel view
        out = jnp.clip(jax.nn.sigmoid(y), 1e-7, 1.0 - 1e-7)
        return out[0], a_t, emb

    return jax.vmap(one_bag)(bags)


if __name__ == "__main__":
    key = jax.random.PRNGKey(0)
    k_feat, k_par = jax.random.split(key)

    B = 128  # number of bags -> 2 parallel grid steps of 64 bags (512 rows) each
    bags = jax.random.normal(k_feat, (B, N_INSTANCES, FC_FEAT_IN), jnp.float32)
    params = init_params(k_par)
    packed = pack_params(params)

    out_pool, A, feats = jax.block_until_ready(mil_forward(bags, packed))
    ref_pool, ref_A, ref_feats = reference(bags, params)

    assert out_pool.shape == (B, K)
    assert A.shape == (B, K, N_INSTANCES)
    assert feats.shape == (B, N_INSTANCES, E)
    # emb lanes of the fused matmul are the same f32 product as the reference; attention /
    # pooled outputs differ only by fold-associativity rounding.
    assert jnp.allclose(feats, ref_feats, atol=1e-4, rtol=1e-4)
    assert jnp.allclose(A, ref_A, atol=5e-3, rtol=5e-3)
    assert jnp.allclose(out_pool, ref_pool, atol=5e-3, rtol=5e-3)

    print("KERNEL_OK")
</pallas_src>

<mosaic_0001>
module attributes {stable_mosaic.version = 11 : i64} {
  func.func @_mil_kernel(%arg0: i32, %arg1: memref<512x64xf32, #tpu.memory_space<vmem>>, %arg2: memref<120x64xf32, #tpu.memory_space<vmem>>, %arg3: memref<512x32xf32, #tpu.memory_space<vmem>>, %arg4: memref<512x4xf32, #tpu.memory_space<vmem>>, %arg5: memref<64x4xf32, #tpu.memory_space<vmem>>) attributes {dimension_semantics = [#tpu.dimension_semantics<parallel>], iteration_bounds = array<i64: 2>, scalar_prefetch = 0 : i64, scratch_operands = 0 : i64, tpu.core_type = #tpu.core_type<tc>, window_params = [{transform_indices = @transform_0, window_bounds = array<i64: 512, 64>}, {pipeline_mode = #tpu.pipeline_mode<synchronous>, transform_indices = @transform_1, window_bounds = array<i64: 120, 64>}, {transform_indices = @transform_2, window_bounds = array<i64: 512, 32>}, {transform_indices = @transform_3, window_bounds = array<i64: 512, 4>}, {transform_indices = @transform_4, window_bounds = array<i64: 64, 4>}]} {
    %c0 = arith.constant 0 : index
    %c0_0 = arith.constant 0 : index
    %0 = vector.load %arg1[%c0, %c0_0] : memref<512x64xf32, #tpu.memory_space<vmem>>, vector<512x64xf32>
    %c0_1 = arith.constant 0 : index
    %c0_2 = arith.constant 0 : index
    %1 = vector.load %arg2[%c0_1, %c0_2] : memref<120x64xf32, #tpu.memory_space<vmem>>, vector<64x64xf32>
    %c64 = arith.constant 64 : index
    %c0_3 = arith.constant 0 : index
    %2 = vector.load %arg2[%c64, %c0_3] : memref<120x64xf32, #tpu.memory_space<vmem>>, vector<1x64xf32>
    %c72 = arith.constant 72 : index
    %c0_4 = arith.constant 0 : index
    %3 = vector.load %arg2[%c72, %c0_4] : memref<120x64xf32, #tpu.memory_space<vmem>>, vector<16x4xf32>
    %c88 = arith.constant 88 : index
    %c0_5 = arith.constant 0 : index
    %4 = vector.load %arg2[%c88, %c0_5] : memref<120x64xf32, #tpu.memory_space<vmem>>, vector<1x4xf32>
    %c96 = arith.constant 96 : index
    %c0_6 = arith.constant 0 : index
    %5 = vector.load %arg2[%c96, %c0_6] : memref<120x64xf32, #tpu.memory_space<vmem>>, vector<1x4xf32>
    %c104 = arith.constant 104 : index
    %c0_7 = arith.constant 0 : index
    %6 = vector.load %arg2[%c104, %c0_7] : memref<120x64xf32, #tpu.memory_space<vmem>>, vector<16x4xf32>
    %cst = arith.constant dense<0.000000e+00> : vector<512x64xf32>
    %7 = tpu.matmul %0, %1, %cst {dimension_numbers = #tpu.dot_dimension_numbers<[1], [0], [0], [1], [0, 0, 1, 1], [], []>} : vector<512x64xf32>, vector<64x64xf32>, vector<512x64xf32> -> vector<512x64xf32>
    %8 = vector.broadcast %2 : vector<1x64xf32> to vector<512x64xf32>
    %9 = arith.addf %7, %8 : vector<512x64xf32>
    %10 = vector.extract_strided_slice %9 {offsets = [0, 0], sizes = [512, 32], strides = [1, 1]} : vector<512x64xf32> to vector<512x32xf32>
    %11 = vector.extract_strided_slice %9 {offsets = [0, 32], sizes = [512, 16], strides = [1, 1]} : vector<512x64xf32> to vector<512x16xf32>
    %12 = math.tanh %11 : vector<512x16xf32>
    %13 = vector.extract_strided_slice %9 {offsets = [0, 48], sizes = [512, 16], strides = [1, 1]} : vector<512x64xf32> to vector<512x16xf32>
    %cst_8 = arith.constant dense<0.000000e+00> : vector<512x4xf32>
    %14 = tpu.matmul %12, %3, %cst_8 {dimension_numbers = #tpu.dot_dimension_numbers<[1], [0], [0], [1], [0, 0, 1, 1], [], []>} : vector<512x16xf32>, vector<16x4xf32>, vector<512x4xf32> -> vector<512x4xf32>
    %15 = vector.broadcast %4 : vector<1x4xf32> to vector<512x4xf32>
    %16 = arith.addf %14, %15 : vector<512x4xf32>
    %17 = vector.shape_cast %16 : vector<512x4xf32> to vector<64x8x4xf32>
    %cst_9 = arith.constant dense<0xFF800000> : vector<64x4xf32>
    %18 = vector.multi_reduction <maximumf>, %17, %cst_9 [1] : vector<64x8x4xf32> to vector<64x4xf32>
    %19 = vector.shape_cast %18 : vector<64x4xf32> to vector<64x1x4xf32>
    %20 = vector.broadcast %19 : vector<64x1x4xf32> to vector<64x8x4xf32>
    %21 = arith.subf %17, %20 : vector<64x8x4xf32>
    %22 = math.exp %21 : vector<64x8x4xf32>
    %cst_10 = arith.constant dense<0.000000e+00> : vector<64x4xf32>
    %23 = vector.multi_reduction <add>, %22, %cst_10 [1] : vector<64x8x4xf32> to vector<64x4xf32>
    %24 = vector.shape_cast %23 : vector<64x4xf32> to vector<64x1x4xf32>
    %25 = vector.broadcast %24 : vector<64x1x4xf32> to vector<64x8x4xf32>
    %26 = arith.divf %22, %25 : vector<64x8x4xf32>
    %27 = vector.shape_cast %26 : vector<64x8x4xf32> to vector<512x4xf32>
    %28 = tpu.concatenate %27, %27, %27, %27 in 1 : vector<512x4xf32>, vector<512x4xf32>, vector<512x4xf32>, vector<512x4xf32> -> vector<512x16xf32>
    %29 = arith.mulf %13, %28 : vector<512x16xf32>
    %30 = vector.shape_cast %29 : vector<512x16xf32> to vector<64x8x16xf32>
    %cst_11 = arith.constant dense<0.000000e+00> : vector<64x16xf32>
    %31 = vector.multi_reduction <add>, %30, %cst_11 [1] : vector<64x8x16xf32> to vector<64x16xf32>
    %cst_12 = arith.constant dense<0.000000e+00> : vector<64x4xf32>
    %32 = tpu.matmul %31, %6, %cst_12 {dimension_numbers = #tpu.dot_dimension_numbers<[1], [0], [0], [1], [0, 0, 1, 1], [], []>} : vector<64x16xf32>, vector<16x4xf32>, vector<64x4xf32> -> vector<64x4xf32>
    %33 = vector.broadcast %5 : vector<1x4xf32> to vector<64x4xf32>
    %34 = arith.addf %32, %33 : vector<64x4xf32>
    %cst_13 = arith.constant 0.000000e+00 : f32
    %35 = vector.broadcast %cst_13 : f32 to vector<64x4xf32>
    %36 = arith.subf %35, %34 : vector<64x4xf32>
    %37 = math.exp %36 : vector<64x4xf32>
    %cst_14 = arith.constant 1.000000e+00 : f32
    %38 = vector.broadcast %cst_14 : f32 to vector<64x4xf32>
    %39 = arith.addf %38, %37 : vector<64x4xf32>
    %cst_15 = arith.constant 1.000000e+00 : f32
    %40 = vector.broadcast %cst_15 : f32 to vector<64x4xf32>
    %41 = arith.divf %40, %39 : vector<64x4xf32>
    %cst_16 = arith.constant 1.000000e-07 : f32
    %cst_17 = arith.constant 0.99999988 : f32
    %42 = vector.broadcast %cst_16 : f32 to vector<64x4xf32>
    %43 = arith.maximumf %42, %41 : vector<64x4xf32>
    %44 = vector.broadcast %cst_17 : f32 to vector<64x4xf32>
    %45 = arith.minimumf %44, %43 : vector<64x4xf32>
    %c0_18 = arith.constant 0 : index
    %c0_19 = arith.constant 0 : index
    %46 = vector.load %arg3[%c0_18, %c0_19] : memref<512x32xf32, #tpu.memory_space<vmem>>, vector<512x32xf32>
    tpu.vector_store %arg3[%c0_18, %c0_19], %10 {strides = array<i32>} : memref<512x32xf32, #tpu.memory_space<vmem>>, vector<512x32xf32>,
    %c0_20 = arith.constant 0 : index
    %c0_21 = arith.constant 0 : index
    %47 = vector.load %arg4[%c0_20, %c0_21] : memref<512x4xf32, #tpu.memory_space<vmem>>, vector<512x4xf32>
    tpu.vector_store %arg4[%c0_20, %c0_21], %27 {strides = array<i32>} : memref<512x4xf32, #tpu.memory_space<vmem>>, vector<512x4xf32>,
    %c0_22 = arith.constant 0 : index
    %c0_23 = arith.constant 0 : index
    %48 = vector.load %arg5[%c0_22, %c0_23] : memref<64x4xf32, #tpu.memory_space<vmem>>, vector<64x4xf32>
    tpu.vector_store %arg5[%c0_22, %c0_23], %45 {strides = array<i32>} : memref<64x4xf32, #tpu.memory_space<vmem>>, vector<64x4xf32>,
    return
  }
  func.func @transform_0(%arg0: i32) -> (i32, i32) {
    %c0_i32 = arith.constant 0 : i32
    %c0_i32_0 = arith.constant 0 : i32
    return %arg0, %c0_i32 : i32, i32
  }
  func.func @transform_1(%arg0: i32) -> (i32, i32) {
    %c0_i32 = arith.constant 0 : i32
    %c0_i32_0 = arith.constant 0 : i32
    %c0_i32_1 = arith.constant 0 : i32
    return %c0_i32, %c0_i32_0 : i32, i32
  }
  func.func @transform_2(%arg0: i32) -> (i32, i32) {
    %c0_i32 = arith.constant 0 : i32
    %c0_i32_0 = arith.constant 0 : i32
    return %arg0, %c0_i32 : i32, i32
  }
  func.func @transform_3(%arg0: i32) -> (i32, i32) {
    %c0_i32 = arith.constant 0 : i32
    %c0_i32_0 = arith.constant 0 : i32
    return %arg0, %c0_i32 : i32, i32
  }
  func.func @transform_4(%arg0: i32) -> (i32, i32) {
    %c0_i32 = arith.constant 0 : i32
    %c0_i32_0 = arith.constant 0 : i32
    return %arg0, %c0_i32 : i32, i32
  }
}

</mosaic_0001>

<bundles_post_ra>
// kernel: mil_forward.1
= control target key start
LH: loop header
LB: loop body
LE: loop exit
PB: predicated region body
PF: predicated region fallthrough
CT: control target
= control target key end

     0   :  { %s6101_s15 = smov 0   ;;  %s9680_s0 = inlined_call_operand.vmem [shape: f32[1024,64], index: 0, kind: input, shape index: {}]   ;;  %s9681_s1 = inlined_call_operand.vmem [shape: f32[120,64], index: 1, kind: input, shape index: {}]   ;;  %s9682_s2 = inlined_call_operand.vmem [shape: f32[1024,32], index: 2, kind: output, shape index: {0}]   ;;  %s9683_s3 = inlined_call_operand.vmem [shape: f32[1024,4], index: 3, kind: output, shape index: {1}]   ;;  %s9684_s4 = inlined_call_operand.vmem [shape: f32[128,4], index: 4, kind: output, shape index: {2}]  }
   0x1 LB: > { %s5076_s16 = sadd.s32 4294967295, %s6068_s15   ;;  %p5080_p0 = scmp.ge.s32.totalorder %s6068_s15, 1  ;;  %s6068_s15 = sphi %s6101_s15, %s15_s15  }
   0x2   : > { %p168_p1 = scmp.lt.s32.totalorder %s6068_s15, 3 }
   0x4   : > { %p169_p2 = pnand %p5080_p0, %p168_p1 }
   0x6   : > { %172 = sbr.rel (%p169_p2) target bundleno = 1670 (0x686), region = 28 }
   0xd   : > { %v292_v0 = vld [vmem:[%s9681_s1] sm:$0xff]  ;;  %v293_v1 = vld [vmem:[%s9681_s1 + $0x8] sm:$0xff]  ;;  %v294_v2 = vld [vmem:[%s9681_s1 + $0x10] sm:$0xff]  ;;  %s5081_s23 = sshll.u32 %s5076_s16, 6  ;;  %vm311_vm0 = vcmask 523264   ;;  %vm4815_vm1 = vcmask 261120  }
   0xe   : > { %v5606_v3 = vpack.c.bf16 %v293_v1, %v292_v0  ;;  %v295_v4 = vld [vmem:[%s9681_s1 + $0x18] sm:$0xff]  ;;  %p205_p3 = scmp.lt.s32.totalorder %s5081_s23, 127  ;;  %v296_v6 = vld [vmem:[%s9681_s1 + $0x20] sm:$0xff]  ;;  %v297_v7 = vld [vmem:[%s9681_s1 + $0x28] sm:$0xff]  ;;  %vm1149_vm2 = vcmask 130048   ;;  %vm1663_vm3 = vcmask 31744  }
   0xf   : > { %v5610_v5 = vpack.c.bf16 %v295_v4, %v294_v2  ;;  %v5614_v8 = vpack.c.bf16 %v297_v7, %v296_v6  ;;  %v298_v9 = vld [vmem:[%s9681_s1 + $0x30] sm:$0xff]  ;;  %v299_v10 = vld [vmem:[%s9681_s1 + $0x38] sm:$0xff]  ;;  %s6071_s29 = smov 8   ;;  %s6073_s5 = smov 12   ;;  %vm3584_vm4 = vcmask 64512   ;;  %vm3649_vm5 = vcmask 97280  }
  0x10   : > { %5607 = vmatprep.subr.bf16.mxu0 %v5606_v3  ;;  %s10285_s23 = smov (!%p205_p3, %s5081_s23), 127  ;;  %v5618_v12 = vpack.c.bf16 %v299_v10, %v298_v9  ;;  %v6270_v10 = vld [vmem:[%s9681_s1 + $0x40] ss:$0 sm:$0xff]  ;;  %s6074_s10 = smov 48   ;;  %vm4034_vm6 = vcmask 523648   ;;  %vm4551_vm7 = vcmask 1041409  }
  0x11   : > { %5609 = vmatpush3.bf16.msra.mxu0 %v5606_v3  ;;  %s6129_s30 = sshll.u32 %s10285_s23, 3  ;;  %s6070_s23 = smov 96   ;;  %vm4553_vm8 = vcmask 1042434   ;;  %vm4555_vm9 = vcmask 1043459   ;;  %vm4557_vm10 = vcmask 1044484   ;;  %vm4559_vm11 = vcmask 1045509  }
  0x12   : > { %5611 = vmatprep.subr.bf16.mxu0 %v5610_v5  ;;  %s6141_s11 = scalar_lea.vmem %s9680_s0, %s6129_s30  ;;  %s6282_s22 = scalar_lea.vmem %s9682_s2, %s6129_s30  ;;  %vm4561_vm12 = vcmask 1046534   ;;  %vm4563_vm13 = vcmask 1047559  }
  0x13   : > { %v228_v11 = vld [vmem:[%s6141_s11] sm:$0xff]  ;;  %v229_v13 = vld [vmem:[%s6141_s11 + $0x8] sm:$0xff]  ;;  %v230_v14 = vld [vmem:[%s6141_s11 + $0x10] sm:$0xff]  ;;  %s7036_s28 = scalar_lea.vmem %s9683_s3, %s6129_s30  ;;  %s6072_s30 = smov 4  }
  0x14   : > { %5394 = vmatprep.mubr.msk.f32.mxu0 %vm311_vm0, %v228_v11  ;;  %v231_v15 = vld [vmem:[%s6141_s11 + $0x18] sm:$0xff]  ;;  %v232_v16 = vld [vmem:[%s6141_s11 + $0x20] sm:$0xff]  ;;  %v233_v17 = vld [vmem:[%s6141_s11 + $0x28] sm:$0xff]  ;;  %s6075_s17 = smov 80   ;;  %s5087_s20 = sshll.u32 %s5076_s16, 3 }
  0x15   : > { %5613 = vmatpush3.bf16.msra.mxu0 %v5610_v5  ;;  %v234_v18 = vld [vmem:[%s6141_s11 + $0x30] sm:$0xff]  ;;  %v235_v19 = vld [vmem:[%s6141_s11 + $0x38] sm:$0xff]  ;;  %v236_v20 = vld [vmem:[%s6141_s11 + $0x40] sm:$0xff]  ;;  %p223_p4 = scmp.lt.s32.totalorder %s5087_s20, 15 }
  0x16   : > { %5615 = vmatprep.subr.bf16.mxu0 %v5614_v8  ;;  %v237_v21 = vld [vmem:[%s6141_s11 + $0x48] sm:$0xff]  ;;  %v238_v22 = vld [vmem:[%s6141_s11 + $0x50] sm:$0xff]  ;;  %v239_v23 = vld [vmem:[%s6141_s11 + $0x58] sm:$0xff] }
  0x17   : > { %v240_v24 = vld [vmem:[%s6141_s11 + $0x60] sm:$0xff]  ;;  %v241_v25 = vld [vmem:[%s6141_s11 + $0x68] sm:$0xff]  ;;  %v242_v26 = vld [vmem:[%s6141_s11 + $0x70] sm:$0xff]  ;;  %s10287_s20 = smov (!%p223_p4, %s5087_s20), 15 }
  0x18   : > { %v243_v27 = vld [vmem:[%s6141_s11 + $0x78] sm:$0xff]  ;;  %v244_v28 = vld [vmem:[%s6141_s11 + $0x80] sm:$0xff]  ;;  %v245_v29 = vld [vmem:[%s6141_s11 + $0x88] sm:$0xff]  ;;  %s5088_s21 = sshll.u32 %s10287_s20, 3 }
  0x19   : > { %5617 = vmatpush3.bf16.msra.mxu0 %v5614_v8  ;;  %v246_v30 = vld [vmem:[%s6141_s11 + $0x90] sm:$0xff]  ;;  %v247_v31 = vld [vmem:[%s6141_s11 + $0x98] sm:$0xff]  ;;  %v248_v32 = vld [vmem:[%s6141_s11 + $0xa0] sm:$0xff]  ;;  %s9653_s24 = scalar_lea.vmem %s9684_s4, %s5088_s21 }
  0x1a   : > { %5619 = vmatprep.subr.bf16.mxu0 %v5618_v12  ;;  %v249_v33 = vld [vmem:[%s6141_s11 + $0xa8] sm:$0xff]  ;;  %v250_v34 = vld [vmem:[%s6141_s11 + $0xb0] sm:$0xff]  ;;  %v251_v35 = vld [vmem:[%s6141_s11 + $0xb8] sm:$0xff] }
  0x1b   : > { %v252_v36 = vld [vmem:[%s6141_s11 + $0xc0] sm:$0xff]  ;;  %v253_v37 = vld [vmem:[%s6141_s11 + $0xc8] sm:$0xff]  ;;  %v254_v38 = vld [vmem:[%s6141_s11 + $0xd0] sm:$0xff] }
  0x1c   : > { %v255_v39 = vld [vmem:[%s6141_s11 + $0xd8] sm:$0xff]  ;;  %v256_v40 = vld [vmem:[%s6141_s11 + $0xe0] sm:$0xff]  ;;  %v257_v41 = vld [vmem:[%s6141_s11 + $0xe8] sm:$0xff] }
  0x1d   : > { %5621 = vmatpush3.bf16.msra.mxu0 %v5618_v12  ;;  %v258_v42 = vld [vmem:[%s6141_s11 + $0xf0] sm:$0xff]  ;;  %v259_v43 = vld [vmem:[%s6141_s11 + $0xf8] sm:$0xff]  ;;  %v260_v44 = vld [vmem:[%s6141_s11 + $0x100] sm:$0xff] }
  0x1e   : > { %v261_v45 = vld [vmem:[%s6141_s11 + $0x108] sm:$0xff]  ;;  %v262_v46 = vld [vmem:[%s6141_s11 + $0x110] sm:$0xff]  ;;  %v263_v47 = vld [vmem:[%s6141_s11 + $0x118] sm:$0xff] }
  0x1f   : > { %v264_v48 = vld [vmem:[%s6141_s11 + $0x120] sm:$0xff]  ;;  %v265_v49 = vld [vmem:[%s6141_s11 + $0x128] sm:$0xff]  ;;  %v266_v50 = vld [vmem:[%s6141_s11 + $0x130] sm:$0xff] }
  0x20   : > { %5395 = vmatmul.mubr.msk.f32.vlgmr.msra.gmra.mrb[0].mxu0 %vm311_vm0, %v229_v13  ;;  %v267_v51 = vld [vmem:[%s6141_s11 + $0x138] sm:$0xff]  ;;  %v268_v52 = vld [vmem:[%s6141_s11 + $0x140] sm:$0xff]  ;;  %v269_v53 = vld [vmem:[%s6141_s11 + $0x148] sm:$0xff] }
  0x21   : > { %5397 = vmatprep.mubr.msk.f32.mxu0 %vm311_vm0, %v230_v14  ;;  %v270_v54 = vld [vmem:[%s6141_s11 + $0x150] sm:$0xff]  ;;  %v271_v55 = vld [vmem:[%s6141_s11 + $0x158] sm:$0xff]  ;;  %v272_v56 = vld [vmem:[%s6141_s11 + $0x160] sm:$0xff] }
  0x22   : > { %v273_v57 = vld [vmem:[%s6141_s11 + $0x168] sm:$0xff]  ;;  %v274_v58 = vld [vmem:[%s6141_s11 + $0x170] sm:$0xff]  ;;  %v275_v59 = vld [vmem:[%s6141_s11 + $0x178] sm:$0xff] }
  0x23   : > { %v276_v60 = vld [vmem:[%s6141_s11 + $0x180] sm:$0xff]  ;;  %v277_v61 = vld [vmem:[%s6141_s11 + $0x188] sm:$0xff]  ;;  %v278_v62 = vld [vmem:[%s6141_s11 + $0x190] sm:$0xff] }
  0x24   : > { %5398 = vmatmul.mubr.msk.f32.gmra.mrb[2].mxu0 %vm311_vm0, %v231_v15  ;;  %v279_v63 = vld [vmem:[%s6141_s11 + $0x198] sm:$0xff]  ;;  %v280_v0 = vld [vmem:[%s6141_s11 + $0x1a0] sm:$0xff]  ;;  %v281_v1 = vld [vmem:[%s6141_s11 + $0x1a8] sm:$0xff] }
  0x25   : > { %5400 = vmatprep.mubr.msk.f32.mxu0 %vm311_vm0, %v232_v16  ;;  %v282_v2 = vld [vmem:[%s6141_s11 + $0x1b0] sm:$0xff]  ;;  %v283_v3 = vld [vmem:[%s6141_s11 + $0x1b8] sm:$0xff]  ;;  %v284_v4 = vld [vmem:[%s6141_s11 + $0x1c0] sm:$0xff] }
  0x26   : > { %v285_v5 = vld [vmem:[%s6141_s11 + $0x1c8] sm:$0xff]  ;;  %v286_v6 = vld [vmem:[%s6141_s11 + $0x1d0] sm:$0xff]  ;;  %v287_v7 = vld [vmem:[%s6141_s11 + $0x1d8] sm:$0xff] }
  0x27   : > { %v288_v8 = vld [vmem:[%s6141_s11 + $0x1e0] sm:$0xff]  ;;  %v289_v9 = vld [vmem:[%s6141_s11 + $0x1e8] sm:$0xff]  ;;  %v302_v12 = vld [vmem:[%s9681_s1 + $0x50] sm:$0xff] }
  0x28   : > { %5401 = vmatmul.mubr.msk.f32.gmra.mrb[4].mxu0 %vm311_vm0, %v233_v17  ;;  %v301_v11 = vld [vmem:[%s9681_s1 + $0x48] sm:$0xff]  ;;  %v290_v15 = vld [vmem:[%s6141_s11 + $0x1f0] sm:$0xff]  ;;  %v291_v16 = vld [vmem:[%s6141_s11 + $0x1f8] sm:$0xff] }
  0x29   : > { %5403 = vmatprep.mubr.msk.f32.mxu0 %vm311_vm0, %v234_v18  ;;  %v5622_v14 = vpack.c.bf16 %v302_v12, %v301_v11 }
  0x2b   : > { %5623 = vmatprep.subr.bf16.mxu1 %v5622_v14 }
  0x2c   : > { %5404 = vmatmul.mubr.msk.f32.gmra.mrb[6].mxu0 %vm311_vm0, %v235_v19  ;;  %5625 = vmatpush3.bf16.msra.mxu1 %v5622_v14 }
  0x2d   : > { %5406 = vmatprep.mubr.msk.f32.mxu0 %vm311_vm0, %v236_v20 }
  0x30   : > { %5407 = vmatmul.mubr.msk.f32.gmra.mrb[8].mxu0 %vm311_vm0, %v237_v21 }
  0x31   : > { %5409 = vmatprep.mubr.msk.f32.mxu0 %vm311_vm0, %v238_v22 }
  0x34   : > { %5410 = vmatmul.mubr.msk.f32.gmra.mrb[10].mxu0 %vm311_vm0, %v239_v23 }
  0x35   : > { %5412 = vmatprep.mubr.msk.f32.mxu0 %vm311_vm0, %v240_v24 }
  0x38   : > { %5413 = vmatmul.mubr.msk.f32.gmra.mrb[12].mxu0 %vm311_vm0, %v241_v25 }
  0x39   : > { %5415 = vmatprep.mubr.msk.f32.mxu0 %vm311_vm0, %v242_v26 }
  0x3c   : > { %5416 = vmatmul.mubr.msk.f32.gmra.mrb[14].mxu0 %vm311_vm0, %v243_v27 }
  0x3d   : > { %5418 = vmatprep.mubr.msk.f32.mxu0 %vm311_vm0, %v244_v28 }
  0x40   : > { %5419 = vmatmul.mubr.msk.f32.gmra.mrb[16].mxu0 %vm311_vm0, %v245_v29 }
  0x41   : > { %5421 = vmatprep.mubr.msk.f32.mxu0 %vm311_vm0, %v246_v30 }
  0x44   : > { %5422 = vmatmul.mubr.msk.f32.gmra.mrb[18].mxu0 %vm311_vm0, %v247_v31 }
  0x45   : > { %5424 = vmatprep.mubr.msk.f32.mxu0 %vm311_vm0, %v248_v32 }
  0x48   : > { %5425 = vmatmul.mubr.msk.f32.gmra.mrb[20].mxu0 %vm311_vm0, %v249_v33 }
  0x49   : > { %5427 = vmatprep.mubr.msk.f32.mxu0 %vm311_vm0, %v250_v34 }
  0x4c   : > { %5428 = vmatmul.mubr.msk.f32.gmra.mrb[22].mxu0 %vm311_vm0, %v251_v35 }
  0x4d   : > { %5430 = vmatprep.mubr.msk.f32.mxu0 %vm311_vm0, %v252_v36 }
  0x50   : > { %5431 = vmatmul.mubr.msk.f32.gmra.mrb[24].mxu0 %vm311_vm0, %v253_v37 }
  0x51   : > { %5433 = vmatprep.mubr.msk.f32.mxu0 %vm311_vm0, %v254_v38 }
  0x54   : > { %5434 = vmatmul.mubr.msk.f32.gmra.mrb[26].mxu0 %vm311_vm0, %v255_v39 }
  0x55   : > { %5436 = vmatprep.mubr.msk.f32.mxu0 %vm311_vm0, %v256_v40 }
  0x58   : > { %5437 = vmatmul.mubr.msk.f32.gmra.mrb[28].mxu0 %vm311_vm0, %v257_v41 }
  0x59   : > { %5439 = vmatprep.mubr.msk.f32.mxu0 %vm311_vm0, %v258_v42 }
  0x5c   : > { %5440 = vmatmul.mubr.msk.f32.gmra.mrb[30].mxu0 %vm311_vm0, %v259_v43 }
  0x5d   : > { %5442 = vmatprep.mubr.msk.f32.mxu0 %vm311_vm0, %v260_v44 }
  0x60   : > { %5443 = vmatmul.mubr.msk.f32.gmra.mrb[32].mxu0 %vm311_vm0, %v261_v45 }
  0x61   : > { %5445 = vmatprep.mubr.msk.f32.mxu0 %vm311_vm0, %v262_v46 }
  0x64   : > { %5446 = vmatmul.mubr.msk.f32.gmra.mrb[34].mxu0 %vm311_vm0, %v263_v47 }
  0x65   : > { %5448 = vmatprep.mubr.msk.f32.mxu0 %vm311_vm0, %v264_v48 }
  0x68   : > { %5449 = vmatmul.mubr.msk.f32.gmra.mrb[36].mxu0 %vm311_vm0, %v265_v49 }
  0x69   : > { %5451 = vmatprep.mubr.msk.f32.mxu0 %vm311_vm0, %v266_v50 }
  0x6c   : > { %5452 = vmatmul.mubr.msk.f32.gmra.mrb[38].mxu0 %vm311_vm0, %v267_v51 }
  0x6d   : > { %5454 = vmatprep.mubr.msk.f32.mxu0 %vm311_vm0, %v268_v52 }
  0x70   : > { %5455 = vmatmul.mubr.msk.f32.gmra.mrb[40].mxu0 %vm311_vm0, %v269_v53 }
  0x71   : > { %5457 = vmatprep.mubr.msk.f32.mxu0 %vm311_vm0, %v270_v54 }
  0x74   : > { %5458 = vmatmul.mubr.msk.f32.gmra.mrb[42].mxu0 %vm311_vm0, %v271_v55 }
  0x75   : > { %5460 = vmatprep.mubr.msk.f32.mxu0 %vm311_vm0, %v272_v56 }
  0x78   : > { %5461 = vmatmul.mubr.msk.f32.gmra.mrb[44].mxu0 %vm311_vm0, %v273_v57 }
  0x79   : > { %5463 = vmatprep.mubr.msk.f32.mxu0 %vm311_vm0, %v274_v58 }
  0x7c   : > { %5464 = vmatmul.mubr.msk.f32.gmra.mrb[46].mxu0 %vm311_vm0, %v275_v59 }
  0x7d   : > { %5466 = vmatprep.mubr.msk.f32.mxu0 %vm311_vm0, %v276_v60 }
  0x80   : > { %5467 = vmatmul.mubr.msk.f32.gmra.mrb[48].mxu0 %vm311_vm0, %v277_v61 }
  0x81   : > { %5469 = vmatprep.mubr.msk.f32.mxu0 %vm311_vm0, %v278_v62 }
  0x84   : > { %5470 = vmatmul.mubr.msk.f32.gmra.mrb[50].mxu0 %vm311_vm0, %v279_v63 }
  0x85   : > { %5472 = vmatprep.mubr.msk.f32.mxu0 %vm311_vm0, %v280_v0 }
  0x88   : > { %5473 = vmatmul.mubr.msk.f32.gmra.mrb[52].mxu0 %vm311_vm0, %v281_v1 }
  0x89   : > { %5475 = vmatprep.mubr.msk.f32.mxu0 %vm311_vm0, %v282_v2 }
  0x8c   : > { %5476 = vmatmul.mubr.msk.f32.gmra.mrb[54].mxu0 %vm311_vm0, %v283_v3 }
  0x8d   : > { %5478 = vmatprep.mubr.msk.f32.mxu0 %vm311_vm0, %v284_v4 }
  0x90   : > { %5479 = vmatmul.mubr.msk.f32.gmra.mrb[56].mxu0 %vm311_vm0, %v285_v5 }
  0x91   : > { %5481 = vmatprep.mubr.msk.f32.mxu0 %vm311_vm0, %v286_v6 }
  0x94   : > { %5482 = vmatmul.mubr.msk.f32.gmra.mrb[58].mxu0 %vm311_vm0, %v287_v7 }
  0x95   : > { %5484 = vmatprep.mubr.msk.f32.mxu0 %vm311_vm0, %v288_v8 }
  0x98   : > { %5485 = vmatmul.mubr.msk.f32.gmra.mrb[60].mxu0 %vm311_vm0, %v289_v9 }
  0x99   : > { %5487 = vmatprep.mubr.msk.f32.mxu0 %vm311_vm0, %v290_v15 }
  0x9c   : > { %5488 = vmatmul.mubr.msk.f32.gmra.mrb[62].mxu0 %vm311_vm0, %v291_v16 }
  0xf3   : > { %v5396_v13 = vpop.f32.mrb[0].mxu0 }
  0xf4   : > { %v6287_v17 = vadd.f32 %v5396_v13, %v6270_v10  ;;  %v570_v18 = vpop.f32.mrb[1].mxu0 }
  0xf5   : > { %v6291_v19 = vadd.f32 %v6270_v10, %v570_v18 }
  0xf6   : > { %9814 = vst [vmem:[#allocation2_spill] sm:$0xff] %v6287_v17  ;;  %5644 = vtanh.f32 %v6287_v17  ;;  %4817 = vst.msk [vmem:[%s6282_s22 + $0x8] sm:$0xff] %vm4815_vm1, %v6287_v17 }
  0xf7   : > { %9815 = vst [vmem:[#allocation3_spill] sm:$0xff] %v6291_v19  ;;  %4816 = vst.msk [vmem:[%s6282_s22] sm:$0xff] %vm4815_vm1, %v6291_v19  ;;  %v5399_v20 = vpop.f32.mrb[2].mxu0  ;;  %5646 = vtanh.f32 %v6291_v19 }
  0xf8   : > { %v6302_v21 = vadd.f32 %v5399_v20, %v6270_v10  ;;  %v580_v22 = vpop.f32.mrb[3].mxu0 }
  0xf9   : > { %v6306_v23 = vadd.f32 %v6270_v10, %v580_v22 }
  0xfa   : > { %9816 = vst [vmem:[#allocation4_spill] sm:$0xff] %v6302_v21  ;;  %5648 = vtanh.f32 %v6302_v21  ;;  %4819 = vst.msk [vmem:[%s6282_s22 + $0x18] sm:$0xff] %vm4815_vm1, %v6302_v21 }
  0xfb   : > { %9817 = vst [vmem:[#allocation5_spill] sm:$0xff] %v6306_v23  ;;  %4818 = vst.msk [vmem:[%s6282_s22 + $0x10] sm:$0xff] %vm4815_vm1, %v6306_v23  ;;  %v5402_v24 = vpop.f32.mrb[4].mxu0  ;;  %5650 = vtanh.f32 %v6306_v23 }
  0xfc   : > { %v6317_v25 = vadd.f32 %v5402_v24, %v6270_v10  ;;  %v590_v26 = vpop.f32.mrb[5].mxu0 }
  0xfd   : > { %v6320_v27 = vadd.f32 %v6270_v10, %v590_v26 }
  0xfe   : > { %9818 = vst [vmem:[#allocation6_spill] sm:$0xff] %v6317_v25  ;;  %4821 = vst.msk [vmem:[%s6282_s22 + $0x28] sm:$0xff] %vm4815_vm1, %v6317_v25 }
  0xff   : > { %9819 = vst [vmem:[#allocation7_spill] sm:$0xff] %v6320_v27  ;;  %5652 = vtanh.f32 %v6320_v27  ;;  %4820 = vst.msk [vmem:[%s6282_s22 + $0x20] sm:$0xff] %vm4815_vm1, %v6320_v27  ;;  %v5405_v28 = vpop.f32.mrb[6].mxu0 }
 0x100   : > { %v5645_v29 = vpop.eup %5644  ;;  %5654 = vtanh.f32 %v6317_v25  ;;  %v6331_v30 = vadd.f32 %v5405_v28, %v6270_v10  ;;  %v600_v31 = vpop.f32.mrb[7].mxu0 }
 0x101   : > { %1023 = vrot.lane.b32.xlu0 %v5645_v29, %s6070_s23  ;;  %v6335_v32 = vadd.f32 %v6270_v10, %v600_v31  ;;  %v5647_v33 = vpop.eup %5646 }
 0x102   : > { %9820 = vst [vmem:[#allocation8_spill] sm:$0xff] %v6331_v30  ;;  %4823 = vst.msk [vmem:[%s6282_s22 + $0x38] sm:$0xff] %vm4815_vm1, %v6331_v30 }
 0x103   : > { %9821 = vst [vmem:[#allocation9_spill] sm:$0xff] %v6335_v32  ;;  %5656 = vtanh.f32 %v6335_v32  ;;  %4822 = vst.msk [vmem:[%s6282_s22 + $0x30] sm:$0xff] %vm4815_vm1, %v6335_v32  ;;  %v5408_v34 = vpop.f32.mrb[8].mxu0 }
 0x104   : > { %v5649_v35 = vpop.eup %5648  ;;  %5658 = vtanh.f32 %v6331_v30  ;;  %v6346_v36 = vadd.f32 %v5408_v34, %v6270_v10  ;;  %v610_v37 = vpop.f32.mrb[9].mxu0 }
 0x105   : > { %1027 = vrot.lane.b32.xlu1 %v5649_v35, %s6070_s23  ;;  %1021 = vrot.lane.b32.xlu0 %v5647_v33, %s6070_s23  ;;  %v6351_v38 = vadd.f32 %v6270_v10, %v610_v37  ;;  %v5651_v39 = vpop.eup %5650 }
 0x106   : > { %9822 = vst [vmem:[#allocation10_spill] sm:$0xff] %v6346_v36  ;;  %4825 = vst.msk [vmem:[%s6282_s22 + $0x48] sm:$0xff] %vm4815_vm1, %v6346_v36 }
 0x107   : > { %9823 = vst [vmem:[#allocation11_spill] sm:$0xff] %v6351_v38  ;;  %5660 = vtanh.f32 %v6351_v38  ;;  %4824 = vst.msk [vmem:[%s6282_s22 + $0x40] sm:$0xff] %vm4815_vm1, %v6351_v38  ;;  %v5411_v40 = vpop.f32.mrb[10].mxu0 }
 0x108   : > { %5662 = vtanh.f32 %v6346_v36  ;;  %v6362_v41 = vadd.f32 %v5411_v40, %v6270_v10  ;;  %v620_v42 = vpop.f32.mrb[11].mxu0 }
 0x109   : > { %v5653_v43 = vpop.eup %5652  ;;  %1025 = vrot.lane.b32.xlu1 %v5651_v39, %s6070_s23  ;;  %v6366_v44 = vadd.f32 %v6270_v10, %v620_v42 }
 0x10a   : > { %9824 = vst [vmem:[#allocation12_spill] sm:$0xff] %v6362_v41  ;;  %v5655_v45 = vpop.eup %5654  ;;  %4827 = vst.msk [vmem:[%s6282_s22 + $0x58] sm:$0xff] %vm4815_vm1, %v6362_v41  ;;  %1029 = vrot.lane.b32.xlu0 %v5653_v43, %s6070_s23 }
 0x10b   : > { %9825 = vst [vmem:[#allocation13_spill] sm:$0xff] %v6366_v44  ;;  %5664 = vtanh.f32 %v6366_v44  ;;  %4826 = vst.msk [vmem:[%s6282_s22 + $0x50] sm:$0xff] %vm4815_vm1, %v6366_v44  ;;  %v5414_v46 = vpop.f32.mrb[12].mxu0 }
 0x10c   : > { %5666 = vtanh.f32 %v6362_v41  ;;  %v6378_v47 = vadd.f32 %v5414_v46, %v6270_v10  ;;  %v630_v48 = vpop.f32.mrb[13].mxu0 }
 0x10d   : > { %v5657_v49 = vpop.eup %5656  ;;  %1031 = vrot.lane.b32.xlu1 %v5655_v45, %s6070_s23  ;;  %v6382_v50 = vadd.f32 %v6270_v10, %v630_v48 }
 0x10e   : > { %9826 = vst [vmem:[#allocation14_spill] sm:$0xff] %v6378_v47  ;;  %v5659_v51 = vpop.eup %5658  ;;  %1033 = vrot.lane.b32.xlu0 %v5657_v49, %s6070_s23  ;;  %4829 = vst.msk [vmem:[%s6282_s22 + $0x68] sm:$0xff] %vm4815_vm1, %v6378_v47 }
 0x10f   : > { %9827 = vst [vmem:[#allocation15_spill] sm:$0xff] %v6382_v50  ;;  %5668 = vtanh.f32 %v6382_v50  ;;  %4828 = vst.msk [vmem:[%s6282_s22 + $0x60] sm:$0xff] %vm4815_vm1, %v6382_v50  ;;  %v5417_v52 = vpop.f32.mrb[14].mxu0 }
 0x110   : > { %5670 = vtanh.f32 %v6378_v47  ;;  %v6394_v53 = vadd.f32 %v5417_v52, %v6270_v10  ;;  %v640_v54 = vpop.f32.mrb[15].mxu0 }
 0x111   : > { %v5661_v55 = vpop.eup %5660  ;;  %1035 = vrot.lane.b32.xlu1 %v5659_v51, %s6070_s23  ;;  %v6398_v56 = vadd.f32 %v6270_v10, %v640_v54 }
 0x112   : > { %9828 = vst [vmem:[#allocation16_spill] sm:$0xff] %v6394_v53  ;;  %v5663_v57 = vpop.eup %5662  ;;  %1037 = vrot.lane.b32.xlu0 %v5661_v55, %s6070_s23  ;;  %4831 = vst.msk [vmem:[%s6282_s22 + $0x78] sm:$0xff] %vm4815_vm1, %v6394_v53 }
 0x113   : > { %9829 = vst [vmem:[#allocation17_spill] sm:$0xff] %v6398_v56  ;;  %5672 = vtanh.f32 %v6398_v56  ;;  %4830 = vst.msk [vmem:[%s6282_s22 + $0x70] sm:$0xff] %vm4815_vm1, %v6398_v56  ;;  %v5420_v58 = vpop.f32.mrb[16].mxu0 }
 0x114   : > { %5674 = vtanh.f32 %v6394_v53  ;;  %v6410_v59 = vadd.f32 %v5420_v58, %v6270_v10  ;;  %v650_v60 = vpop.f32.mrb[17].mxu0 }
 0x115   : > { %v5665_v61 = vpop.eup %5664  ;;  %1039 = vrot.lane.b32.xlu1 %v5663_v57, %s6070_s23  ;;  %v6414_v62 = vadd.f32 %v6270_v10, %v650_v60 }
 0x116   : > { %9830 = vst [vmem:[#allocation18_spill] sm:$0xff] %v6410_v59  ;;  %v5667_v63 = vpop.eup %5666  ;;  %1041 = vrot.lane.b32.xlu0 %v5665_v61, %s6070_s23  ;;  %4833 = vst.msk [vmem:[%s6282_s22 + $0x88] sm:$0xff] %vm4815_vm1, %v6410_v59 }
 0x117   : > { %9831 = vst [vmem:[#allocation19_spill] sm:$0xff] %v6414_v62  ;;  %5676 = vtanh.f32 %v6414_v62  ;;  %4832 = vst.msk [vmem:[%s6282_s22 + $0x80] sm:$0xff] %vm4815_vm1, %v6414_v62  ;;  %v5423_v0 = vpop.f32.mrb[18].mxu0 }
 0x118   : > { %5678 = vtanh.f32 %v6410_v59  ;;  %v6426_v1 = vadd.f32 %v5423_v0, %v6270_v10  ;;  %v660_v2 = vpop.f32.mrb[19].mxu0 }
 0x119   : > { %v5669_v3 = vpop.eup %5668  ;;  %1043 = vrot.lane.b32.xlu1 %v5667_v63, %s6070_s23  ;;  %v6430_v4 = vadd.f32 %v6270_v10, %v660_v2 }
 0x11a   : > { %9832 = vst [vmem:[#allocation20_spill] sm:$0xff] %v6426_v1  ;;  %v5671_v5 = vpop.eup %5670  ;;  %1045 = vrot.lane.b32.xlu0 %v5669_v3, %s6070_s23  ;;  %4835 = vst.msk [vmem:[%s6282_s22 + $0x98] sm:$0xff] %vm4815_vm1, %v6426_v1 }
 0x11b   : > { %9833 = vst [vmem:[#allocation21_spill] sm:$0xff] %v6430_v4  ;;  %5680 = vtanh.f32 %v6430_v4  ;;  %4834 = vst.msk [vmem:[%s6282_s22 + $0x90] sm:$0xff] %vm4815_vm1, %v6430_v4  ;;  %v5426_v6 = vpop.f32.mrb[20].mxu0 }
 0x11c   : > { %5682 = vtanh.f32 %v6426_v1  ;;  %v6442_v7 = vadd.f32 %v5426_v6, %v6270_v10  ;;  %v670_v8 = vpop.f32.mrb[21].mxu0 }
 0x11d   : > { %v5673_v9 = vpop.eup %5672  ;;  %1047 = vrot.lane.b32.xlu1 %v5671_v5, %s6070_s23  ;;  %v6446_v11 = vadd.f32 %v6270_v10, %v670_v8 }
 0x11e   : > { %9834 = vst [vmem:[#allocation22_spill] sm:$0xff] %v6442_v7  ;;  %v5675_v12 = vpop.eup %5674  ;;  %1049 = vrot.lane.b32.xlu0 %v5673_v9, %s6070_s23  ;;  %4837 = vst.msk [vmem:[%s6282_s22 + $0xa8] sm:$0xff] %vm4815_vm1, %v6442_v7 }
 0x11f   : > { %9835 = vst [vmem:[#allocation23_spill] sm:$0xff] %v6446_v11  ;;  %5684 = vtanh.f32 %v6446_v11  ;;  %4836 = vst.msk [vmem:[%s6282_s22 + $0xa0] sm:$0xff] %vm4815_vm1, %v6446_v11  ;;  %v5429_v13 = vpop.f32.mrb[22].mxu0 }
 0x120   : > { %5686 = vtanh.f32 %v6442_v7  ;;  %v6458_v14 = vadd.f32 %v5429_v13, %v6270_v10  ;;  %v680_v15 = vpop.f32.mrb[23].mxu0 }
 0x121   : > { %v5677_v16 = vpop.eup %5676  ;;  %1051 = vrot.lane.b32.xlu1 %v5675_v12, %s6070_s23  ;;  %v6462_v18 = vadd.f32 %v6270_v10, %v680_v15 }
 0x122   : > { %9836 = vst [vmem:[#allocation24_spill] sm:$0xff] %v6458_v14  ;;  %v5679_v20 = vpop.eup %5678  ;;  %1053 = vrot.lane.b32.xlu0 %v5677_v16, %s6070_s23  ;;  %4839 = vst.msk [vmem:[%s6282_s22 + $0xb8] sm:$0xff] %vm4815_vm1, %v6458_v14 }
 0x123   : > { %9837 = vst [vmem:[#allocation25_spill] sm:$0xff] %v6462_v18  ;;  %5688 = vtanh.f32 %v6462_v18  ;;  %4838 = vst.msk [vmem:[%s6282_s22 + $0xb0] sm:$0xff] %vm4815_vm1, %v6462_v18  ;;  %v5432_v22 = vpop.f32.mrb[24].mxu0 }
 0x124   : > { %5690 = vtanh.f32 %v6458_v14  ;;  %v6474_v24 = vadd.f32 %v5432_v22, %v6270_v10  ;;  %v690_v26 = vpop.f32.mrb[25].mxu0 }
 0x125   : > { %v5681_v28 = vpop.eup %5680  ;;  %1055 = vrot.lane.b32.xlu1 %v5679_v20, %s6070_s23  ;;  %v6478_v29 = vadd.f32 %v6270_v10, %v690_v26 }
 0x126   : > { %9838 = vst [vmem:[#allocation26_spill] sm:$0xff] %v6474_v24  ;;  %v5683_v31 = vpop.eup %5682  ;;  %1057 = vrot.lane.b32.xlu0 %v5681_v28, %s6070_s23  ;;  %4841 = vst.msk [vmem:[%s6282_s22 + $0xc8] sm:$0xff] %vm4815_vm1, %v6474_v24 }
 0x127   : > { %9839 = vst [vmem:[#allocation27_spill] sm:$0xff] %v6478_v29  ;;  %5692 = vtanh.f32 %v6478_v29  ;;  %4840 = vst.msk [vmem:[%s6282_s22 + $0xc0] sm:$0xff] %vm4815_vm1, %v6478_v29  ;;  %v5435_v33 = vpop.f32.mrb[26].mxu0 }
 0x128   : > { %5694 = vtanh.f32 %v6474_v24  ;;  %v6490_v34 = vadd.f32 %v5435_v33, %v6270_v10  ;;  %v700_v35 = vpop.f32.mrb[27].mxu0 }
 0x129   : > { %v5685_v37 = vpop.eup %5684  ;;  %1059 = vrot.lane.b32.xlu1 %v5683_v31, %s6070_s23  ;;  %v6494_v39 = vadd.f32 %v6270_v10, %v700_v35 }
 0x12a   : > { %9840 = vst [vmem:[#allocation28_spill] sm:$0xff] %v6490_v34  ;;  %v5687_v40 = vpop.eup %5686  ;;  %1061 = vrot.lane.b32.xlu0 %v5685_v37, %s6070_s23  ;;  %4843 = vst.msk [vmem:[%s6282_s22 + $0xd8] sm:$0xff] %vm4815_vm1, %v6490_v34 }
 0x12b   : > { %9841 = vst [vmem:[#allocation29_spill] sm:$0xff] %v6494_v39  ;;  %5696 = vtanh.f32 %v6494_v39  ;;  %4842 = vst.msk [vmem:[%s6282_s22 + $0xd0] sm:$0xff] %vm4815_vm1, %v6494_v39  ;;  %v5438_v42 = vpop.f32.mrb[28].mxu0 }
 0x12c   : > { %5698 = vtanh.f32 %v6490_v34  ;;  %v6506_v43 = vadd.f32 %v5438_v42, %v6270_v10  ;;  %v710_v45 = vpop.f32.mrb[29].mxu0 }
 0x12d   : > { %v5689_v46 = vpop.eup %5688  ;;  %1063 = vrot.lane.b32.xlu1 %v5687_v40, %s6070_s23  ;;  %v6510_v48 = vadd.f32 %v6270_v10, %v710_v45 }
 0x12e   : > { %9842 = vst [vmem:[#allocation30_spill] sm:$0xff] %v6506_v43  ;;  %v5691_v49 = vpop.eup %5690  ;;  %1065 = vrot.lane.b32.xlu0 %v5689_v46, %s6070_s23  ;;  %4845 = vst.msk [vmem:[%s6282_s22 + $0xe8] sm:$0xff] %vm4815_vm1, %v6506_v43 }
 0x12f   : > { %9843 = vst [vmem:[#allocation31_spill] sm:$0xff] %v6510_v48  ;;  %5700 = vtanh.f32 %v6510_v48  ;;  %4844 = vst.msk [vmem:[%s6282_s22 + $0xe0] sm:$0xff] %vm4815_vm1, %v6510_v48  ;;  %v5441_v51 = vpop.f32.mrb[30].mxu0 }
 0x130   : > { %5702 = vtanh.f32 %v6506_v43  ;;  %v6522_v52 = vadd.f32 %v5441_v51, %v6270_v10  ;;  %v720_v54 = vpop.f32.mrb[31].mxu0 }
 0x131   : > { %v5693_v55 = vpop.eup %5692  ;;  %1067 = vrot.lane.b32.xlu1 %v5691_v49, %s6070_s23  ;;  %v6526_v57 = vadd.f32 %v6270_v10, %v720_v54 }
 0x132   : > { %9844 = vst [vmem:[#allocation32_spill] sm:$0xff] %v6522_v52  ;;  %v5695_v58 = vpop.eup %5694  ;;  %1069 = vrot.lane.b32.xlu0 %v5693_v55, %s6070_s23  ;;  %4847 = vst.msk [vmem:[%s6282_s22 + $0xf8] sm:$0xff] %vm4815_vm1, %v6522_v52 }
 0x133   : > { %9845 = vst [vmem:[#allocation33_spill] sm:$0xff] %v6526_v57  ;;  %5704 = vtanh.f32 %v6526_v57  ;;  %4846 = vst.msk [vmem:[%s6282_s22 + $0xf0] sm:$0xff] %vm4815_vm1, %v6526_v57  ;;  %v5444_v60 = vpop.f32.mrb[32].mxu0 }
 0x134   : > { %5706 = vtanh.f32 %v6522_v52  ;;  %v6538_v61 = vadd.f32 %v5444_v60, %v6270_v10  ;;  %v730_v63 = vpop.f32.mrb[33].mxu0 }
 0x135   : > { %v5697_v0 = vpop.eup %5696  ;;  %1071 = vrot.lane.b32.xlu1 %v5695_v58, %s6070_s23  ;;  %v6542_v2 = vadd.f32 %v6270_v10, %v730_v63 }
 0x136   : > { %9846 = vst [vmem:[#allocation34_spill] sm:$0xff] %v6538_v61  ;;  %v5699_v3 = vpop.eup %5698  ;;  %1073 = vrot.lane.b32.xlu0 %v5697_v0, %s6070_s23  ;;  %4849 = vst.msk [vmem:[%s6282_s22 + $0x108] sm:$0xff] %vm4815_vm1, %v6538_v61 }
 0x137   : > { %9847 = vst [vmem:[#allocation35_spill] sm:$0xff] %v6542_v2  ;;  %5708 = vtanh.f32 %v6542_v2  ;;  %4848 = vst.msk [vmem:[%s6282_s22 + $0x100] sm:$0xff] %vm4815_vm1, %v6542_v2  ;;  %v5447_v5 = vpop.f32.mrb[34].mxu0 }
 0x138   : > { %5710 = vtanh.f32 %v6538_v61  ;;  %v6554_v6 = vadd.f32 %v5447_v5, %v6270_v10  ;;  %v740_v8 = vpop.f32.mrb[35].mxu0 }
 0x139   : > { %v5701_v9 = vpop.eup %5700  ;;  %1075 = vrot.lane.b32.xlu1 %v5699_v3, %s6070_s23  ;;  %v6558_v12 = vadd.f32 %v6270_v10, %v740_v8 }
 0x13a   : > { %9848 = vst [vmem:[#allocation36_spill] sm:$0xff] %v6554_v6  ;;  %v5703_v13 = vpop.eup %5702  ;;  %1077 = vrot.lane.b32.xlu0 %v5701_v9, %s6070_s23  ;;  %4851 = vst.msk [vmem:[%s6282_s22 + $0x118] sm:$0xff] %vm4815_vm1, %v6554_v6 }
 0x13b   : > { %9849 = vst [vmem:[#allocation37_spill] sm:$0xff] %v6558_v12  ;;  %5712 = vtanh.f32 %v6558_v12  ;;  %4850 = vst.msk [vmem:[%s6282_s22 + $0x110] sm:$0xff] %vm4815_vm1, %v6558_v12  ;;  %v5450_v15 = vpop.f32.mrb[36].mxu0 }
 0x13c   : > { %5714 = vtanh.f32 %v6554_v6  ;;  %v6570_v16 = vadd.f32 %v5450_v15, %v6270_v10  ;;  %v750_v20 = vpop.f32.mrb[37].mxu0 }
 0x13d   : > { %v5705_v22 = vpop.eup %5704  ;;  %1079 = vrot.lane.b32.xlu1 %v5703_v13, %s6070_s23  ;;  %v6574_v26 = vadd.f32 %v6270_v10, %v750_v20 }
 0x13e   : > { %9850 = vst [vmem:[#allocation38_spill] sm:$0xff] %v6570_v16  ;;  %v5707_v28 = vpop.eup %5706  ;;  %1081 = vrot.lane.b32.xlu0 %v5705_v22, %s6070_s23  ;;  %4853 = vst.msk [vmem:[%s6282_s22 + $0x128] sm:$0xff] %vm4815_vm1, %v6570_v16 }
 0x13f   : > { %9851 = vst [vmem:[#allocation39_spill] sm:$0xff] %v6574_v26  ;;  %5716 = vtanh.f32 %v6574_v26  ;;  %4852 = vst.msk [vmem:[%s6282_s22 + $0x120] sm:$0xff] %vm4815_vm1, %v6574_v26  ;;  %v5453_v31 = vpop.f32.mrb[38].mxu0 }
 0x140   : > { %5718 = vtanh.f32 %v6570_v16  ;;  %v6586_v33 = vadd.f32 %v5453_v31, %v6270_v10  ;;  %v760_v35 = vpop.f32.mrb[39].mxu0 }
 0x141   : > { %v5709_v37 = vpop.eup %5708  ;;  %1083 = vrot.lane.b32.xlu1 %v5707_v28, %s6070_s23  ;;  %v6590_v40 = vadd.f32 %v6270_v10, %v760_v35 }
 0x142   : > { %9852 = vst [vmem:[#allocation40_spill] sm:$0xff] %v6586_v33  ;;  %v5711_v42 = vpop.eup %5710  ;;  %1085 = vrot.lane.b32.xlu0 %v5709_v37, %s6070_s23  ;;  %4855 = vst.msk [vmem:[%s6282_s22 + $0x138] sm:$0xff] %vm4815_vm1, %v6586_v33 }
 0x143   : > { %9853 = vst [vmem:[#allocation41_spill] sm:$0xff] %v6590_v40  ;;  %5720 = vtanh.f32 %v6590_v40  ;;  %4854 = vst.msk [vmem:[%s6282_s22 + $0x130] sm:$0xff] %vm4815_vm1, %v6590_v40  ;;  %v5456_v45 = vpop.f32.mrb[40].mxu0 }
 0x144   : > { %5722 = vtanh.f32 %v6586_v33  ;;  %v6602_v46 = vadd.f32 %v5456_v45, %v6270_v10  ;;  %v770_v49 = vpop.f32.mrb[41].mxu0 }
 0x145   : > { %v5713_v51 = vpop.eup %5712  ;;  %1087 = vrot.lane.b32.xlu1 %v5711_v42, %s6070_s23  ;;  %v6606_v54 = vadd.f32 %v6270_v10, %v770_v49 }
 0x146   : > { %9854 = vst [vmem:[#allocation42_spill] sm:$0xff] %v6602_v46  ;;  %v5715_v55 = vpop.eup %5714  ;;  %1089 = vrot.lane.b32.xlu0 %v5713_v51, %s6070_s23  ;;  %4857 = vst.msk [vmem:[%s6282_s22 + $0x148] sm:$0xff] %vm4815_vm1, %v6602_v46 }
 0x147   : > { %9855 = vst [vmem:[#allocation43_spill] sm:$0xff] %v6606_v54  ;;  %5724 = vtanh.f32 %v6606_v54  ;;  %4856 = vst.msk [vmem:[%s6282_s22 + $0x140] sm:$0xff] %vm4815_vm1, %v6606_v54  ;;  %v5459_v58 = vpop.f32.mrb[42].mxu0 }
 0x148   : > { %5726 = vtanh.f32 %v6602_v46  ;;  %v6618_v60 = vadd.f32 %v5459_v58, %v6270_v10  ;;  %v780_v63 = vpop.f32.mrb[43].mxu0 }
 0x149   : > { %v5717_v0 = vpop.eup %5716  ;;  %1091 = vrot.lane.b32.xlu1 %v5715_v55, %s6070_s23  ;;  %v6622_v3 = vadd.f32 %v6270_v10, %v780_v63 }
 0x14a   : > { %9856 = vst [vmem:[#allocation44_spill] sm:$0xff] %v6618_v60  ;;  %v5719_v5 = vpop.eup %5718  ;;  %1093 = vrot.lane.b32.xlu0 %v5717_v0, %s6070_s23  ;;  %4859 = vst.msk [vmem:[%s6282_s22 + $0x158] sm:$0xff] %vm4815_vm1, %v6618_v60 }
 0x14b   : > { %9857 = vst [vmem:[#allocation45_spill] sm:$0xff] %v6622_v3  ;;  %5728 = vtanh.f32 %v6622_v3  ;;  %4858 = vst.msk [vmem:[%s6282_s22 + $0x150] sm:$0xff] %vm4815_vm1, %v6622_v3  ;;  %v5462_v20 = vpop.f32.mrb[44].mxu0 }
 0x14c   : > { %5730 = vtanh.f32 %v6618_v60  ;;  %v6638_v22 = vadd.f32 %v5462_v20, %v6270_v10  ;;  %v790_v28 = vpop.f32.mrb[45].mxu0 }
 0x14d   : > { %v5721_v8 = vpop.eup %5720  ;;  %1095 = vrot.lane.b32.xlu1 %v5719_v5, %s6070_s23  ;;  %v6642_v35 = vadd.f32 %v6270_v10, %v790_v28 }
 0x14e   : > { %v5723_v9 = vpop.eup %5722  ;;  %1097 = vrot.lane.b32.xlu0 %v5721_v8, %s6070_s23  ;;  %9858 = vst [vmem:[#allocation46_spill] sm:$0xff] %v6638_v22  ;;  %5732 = vtanh.f32 %v6638_v22  ;;  %4861 = vst.msk [vmem:[%s6282_s22 + $0x168] sm:$0xff] %vm4815_vm1, %v6638_v22 }
 0x14f   : > { %9859 = vst [vmem:[#allocation47_spill] sm:$0xff] %v6642_v35  ;;  %5734 = vtanh.f32 %v6642_v35  ;;  %4860 = vst.msk [vmem:[%s6282_s22 + $0x160] sm:$0xff] %vm4815_vm1, %v6642_v35  ;;  %v5465_v42 = vpop.f32.mrb[46].mxu0 }
 0x150   : > { %v6655_v49 = vadd.f32 %v5465_v42, %v6270_v10  ;;  %v800_v51 = vpop.f32.mrb[47].mxu0 }
 0x151   : > { %v5725_v13 = vpop.eup %5724  ;;  %1099 = vrot.lane.b32.xlu1 %v5723_v9, %s6070_s23  ;;  %v6658_v58 = vadd.f32 %v6270_v10, %v800_v51 }
 0x152   : > { %v5727_v15 = vpop.eup %5726  ;;  %1101 = vrot.lane.b32.xlu0 %v5725_v13, %s6070_s23  ;;  %9860 = vst [vmem:[#allocation48_spill] sm:$0xff] %v6655_v49  ;;  %5736 = vtanh.f32 %v6655_v49  ;;  %4863 = vst.msk [vmem:[%s6282_s22 + $0x178] sm:$0xff] %vm4815_vm1, %v6655_v49 }
 0x153   : > { %9861 = vst [vmem:[#allocation49_spill] sm:$0xff] %v6658_v58  ;;  %5738 = vtanh.f32 %v6658_v58  ;;  %4862 = vst.msk [vmem:[%s6282_s22 + $0x170] sm:$0xff] %vm4815_vm1, %v6658_v58  ;;  %v5468_v63 = vpop.f32.mrb[48].mxu0 }
 0x154   : > { %v6671_v0 = vadd.f32 %v5468_v63, %v6270_v10  ;;  %v810_v5 = vpop.f32.mrb[49].mxu0 }
 0x155   : > { %v5729_v31 = vpop.eup %5728  ;;  %1103 = vrot.lane.b32.xlu1 %v5727_v15, %s6070_s23  ;;  %v6674_v8 = vadd.f32 %v6270_v10, %v810_v5 }
 0x156   : > { %v5731_v37 = vpop.eup %5730  ;;  %1105 = vrot.lane.b32.xlu0 %v5729_v31, %s6070_s23  ;;  %9862 = vst [vmem:[#allocation50_spill] sm:$0xff] %v6671_v0  ;;  %5740 = vtanh.f32 %v6671_v0  ;;  %4865 = vst.msk [vmem:[%s6282_s22 + $0x188] sm:$0xff] %vm4815_vm1, %v6671_v0 }
 0x157   : > { %9863 = vst [vmem:[#allocation51_spill] sm:$0xff] %v6674_v8  ;;  %5742 = vtanh.f32 %v6674_v8  ;;  %4864 = vst.msk [vmem:[%s6282_s22 + $0x180] sm:$0xff] %vm4815_vm1, %v6674_v8  ;;  %v5471_v15 = vpop.f32.mrb[50].mxu0 }
 0x158   : > { %v5733_v45 = vpop.eup %5732  ;;  %v6687_v20 = vadd.f32 %v5471_v15, %v6270_v10  ;;  %v820_v28 = vpop.f32.mrb[51].mxu0 }
 0x159   : > { %1107 = vrot.lane.b32.xlu1 %v5731_v37, %s6070_s23  ;;  %v5735_v55 = vpop.eup %5734  ;;  %v6690_v31 = vadd.f32 %v6270_v10, %v820_v28 }
 0x15a   : > { %1109 = vrot.lane.b32.xlu0 %v5735_v55, %s6070_s23  ;;  %9864 = vst [vmem:[#allocation52_spill] sm:$0xff] %v6687_v20  ;;  %5744 = vtanh.f32 %v6687_v20  ;;  %4867 = vst.msk [vmem:[%s6282_s22 + $0x198] sm:$0xff] %vm4815_vm1, %v6687_v20 }
 0x15b   : > { %9865 = vst [vmem:[#allocation53_spill] sm:$0xff] %v6690_v31  ;;  %5746 = vtanh.f32 %v6690_v31  ;;  %4866 = vst.msk [vmem:[%s6282_s22 + $0x190] sm:$0xff] %vm4815_vm1, %v6690_v31  ;;  %v5474_v37 = vpop.f32.mrb[52].mxu0 }
 0x15c   : > { %v5737_v9 = vpop.eup %5736  ;;  %v830_v51 = vpop.f32.mrb[53].mxu0 }
 0x15d   : > { %1111 = vrot.lane.b32.xlu1 %v5733_v45, %s6070_s23  ;;  %v5739_v13 = vpop.eup %5738  ;;  %v6701_v45 = vadd.f32 %v5474_v37, %v6270_v10  ;;  %v6704_v55 = vadd.f32 %v6270_v10, %v830_v51 }
 0x15e   : > { %1113 = vrot.lane.b32.xlu0 %v5739_v13, %s6070_s23 }
 0x15f   : > { %9866 = vst [vmem:[#allocation54_spill] sm:$0xff] %v6701_v45  ;;  %9867 = vst [vmem:[#allocation55_spill] sm:$0xff] %v6704_v55  ;;  %5748 = vtanh.f32 %v6701_v45  ;;  %v5477_v5 = vpop.f32.mrb[54].mxu0 }
 0x160   : > { %4869 = vst.msk [vmem:[%s6282_s22 + $0x1a8] sm:$0xff] %vm4815_vm1, %v6701_v45  ;;  %v5741_v63 = vpop.eup %5740  ;;  %5750 = vtanh.f32 %v6704_v55  ;;  %4868 = vst.msk [vmem:[%s6282_s22 + $0x1a0] sm:$0xff] %vm4815_vm1, %v6704_v55  ;;  %v6716_v28 = vadd.f32 %v5477_v5, %v6270_v10  ;;  %v840_v37 = vpop.f32.mrb[55].mxu0 }
 0x161   : > { %1115 = vrot.lane.b32.xlu1 %v5737_v9, %s6070_s23  ;;  %v5743_v9 = vpop.eup %5742  ;;  %v6726_v51 = vadd.f32 %v6270_v10, %v840_v37 }
 0x162   : > { %9868 = vst [vmem:[#allocation56_spill] sm:$0xff] %v6716_v28  ;;  %1117 = vrot.lane.b32.xlu0 %v5743_v9, %s6070_s23  ;;  %5752 = vtanh.f32 %v6716_v28  ;;  %4871 = vst.msk [vmem:[%s6282_s22 + $0x1b8] sm:$0xff] %vm4815_vm1, %v6716_v28 }
 0x163   : > { %9869 = vst [vmem:[#allocation57_spill] sm:$0xff] %v6726_v51  ;;  %5754 = vtanh.f32 %v6726_v51  ;;  %4870 = vst.msk [vmem:[%s6282_s22 + $0x1b0] sm:$0xff] %vm4815_vm1, %v6726_v51 }
 0x164   : > { %v5745_v20 = vpop.eup %5744 }
 0x165   : > { %1119 = vrot.lane.b32.xlu1 %v5741_v63, %s6070_s23  ;;  %v5480_v63 = vpop.f32.mrb[56].mxu0 }
 0x166   : > { %v850_v9 = vpop.f32.mrb[57].mxu0 }
 0x167   : > { %v6738_v37 = vadd.f32 %v6270_v10, %v850_v9 }
 0x169   : > { %1123 = vrot.lane.b32.xlu1 %v5745_v20, %s6070_s23  ;;  %9871 = vst [vmem:[#allocation59_spill] sm:$0xff] %v6738_v37  ;;  %4872 = vst.msk [vmem:[%s6282_s22 + $0x1c0] sm:$0xff] %vm4815_vm1, %v6738_v37  ;;  %v5483_v20 = vpop.f32.mrb[58].mxu0 }
 0x16a   : > { %v860_v9 = vpop.f32.mrb[59].mxu0 }
 0x173   : > { %v1024_v42 = vpop.permute.xlu0 %1023 }
 0x177   : > { %v1028_v13 = vpop.permute.xlu1 %1027  ;;  %v1022_v15 = vpop.permute.xlu0 %1021 }
 0x178   : > { %5494 = vmatprep.mubr.msk.f32.mxu1 %vm1149_vm2, %v1022_v15  ;;  %v5747_v15 = vpop.eup %5746 }
 0x179   : > { %5495 = vmatmul.mubr.msk.f32.vlgmr.msra.gmra.mrb[0].mxu1 %vm1149_vm2, %v1024_v42  ;;  %v6733_v42 = vadd.f32 %v5480_v63, %v6270_v10  ;;  %1121 = vrot.lane.b32.xlu0 %v5747_v15, %s6070_s23  ;;  %v5749_v63 = vpop.eup %5748 }
 0x17a   : > { %v5751_v15 = vpop.eup %5750  ;;  %1127 = vrot.lane.b32.xlu1 %v5749_v63, %s6070_s23 }
 0x17b   : > { %v1026_v5 = vpop.permute.xlu1 %1025  ;;  %9870 = vst [vmem:[#allocation58_spill] sm:$0xff] %v6733_v42  ;;  %5756 = vtanh.f32 %v6733_v42  ;;  %4873 = vst.msk [vmem:[%s6282_s22 + $0x1c8] sm:$0xff] %vm4815_vm1, %v6733_v42  ;;  %v6756_v42 = vadd.f32 %v6270_v10, %v860_v9 }
 0x17c   : > { %5497 = vmatprep.mubr.msk.f32.mxu1 %vm1149_vm2, %v1026_v5  ;;  %v1030_v28 = vpop.permute.xlu0 %1029  ;;  %5758 = vtanh.f32 %v6738_v37 }
 0x17d   : > { %5498 = vmatmul.mubr.msk.f32.gmra.mrb[2].mxu1 %vm1149_vm2, %v1028_v13  ;;  %v6752_v13 = vadd.f32 %v5483_v20, %v6270_v10  ;;  %9873 = vst [vmem:[#allocation61_spill] sm:$0xff] %v6756_v42  ;;  %1125 = vrot.lane.b32.xlu0 %v5751_v15, %s6070_s23  ;;  %4874 = vst.msk [vmem:[%s6282_s22 + $0x1d0] sm:$0xff] %vm4815_vm1, %v6756_v42 }
 0x17e   : > { %5500 = vmatprep.mubr.msk.f32.mxu1 %vm1149_vm2, %v1030_v28  ;;  %v5753_v28 = vpop.eup %5752 }
 0x17f   : > { %v1032_v5 = vpop.permute.xlu1 %1031  ;;  %9872 = vst [vmem:[#allocation60_spill] sm:$0xff] %v6752_v13  ;;  %5760 = vtanh.f32 %v6752_v13  ;;  %4875 = vst.msk [vmem:[%s6282_s22 + $0x1d8] sm:$0xff] %vm4815_vm1, %v6752_v13  ;;  %1131 = vrot.lane.b32.xlu1 %v5753_v28, %s6070_s23  ;;  %v5486_v28 = vpop.f32.mrb[60].mxu0 }
 0x180   : > { %v1034_v51 = vpop.permute.xlu0 %1033  ;;  %5762 = vtanh.f32 %v6756_v42 }
 0x181   : > { %5501 = vmatmul.mubr.msk.f32.gmra.mrb[4].mxu1 %vm1149_vm2, %v1032_v5  ;;  %v5755_v5 = vpop.eup %5754 }
 0x182   : > { %5503 = vmatprep.mubr.msk.f32.mxu1 %vm1149_vm2, %v1034_v51  ;;  %1129 = vrot.lane.b32.xlu0 %v5755_v5, %s6070_s23  ;;  %v870_v5 = vpop.f32.mrb[61].mxu0 }
 0x183   : > { %v1036_v20 = vpop.permute.xlu1 %1035 }
 0x184   : > { %v1038_v63 = vpop.permute.xlu0 %1037 }
 0x185   : > { %5504 = vmatmul.mubr.msk.f32.gmra.mrb[6].mxu1 %vm1149_vm2, %v1036_v20  ;;  %v5757_v9 = vpop.eup %5756 }
 0x186   : > { %5506 = vmatprep.mubr.msk.f32.mxu1 %vm1149_vm2, %v1038_v63  ;;  %v5759_v51 = vpop.eup %5758  ;;  %1135 = vrot.lane.b32.xlu1 %v5757_v9, %s6070_s23  ;;  %v6778_v63 = vadd.f32 %v5486_v28, %v6270_v10  ;;  %v6782_v9 = vadd.f32 %v6270_v10, %v870_v5 }
 0x187   : > { %v1040_v15 = vpop.permute.xlu1 %1039  ;;  %1133 = vrot.lane.b32.xlu0 %v5759_v51, %s6070_s23 }
 0x188   : > { %v1042_v13 = vpop.permute.xlu0 %1041  ;;  %9874 = vst [vmem:[#allocation62_spill] sm:$0xff] %v6778_v63  ;;  %9875 = vst [vmem:[#allocation63_spill] sm:$0xff] %v6782_v9  ;;  %5764 = vtanh.f32 %v6778_v63 }
 0x189   : > { %5507 = vmatmul.mubr.msk.f32.gmra.mrb[8].mxu1 %vm1149_vm2, %v1040_v15  ;;  %v5761_v20 = vpop.eup %5760  ;;  %4877 = vst.msk [vmem:[%s6282_s22 + $0x1e8] sm:$0xff] %vm4815_vm1, %v6778_v63  ;;  %5766 = vtanh.f32 %v6782_v9  ;;  %4876 = vst.msk [vmem:[%s6282_s22 + $0x1e0] sm:$0xff] %vm4815_vm1, %v6782_v9 }
 0x18a   : > { %5509 = vmatprep.mubr.msk.f32.mxu1 %vm1149_vm2, %v1042_v13  ;;  %v5763_v37 = vpop.eup %5762  ;;  %1139 = vrot.lane.b32.xlu1 %v5761_v20, %s6070_s23 }
 0x18b   : > { %v1044_v42 = vpop.permute.xlu1 %1043  ;;  %1137 = vrot.lane.b32.xlu0 %v5763_v37, %s6070_s23 }
 0x18c   : > { %v1046_v55 = vpop.permute.xlu0 %1045 }
 0x18d   : > { %5510 = vmatmul.mubr.msk.f32.gmra.mrb[10].mxu1 %vm1149_vm2, %v1044_v42 }
 0x18e   : > { %5512 = vmatprep.mubr.msk.f32.mxu1 %vm1149_vm2, %v1046_v55 }
 0x18f   : > { %v1048_v13 = vpop.permute.xlu1 %1047 }
 0x190   : > { %v1050_v15 = vpop.permute.xlu0 %1049 }
 0x191   : > { %5513 = vmatmul.mubr.msk.f32.gmra.mrb[12].mxu1 %vm1149_vm2, %v1048_v13 }
 0x192   : > { %5515 = vmatprep.mubr.msk.f32.mxu1 %vm1149_vm2, %v1050_v15  ;;  %v5765_v55 = vpop.eup %5764 }
 0x193   : > { %v1052_v42 = vpop.permute.xlu1 %1051  ;;  %v5767_v37 = vpop.eup %5766  ;;  %1143 = vrot.lane.b32.xlu1 %v5765_v55, %s6070_s23 }
 0x194   : > { %v1054_v51 = vpop.permute.xlu0 %1053  ;;  %1141 = vrot.lane.b32.xlu0 %v5767_v37, %s6070_s23 }
 0x195   : > { %5516 = vmatmul.mubr.msk.f32.gmra.mrb[14].mxu1 %vm1149_vm2, %v1052_v42 }
 0x196   : > { %5518 = vmatprep.mubr.msk.f32.mxu1 %vm1149_vm2, %v1054_v51 }
 0x197   : > { %v1056_v28 = vpop.permute.xlu1 %1055 }
 0x198   : > { %v1058_v20 = vpop.permute.xlu0 %1057 }
 0x199   : > { %5519 = vmatmul.mubr.msk.f32.gmra.mrb[16].mxu1 %vm1149_vm2, %v1056_v28 }
 0x19a   : > { %5521 = vmatprep.mubr.msk.f32.mxu1 %vm1149_vm2, %v1058_v20 }
 0x19b   : > { %v1060_v5 = vpop.permute.xlu1 %1059 }
 0x19c   : > { %v1062_v13 = vpop.permute.xlu0 %1061 }
 0x19d   : > { %5522 = vmatmul.mubr.msk.f32.gmra.mrb[18].mxu1 %vm1149_vm2, %v1060_v5 }
 0x19e   : > { %5524 = vmatprep.mubr.msk.f32.mxu1 %vm1149_vm2, %v1062_v13 }
 0x19f   : > { %v1064_v15 = vpop.permute.xlu1 %1063 }
 0x1a0   : > { %v1066_v42 = vpop.permute.xlu0 %1065 }
 0x1a1   : > { %5525 = vmatmul.mubr.msk.f32.gmra.mrb[20].mxu1 %vm1149_vm2, %v1064_v15 }
 0x1a2   : > { %5527 = vmatprep.mubr.msk.f32.mxu1 %vm1149_vm2, %v1066_v42 }
 0x1a3   : > { %v1068_v51 = vpop.permute.xlu1 %1067 }
 0x1a4   : > { %v1070_v55 = vpop.permute.xlu0 %1069 }
 0x1a5   : > { %5528 = vmatmul.mubr.msk.f32.gmra.mrb[22].mxu1 %vm1149_vm2, %v1068_v51 }
 0x1a6   : > { %5530 = vmatprep.mubr.msk.f32.mxu1 %vm1149_vm2, %v1070_v55 }
 0x1a7   : > { %v1072_v28 = vpop.permute.xlu1 %1071 }
 0x1a8   : > { %v1074_v37 = vpop.permute.xlu0 %1073 }
 0x1a9   : > { %5531 = vmatmul.mubr.msk.f32.gmra.mrb[24].mxu1 %vm1149_vm2, %v1072_v28 }
 0x1aa   : > { %5533 = vmatprep.mubr.msk.f32.mxu1 %vm1149_vm2, %v1074_v37 }
 0x1ab   : > { %v1076_v20 = vpop.permute.xlu1 %1075 }
 0x1ac   : > { %v1078_v5 = vpop.permute.xlu0 %1077 }
 0x1ad   : > { %5534 = vmatmul.mubr.msk.f32.gmra.mrb[26].mxu1 %vm1149_vm2, %v1076_v20 }
 0x1ae   : > { %5536 = vmatprep.mubr.msk.f32.mxu1 %vm1149_vm2, %v1078_v5 }
 0x1af   : > { %v1080_v13 = vpop.permute.xlu1 %1079 }
 0x1b0   : > { %v1082_v15 = vpop.permute.xlu0 %1081 }
 0x1b1   : > { %5537 = vmatmul.mubr.msk.f32.gmra.mrb[28].mxu1 %vm1149_vm2, %v1080_v13 }
 0x1b2   : > { %5539 = vmatprep.mubr.msk.f32.mxu1 %vm1149_vm2, %v1082_v15 }
 0x1b3   : > { %v1084_v42 = vpop.permute.xlu1 %1083 }
 0x1b4   : > { %v1086_v51 = vpop.permute.xlu0 %1085 }
 0x1b5   : > { %5540 = vmatmul.mubr.msk.f32.gmra.mrb[30].mxu1 %vm1149_vm2, %v1084_v42 }
 0x1b6   : > { %5542 = vmatprep.mubr.msk.f32.mxu1 %vm1149_vm2, %v1086_v51 }
 0x1b7   : > { %v1088_v55 = vpop.permute.xlu1 %1087 }
 0x1b8   : > { %v1090_v28 = vpop.permute.xlu0 %1089 }
 0x1b9   : > { %5543 = vmatmul.mubr.msk.f32.gmra.mrb[32].mxu1 %vm1149_vm2, %v1088_v55 }
 0x1ba   : > { %5545 = vmatprep.mubr.msk.f32.mxu1 %vm1149_vm2, %v1090_v28  ;;  %v5489_v28 = vpop.f32.mrb[62].mxu0 }
 0x1bb   : > { %v1092_v37 = vpop.permute.xlu1 %1091 }
 0x1bc   : > { %v1094_v20 = vpop.permute.xlu0 %1093 }
 0x1bd   : > { %5546 = vmatmul.mubr.msk.f32.gmra.mrb[34].mxu1 %vm1149_vm2, %v1092_v37  ;;  %v6827_v37 = vadd.f32 %v5489_v28, %v6270_v10 }
 0x1be   : > { %5548 = vmatprep.mubr.msk.f32.mxu1 %vm1149_vm2, %v1094_v20  ;;  %v880_v20 = vpop.f32.mrb[63].mxu0 }
 0x1bf   : > { %v1096_v5 = vpop.permute.xlu1 %1095  ;;  %9876 = vst [vmem:[#allocation64_spill] sm:$0xff] %v6827_v37  ;;  %5768 = vtanh.f32 %v6827_v37  ;;  %4879 = vst.msk [vmem:[%s6282_s22 + $0x1f8] sm:$0xff] %vm4815_vm1, %v6827_v37 }
 0x1c0   : > { %v1098_v13 = vpop.permute.xlu0 %1097 }
 0x1c1   : > { %5549 = vmatmul.mubr.msk.f32.gmra.mrb[36].mxu1 %vm1149_vm2, %v1096_v5  ;;  %v6831_v5 = vadd.f32 %v6270_v10, %v880_v20 }
 0x1c2   : > { %5551 = vmatprep.mubr.msk.f32.mxu1 %vm1149_vm2, %v1098_v13 }
 0x1c3   : > { %v1100_v15 = vpop.permute.xlu1 %1099  ;;  %9877 = vst [vmem:[#allocation65_spill] sm:$0xff] %v6831_v5  ;;  %5770 = vtanh.f32 %v6831_v5  ;;  %4878 = vst.msk [vmem:[%s6282_s22 + $0x1f0] sm:$0xff] %vm4815_vm1, %v6831_v5 }
 0x1c4   : > { %v1102_v42 = vpop.permute.xlu0 %1101 }
 0x1c5   : > { %5552 = vmatmul.mubr.msk.f32.gmra.mrb[38].mxu1 %vm1149_vm2, %v1100_v15 }
 0x1c6   : > { %5554 = vmatprep.mubr.msk.f32.mxu1 %vm1149_vm2, %v1102_v42 }
 0x1c7   : > { %v1104_v51 = vpop.permute.xlu1 %1103 }
 0x1c8   : > { %v1106_v55 = vpop.permute.xlu0 %1105 }
 0x1c9   : > { %5555 = vmatmul.mubr.msk.f32.gmra.mrb[40].mxu1 %vm1149_vm2, %v1104_v51  ;;  %v5769_v42 = vpop.eup %5768 }
 0x1ca   : > { %5557 = vmatprep.mubr.msk.f32.mxu1 %vm1149_vm2, %v1106_v55  ;;  %1147 = vrot.lane.b32.xlu1 %v5769_v42, %s6070_s23 }
 0x1cb   : > { %v1108_v13 = vpop.permute.xlu1 %1107 }
 0x1cc   : > { %v1110_v15 = vpop.permute.xlu0 %1109 }
 0x1cd   : > { %5558 = vmatmul.mubr.msk.f32.gmra.mrb[42].mxu1 %vm1149_vm2, %v1108_v13  ;;  %v5771_v10 = vpop.eup %5770 }
 0x1ce   : > { %5560 = vmatprep.mubr.msk.f32.mxu1 %vm1149_vm2, %v1110_v15  ;;  %1145 = vrot.lane.b32.xlu0 %v5771_v10, %s6070_s23 }
 0x1cf   : > { %v1112_v51 = vpop.permute.xlu1 %1111 }
 0x1d0   : > { %v1114_v55 = vpop.permute.xlu0 %1113 }
 0x1d1   : > { %5561 = vmatmul.mubr.msk.f32.gmra.mrb[44].mxu1 %vm1149_vm2, %v1112_v51 }
 0x1d2   : > { %5563 = vmatprep.mubr.msk.f32.mxu1 %vm1149_vm2, %v1114_v55 }
 0x1d3   : > { %v1116_v28 = vpop.permute.xlu1 %1115 }
 0x1d4   : > { %v1118_v20 = vpop.permute.xlu0 %1117 }
 0x1d5   : > { %5564 = vmatmul.mubr.msk.f32.gmra.mrb[46].mxu1 %vm1149_vm2, %v1116_v28 }
 0x1d6   : > { %5566 = vmatprep.mubr.msk.f32.mxu1 %vm1149_vm2, %v1118_v20 }
 0x1d7   : > { %v1120_v13 = vpop.permute.xlu1 %1119 }
 0x1d9   : > { %5567 = vmatmul.mubr.msk.f32.gmra.mrb[48].mxu1 %vm1149_vm2, %v1120_v13 }
 0x1db   : > { %v1124_v5 = vpop.permute.xlu1 %1123 }
 0x1eb   : > { %v1122_v15 = vpop.permute.xlu0 %1121 }
 0x1ec   : > { %5569 = vmatprep.mubr.msk.f32.mxu1 %vm1149_vm2, %v1122_v15  ;;  %v1128_v51 = vpop.permute.xlu1 %1127  ;;  %v6863_v15 = vld [vmem:[%s9681_s1 + $0x58] ss:$0 sm:$0xff] }
 0x1ed   : > { %5570 = vmatmul.mubr.msk.f32.gmra.mrb[50].mxu1 %vm1149_vm2, %v1124_v5 }
 0x1ef   : > { %v1126_v42 = vpop.permute.xlu0 %1125 }
 0x1f0   : > { %5572 = vmatprep.mubr.msk.f32.mxu1 %vm1149_vm2, %v1126_v42 }
 0x1f1   : > { %5573 = vmatmul.mubr.msk.f32.gmra.mrb[52].mxu1 %vm1149_vm2, %v1128_v51  ;;  %v1132_v55 = vpop.permute.xlu1 %1131 }
 0x1f4   : > { %v1130_v10 = vpop.permute.xlu0 %1129 }
 0x1f5   : > { %5575 = vmatprep.mubr.msk.f32.mxu1 %vm1149_vm2, %v1130_v10 }
 0x1f6   : > { %5576 = vmatmul.mubr.msk.f32.gmra.mrb[54].mxu1 %vm1149_vm2, %v1132_v55 }
 0x1f8   : > { %v1136_v20 = vpop.permute.xlu1 %1135 }
 0x1f9   : > { %v1134_v28 = vpop.permute.xlu0 %1133 }
 0x1fa   : > { %5578 = vmatprep.mubr.msk.f32.mxu1 %vm1149_vm2, %v1134_v28 }
 0x1fb   : > { %5579 = vmatmul.mubr.msk.f32.gmra.mrb[56].mxu1 %vm1149_vm2, %v1136_v20 }
 0x1fc   : > { %v1140_v5 = vpop.permute.xlu1 %1139 }
 0x1fd   : > { %v1138_v13 = vpop.permute.xlu0 %1137 }
 0x1fe   : > { %5581 = vmatprep.mubr.msk.f32.mxu1 %vm1149_vm2, %v1138_v13 }
 0x1ff   : > { %5582 = vmatmul.mubr.msk.f32.gmra.mrb[58].mxu1 %vm1149_vm2, %v1140_v5 }
 0x24c   : > { %v5496_v42 = vpop.f32.mrb[0].mxu1 }
 0x24d   : > { %v1350_v51 = vadd.f32 %v5496_v42, %v6863_v15  ;;  %v1344_v10 = vpop.f32.mrb[1].mxu1 }
 0x24e   : > { %v1345_v55 = vadd.f32 %v6863_v15, %v1344_v10 }
 0x24f   : > { %v1671_v28 = vsel %vm1663_vm3, %v1350_v51, -inf }
 0x250   : > { %v1672_v20 = vrot.slane %v1671_v28, 4  ;;  %v1664_v37 = vsel %vm1663_vm3, %v1345_v55, -inf  ;;  %v5499_v13 = vpop.f32.mrb[2].mxu1 }
 0x251   : > { %v1665_v9 = vrot.slane %v1664_v37, 4  ;;  %v6870_v5 = vadd.f32 %v5499_v13, %v6863_v15  ;;  %v1354_v63 = vpop.f32.mrb[3].mxu1 }
 0x252   : > { %v1673_v0 = vmax.f32 %v1671_v28, %v1672_v20  ;;  %v6873_v45 = vadd.f32 %v6863_v15, %v1354_v63 }
 0x253   : > { %v1666_v49 = vmax.f32 %v1664_v37, %v1665_v9  ;;  %v1685_v42 = vsel %vm1663_vm3, %v6870_v5, -inf }
 0x254   : > { %v1674_v10 = vrot.slane %v1673_v0, 2  ;;  %v1686_v31 = vrot.slane %v1685_v42, 4  ;;  %v1678_v35 = vsel %vm1663_vm3, %v6873_v45, -inf  ;;  %v5502_v8 = vpop.f32.mrb[4].mxu1 }
 0x255   : > { %v1667_v22 = vrot.slane %v1666_v49, 2  ;;  %v1679_v58 = vrot.slane %v1678_v35, 4  ;;  %v6880_v13 = vadd.f32 %v5502_v8, %v6863_v15  ;;  %v1364_v60 = vpop.f32.mrb[5].mxu1 }
 0x256   : > { %v1675_v28 = vmax.f32 %v1673_v0, %v1674_v10  ;;  %v1687_v20 = vmax.f32 %v1685_v42, %v1686_v31  ;;  %v6883_v63 = vadd.f32 %v6863_v15, %v1364_v60 }
 0x257   : > { %v1668_v9 = vmax.f32 %v1666_v49, %v1667_v22  ;;  %v1680_v37 = vmax.f32 %v1678_v35, %v1679_v58  ;;  %v1699_v3 = vsel %vm1663_vm3, %v6880_v13, -inf }
 0x258   : > { %v1676_v54 = vrot.slane %v1675_v28, 1  ;;  %v1688_v46 = vrot.slane %v1687_v20, 2  ;;  %v1700_v33 = vrot.slane %v1699_v3, 4  ;;  %v1692_v40 = vsel %vm1663_vm3, %v6883_v63, -inf  ;;  %v5505_v6 = vpop.f32.mrb[6].mxu1 }
 0x259   : > { %v1669_v8 = vrot.slane %v1668_v9, 1  ;;  %v1681_v26 = vrot.slane %v1680_v37, 2  ;;  %v1693_v61 = vrot.slane %v1692_v40, 4  ;;  %v6890_v0 = vadd.f32 %v5505_v6, %v6863_v15  ;;  %v1374_v60 = vpop.f32.mrb[7].mxu1 }
 0x25a   : > { %v1677_v31 = vmax.f32 %v1675_v28, %v1676_v54  ;;  %v1689_v22 = vmax.f32 %v1687_v20, %v1688_v46  ;;  %v1701_v35 = vmax.f32 %v1699_v3, %v1700_v33  ;;  %v6893_v49 = vadd.f32 %v6863_v15, %v1374_v60 }
 0x25b   : > { %v1670_v58 = vmax.f32 %v1668_v9, %v1669_v8  ;;  %v1682_v42 = vmax.f32 %v1680_v37, %v1681_v26  ;;  %v1694_v10 = vmax.f32 %v1692_v40, %v1693_v61  ;;  %v1713_v16 = vsel %vm1663_vm3, %v6890_v0, -inf }
 0x25c   : > { %v2113_v52 = vsub.f32 %v1350_v51, %v1677_v31  ;;  %v1690_v12 = vrot.slane %v1689_v22, 1  ;;  %v1702_v48 = vrot.slane %v1701_v35, 2  ;;  %v1714_v2 = vrot.slane %v1713_v16, 4  ;;  %v5508_v43 = vpop.f32.mrb[8].mxu1 }
 0x25d   : > { %v2112_v6 = vsub.f32 %v1345_v55, %v1670_v58  ;;  %v1683_v57 = vrot.slane %v1682_v42, 1  ;;  %v1695_v34 = vrot.slane %v1694_v10, 2  ;;  %v1706_v33 = vsel %vm1663_vm3, %v6893_v49, -inf  ;;  %v1384_v46 = vpop.f32.mrb[9].mxu1 }
 0x25e   : > { %v2178_v54 = vmul.f32 1.442695, %v2113_v52  ;;  %v1691_v3 = vmax.f32 %v1689_v22, %v1690_v12  ;;  %v1703_v28 = vmax.f32 %v1701_v35, %v1702_v48  ;;  %v1715_v26 = vmax.f32 %v1713_v16, %v1714_v2 }
 0x25f   : > { %v2176_v61 = vmul.f32 1.442695, %v2112_v6  ;;  %v1684_v40 = vmax.f32 %v1682_v42, %v1683_v57  ;;  %v1696_v20 = vmax.f32 %v1694_v10, %v1695_v34  ;;  %v1707_v9 = vrot.slane %v1706_v33, 4 }
 0x260   : > { %5772 = vpow2.f32 %v2178_v54  ;;  %v2115_v51 = vsub.f32 %v6870_v5, %v1691_v3  ;;  %v1704_v37 = vrot.slane %v1703_v28, 1  ;;  %v1716_v8 = vrot.slane %v1715_v26, 2  ;;  %v5511_v55 = vpop.f32.mrb[10].mxu1 }
 0x261   : > { %5774 = vpow2.f32 %v2176_v61  ;;  %v2114_v60 = vsub.f32 %v6873_v45, %v1684_v40  ;;  %v1697_v31 = vrot.slane %v1696_v20, 1  ;;  %v1708_v58 = vmax.f32 %v1706_v33, %v1707_v9  ;;  %v1394_v39 = vpop.f32.mrb[11].mxu1 }
 0x262   : > { %v2182_v52 = vmul.f32 1.442695, %v2115_v51  ;;  %v1705_v12 = vmax.f32 %v1703_v28, %v1704_v37  ;;  %v1717_v48 = vmax.f32 %v1715_v26, %v1716_v8  ;;  %v6902_v2 = vadd.f32 %v5508_v43, %v6863_v15 }
 0x263   : > { %v2180_v34 = vmul.f32 1.442695, %v2114_v60  ;;  %v1698_v57 = vmax.f32 %v1696_v20, %v1697_v31  ;;  %v1709_v16 = vrot.slane %v1708_v58, 2  ;;  %v6905_v5 = vadd.f32 %v6863_v15, %v1384_v46 }
 0x264   : > { %5776 = vpow2.f32 %v2182_v52  ;;  %v2117_v22 = vsub.f32 %v6880_v13, %v1705_v12  ;;  %v1718_v35 = vrot.slane %v1717_v48, 1  ;;  %v1727_v45 = vsel %vm1663_vm3, %v6902_v2, -inf  ;;  %v5514_v42 = vpop.f32.mrb[12].mxu1 }
 0x265   : > { %5778 = vpow2.f32 %v2180_v34  ;;  %v2116_v10 = vsub.f32 %v6883_v63, %v1698_v57  ;;  %v1710_v6 = vmax.f32 %v1708_v58, %v1709_v16  ;;  %v1728_v43 = vrot.slane %v1727_v45, 4  ;;  %v6911_v33 = vpop.f32.mrb[13].mxu1 }
 0x266   : > { %v2186_v54 = vmul.f32 1.442695, %v2117_v22  ;;  %v1719_v3 = vmax.f32 %v1717_v48, %v1718_v35  ;;  %v1720_v46 = vsel %vm1663_vm3, %v6905_v5, -inf  ;;  %v6916_v28 = vadd.f32 %v5511_v55, %v6863_v15 }
 0x267   : > { %v2184_v13 = vmul.f32 1.442695, %v2116_v10  ;;  %v1711_v26 = vrot.slane %v1710_v6, 1  ;;  %v1729_v61 = vmax.f32 %v1727_v45, %v1728_v43  ;;  %v1721_v40 = vrot.slane %v1720_v46, 4 }
 0x268   : > { %5780 = vpow2.f32 %v2186_v54  ;;  %v2119_v20 = vsub.f32 %v6890_v0, %v1719_v3  ;;  %v1741_v63 = vsel %vm1663_vm3, %v6916_v28, -inf  ;;  %v6921_v9 = vpop.f32.mrb[14].mxu1  ;;  %v6928_v52 = vadd.f32 %v6863_v15, %v1394_v39  ;;  %v1142_v54 = vpop.permute.xlu0 %1141 }
 0x269   : > { %5782 = vpow2.f32 %v2184_v13  ;;  %v1712_v51 = vmax.f32 %v1710_v6, %v1711_v26  ;;  %v1730_v37 = vrot.slane %v1729_v61, 2  ;;  %v1722_v8 = vmax.f32 %v1720_v46, %v1721_v40  ;;  %v6923_v60 = vpop.f32.mrb[15].mxu1  ;;  %v1144_v26 = vpop.permute.xlu1 %1143  ;;  %5584 = vmatprep.mubr.msk.f32.mxu1 %vm1149_vm2, %v1142_v54 }
 0x26a   : > { %v6925_v55 = vpop.eup %5772  ;;  %v2190_v31 = vmul.f32 1.442695, %v2119_v20  ;;  %v1742_v58 = vrot.slane %v1741_v63, 4  ;;  %v1734_v13 = vsel %vm1663_vm3, %v6928_v52, -inf  ;;  %5585 = vmatmul.mubr.msk.f32.gmra.mrb[60].mxu1 %vm1149_vm2, %v1144_v26 }
 0x26b   : > { %v6930_v12 = vpop.eup %5774  ;;  %v2311_v0 = vsel %vm1663_vm3, %v6925_v55, 0.0  ;;  %v2118_v48 = vsub.f32 %v6893_v49, %v1712_v51  ;;  %v1731_v34 = vmax.f32 %v1729_v61, %v1730_v37  ;;  %v1723_v57 = vrot.slane %v1722_v8, 2 }
 0x26c   : > { %v2312_v16 = vrot.slane %v2311_v0, 4  ;;  %v2304_v22 = vsel %vm1663_vm3, %v6930_v12, 0.0  ;;  %5784 = vpow2.f32 %v2190_v31  ;;  %v6937_v35 = vpop.f32.mrb[16].mxu1  ;;  %v1743_v49 = vmax.f32 %v1741_v63, %v1742_v58  ;;  %v1146_v59 = vpop.permute.xlu0 %1145 }
 0x26d   : > { %v2305_v45 = vrot.slane %v2304_v22, 4  ;;  %v2188_v10 = vmul.f32 1.442695, %v2118_v48  ;;  %v1732_v39 = vrot.slane %v1731_v34, 1  ;;  %v1724_v6 = vmax.f32 %v1722_v8, %v1723_v57  ;;  %v6939_v43 = vpop.f32.mrb[17].mxu1  ;;  %v1148_v7 = vpop.permute.xlu1 %1147  ;;  %5587 = vmatprep.mubr.msk.f32.mxu1 %vm1149_vm2, %v1146_v59 }
 0x26e   : > { %v6941_v3 = vpop.eup %5776  ;;  %v2313_v46 = vadd.f32 %v2312_v16, %v2311_v0  ;;  %v6957_v16 = vadd.f32 %v5514_v42, %v6863_v15  ;;  %v1744_v54 = vrot.slane %v1743_v49, 2  ;;  %v1735_v18 = vrot.slane %v1734_v13, 4  ;;  %5588 = vmatmul.mubr.msk.f32.gmra.mrb[62].mxu1 %vm1149_vm2, %v1148_v7 }
 0x26f   : > { %v6946_v61 = vpop.eup %5778  ;;  %v2306_v40 = vadd.f32 %v2305_v45, %v2304_v22  ;;  %v2325_v20 = vsel %vm1663_vm3, %v6941_v3, 0.0  ;;  %5786 = vpow2.f32 %v2188_v10  ;;  %v1733_v51 = vmax.f32 %v1731_v34, %v1732_v39 }
 0x270   : > { %v2314_v37 = vrot.slane %v2313_v46, 2  ;;  %v2326_v8 = vrot.slane %v2325_v20, 4  ;;  %v2318_v63 = vsel %vm1663_vm3, %v6946_v61, 0.0  ;;  %v1725_v31 = vrot.slane %v1724_v6, 1  ;;  %v6953_v58 = vpop.f32.mrb[18].mxu1 }
 0x271   : > { %v2307_v0 = vrot.slane %v2306_v40, 2  ;;  %v2319_v48 = vrot.slane %v2318_v63, 4  ;;  %v2121_v57 = vsub.f32 %v6902_v2, %v1733_v51  ;;  %v6959_v22 = vpop.f32.mrb[19].mxu1  ;;  %v1736_v62 = vmax.f32 %v1734_v13, %v1735_v18 }
 0x272   : > { %v6961_v34 = vpop.eup %5780  ;;  %v2315_v45 = vadd.f32 %v2314_v37, %v2313_v46  ;;  %v2327_v10 = vadd.f32 %v2326_v8, %v2325_v20  ;;  %v1726_v39 = vmax.f32 %v1724_v6, %v1725_v31 }
 0x273   : > { %v6963_v26 = vpop.eup %5782  ;;  %v2308_v29 = vadd.f32 %v2307_v0, %v2306_v40  ;;  %v2320_v24 = vadd.f32 %v2319_v48, %v2318_v63  ;;  %v2339_v14 = vsel %vm1663_vm3, %v6961_v34, 0.0  ;;  %v2194_v37 = vmul.f32 1.442695, %v2121_v57 }
 0x274   : > { %v2316_v2 = vrot.slane %v2315_v45, 1  ;;  %v2328_v51 = vrot.slane %v2327_v10, 2  ;;  %v2340_v42 = vrot.slane %v2339_v14, 4  ;;  %v2332_v1 = vsel %vm1663_vm3, %v6963_v26, 0.0  ;;  %v6969_v11 = vpop.f32.mrb[20].mxu1 }
 0x275   : > { %v2309_v46 = vrot.slane %v2308_v29, 1  ;;  %v2321_v20 = vrot.slane %v2320_v24, 2  ;;  %v2333_v6 = vrot.slane %v2332_v1, 4  ;;  %v6971_v8 = vpop.f32.mrb[21].mxu1  ;;  %v2120_v0 = vsub.f32 %v6905_v5, %v1726_v39 }
 0x276   : > { %v6973_v40 = vpop.eup %5784  ;;  %v2329_v63 = vadd.f32 %v2328_v51, %v2327_v10  ;;  %v2341_v31 = vadd.f32 %v2340_v42, %v2339_v14  ;;  %v1745_v48 = vmax.f32 %v1743_v49, %v1744_v54  ;;  %v2317_v57 = vadd.f32 %v2316_v2, %v2315_v45 }
 0x277   : > { %v2322_v53 = vadd.f32 %v2321_v20, %v2320_v24  ;;  %v2334_v4 = vadd.f32 %v2333_v6, %v2332_v1  ;;  %v2353_v50 = vsel %vm1663_vm3, %v6973_v40, 0.0  ;;  %v2310_v5 = vadd.f32 %v2309_v46, %v2308_v29 }
 0x278   : > { %v2330_v47 = vrot.slane %v2329_v63, 1  ;;  %v2342_v56 = vrot.slane %v2341_v31, 2  ;;  %v2354_v44 = vrot.slane %v2353_v50, 4  ;;  %v6979_v38 = vpop.f32.mrb[22].mxu1  ;;  %5788 = vpow2.f32 %v2194_v37 }
 0x279   : > { %v6982_v14 = vpop.eup %5786  ;;  %v2323_v49 = vrot.slane %v2322_v53, 1  ;;  %v2335_v24 = vrot.slane %v2334_v4, 2  ;;  %v6984_v1 = vpop.f32.mrb[23].mxu1  ;;  %v2192_v13 = vmul.f32 1.442695, %v2120_v0  ;;  %v1755_v54 = vsel %vm1663_vm3, %v6957_v16, -inf }
 0x27a   : > { %v2343_v10 = vadd.f32 %v2342_v56, %v2341_v31  ;;  %v2355_v18 = vadd.f32 %v2354_v44, %v2353_v50  ;;  %v2346_v59 = vsel %vm1663_vm3, %v6982_v14, 0.0  ;;  %5790 = vrcp.f32 %v2317_v57 }
 0x27b   : > { %v2336_v45 = vadd.f32 %v2335_v24, %v2334_v4  ;;  %v2347_v39 = vrot.slane %v2346_v59, 4  ;;  %v2331_v7 = vadd.f32 %v2330_v47, %v2329_v63  ;;  %v1746_v29 = vrot.slane %v1745_v48, 1 }
 0x27c   : > { %v2344_v2 = vrot.slane %v2343_v10, 1  ;;  %v6990_v51 = vpop.f32.mrb[24].mxu1  ;;  %5792 = vrcp.f32 %v2310_v5  ;;  %v2324_v42 = vadd.f32 %v2323_v49, %v2322_v53  ;;  %v1737_v46 = vrot.slane %v1736_v62, 2 }
 0x27d   : > { %v6992_v56 = vpop.f32.mrb[25].mxu1  ;;  %v2356_v44 = vrot.slane %v2355_v18, 2  ;;  %5794 = vpow2.f32 %v2192_v13  ;;  %v1747_v50 = vmax.f32 %v1745_v48, %v1746_v29  ;;  %v1756_v20 = vrot.slane %v1755_v54, 4 }
 0x27e   : > { %v2337_v4 = vrot.slane %v2336_v45, 1  ;;  %v2348_v6 = vadd.f32 %v2347_v39, %v2346_v59  ;;  %v1738_v37 = vmax.f32 %v1736_v62, %v1737_v46  ;;  %v6996_v31 = vadd.f32 %v6863_v15, %v6911_v33 }
 0x27f   : > { %5796 = vrcp.f32 %v2331_v7  ;;  %v2345_v47 = vadd.f32 %v2344_v2, %v2343_v10  ;;  %v2123_v63 = vsub.f32 %v6916_v28, %v1747_v50  ;;  %v2357_v5 = vadd.f32 %v2356_v44, %v2355_v18 }
 0x280   : > { %v6999_v0 = vpop.f32.mrb[26].mxu1  ;;  %5798 = vrcp.f32 %v2324_v42  ;;  %v1739_v53 = vrot.slane %v1738_v37, 1  ;;  %v1757_v49 = vmax.f32 %v1755_v54, %v1756_v20  ;;  %v1748_v62 = vsel %vm1663_vm3, %v6996_v31, -inf }
 0x281   : > { %v7001_v57 = vpop.f32.mrb[27].mxu1  ;;  %v2198_v48 = vmul.f32 1.442695, %v2123_v63  ;;  %v2338_v33 = vadd.f32 %v2337_v4, %v2336_v45  ;;  %v2349_v59 = vrot.slane %v2348_v6, 2  ;;  %v1749_v10 = vrot.slane %v1748_v62, 4 }
 0x282   : > { %v7005_v24 = vpop.eup %5788  ;;  %v1740_v13 = vmax.f32 %v1738_v37, %v1739_v53  ;;  %5800 = vrcp.f32 %v2345_v47  ;;  %v1758_v28 = vrot.slane %v1757_v49, 2  ;;  %v7009_v39 = vadd.f32 %v6921_v9, %v6863_v15 }
 0x283   : > { %v7013_v18 = vadd.f32 %v6863_v15, %v6923_v60  ;;  %5802 = vpow2.f32 %v2198_v48  ;;  %v2367_v29 = vsel %vm1663_vm3, %v7005_v24, 0.0  ;;  %v1750_v46 = vmax.f32 %v1748_v62, %v1749_v10 }
 0x284   : > { %v7015_v54 = vpop.f32.mrb[28].mxu1  ;;  %v2122_v7 = vsub.f32 %v6928_v52, %v1740_v13  ;;  %v5791_v45 = vpop.eup %5790  ;;  %v1759_v42 = vmax.f32 %v1757_v49, %v1758_v28  ;;  %v1769_v9 = vsel %vm1663_vm3, %v7009_v39, -inf  ;;  %5804 = vrcp.f32 %v2338_v33 }
 0x285   : > { %v7018_v2 = vpop.f32.mrb[29].mxu1  ;;  %v2358_v60 = vrot.slane %v2357_v5, 1  ;;  %v7024_v50 = vadd.f32 %v2349_v59, %v2348_v6  ;;  %v1751_v37 = vrot.slane %v1750_v46, 2  ;;  %v1770_v47 = vrot.slane %v1769_v9, 4 }
 0x286   : > { %v5793_v44 = vpop.eup %5792  ;;  %v2196_v20 = vmul.f32 1.442695, %v2122_v7  ;;  %v1760_v52 = vrot.slane %v1759_v42, 1  ;;  %v1762_v63 = vsel %vm1663_vm3, %v7013_v18, -inf  ;;  %v2368_v48 = vrot.slane %v2367_v29, 4 }
 0x287   : > { %v7026_v4 = vpop.eup %5794  ;;  %v1763_v49 = vrot.slane %v1762_v63, 4  ;;  %v1752_v59 = vmax.f32 %v1750_v46, %v1751_v37  ;;  %v1771_v13 = vmax.f32 %v1769_v9, %v1770_v47  ;;  %v7044_v10 = vadd.f32 %v6937_v35, %v6863_v15 }
 0x288   : > { %v7030_v53 = vpop.f32.mrb[30].mxu1  ;;  %5806 = vpow2.f32 %v2196_v20  ;;  %v1761_v33 = vmax.f32 %v1759_v42, %v1760_v52  ;;  %v2359_v7 = vadd.f32 %v2358_v60, %v2357_v5  ;;  %v2351_v20 = vrot.slane %v7024_v50, 1 }
 0x289   : > { %v7038_v6 = vpop.f32.mrb[31].mxu1  ;;  %v7040_v62 = vpop.eup %5796  ;;  %v1764_v41 = vmax.f32 %v1762_v63, %v1763_v49  ;;  %v7050_v32 = vmul.f32 %v5791_v45, %v6925_v55  ;;  %v1753_v27 = vrot.slane %v1752_v59, 1  ;;  %v1772_v42 = vrot.slane %v1771_v13, 2 }
 0x28a   : > { %v7046_v28 = vpop.eup %5798  ;;  %v2125_v36 = vsub.f32 %v6957_v16, %v1761_v33  ;;  %v1783_v46 = vsel %vm1663_vm3, %v7044_v10, -inf  ;;  %v2369_v35 = vadd.f32 %v2368_v48, %v2367_v29  ;;  %v2360_v52 = vsel %vm1663_vm3, %v7026_v4, 0.0 }
 0x28b   : > { %9878 = vst [vmem:[#allocation66_spill] sm:$0xff] %v7050_v32  ;;  %v1765_v5 = vrot.slane %v1764_v41, 2  ;;  %v1784_v60 = vrot.slane %v1783_v46, 4  ;;  %3138 = vrot.lane.b32.xlu0 %v7050_v32, %s6071_s29  ;;  %4881 = vst.msk [vmem:[%s7036_s28 + $0x8] sm:$0xff] %vm1663_vm3, %v7050_v32  ;;  %2946 = vrot.lane.b32.xlu1 %v7050_v32, %s6072_s30  ;;  %v1754_v29 = vmax.f32 %v1752_v59, %v1753_v27  ;;  %5808 = vrcp.f32 %v2359_v7 }
 0x28c   : > { %v7055_v9 = vpop.f32.mrb[32].mxu1  ;;  %v7068_v16 = vpop.eup %5800  ;;  %v2202_v45 = vmul.f32 1.442695, %v2125_v36  ;;  %v1773_v37 = vmax.f32 %v1771_v13, %v1772_v42  ;;  %v7072_v47 = vadd.f32 %v6863_v15, %v6939_v43  ;;  %v7077_v33 = vmul.f32 %v5793_v44, %v6930_v12 }
 0x28d   : > { %9879 = vst [vmem:[#allocation67_spill] sm:$0xff] %v7055_v9  ;;  %v7066_v55 = vpop.f32.mrb[33].mxu1  ;;  %v7074_v63 = vpop.eup %5802  ;;  %v1766_v48 = vmax.f32 %v1764_v41, %v1765_v5  ;;  %v1785_v49 = vmax.f32 %v1783_v46, %v1784_v60  ;;  %v2124_v27 = vsub.f32 %v6996_v31, %v1754_v29  ;;  %v2361_v13 = vrot.slane %v2360_v52, 4 }
 0x28e   : > { %9880 = vst [vmem:[#allocation68_spill] sm:$0xff] %v7066_v55  ;;  %9881 = vst [vmem:[#allocation69_spill] sm:$0xff] %v7077_v33  ;;  %v2381_v30 = vsel %vm1663_vm3, %v7074_v63, 0.0  ;;  %5810 = vpow2.f32 %v2202_v45  ;;  %v1774_v36 = vrot.slane %v1773_v37, 1  ;;  %v7084_v43 = vpop.eup %5804  ;;  %v1776_v44 = vsel %vm1663_vm3, %v7072_v47, -inf }
 0x28f   : > { %v2382_v42 = vrot.slane %v2381_v30, 4  ;;  %v1767_v7 = vrot.slane %v1766_v48, 1  ;;  %v1786_v41 = vrot.slane %v1785_v49, 2  ;;  %3330 = vrot.lane.b32.xlu1 %v7050_v32, %s6073_s5  ;;  %2944 = vrot.lane.b32.xlu0 %v7077_v33, %s6072_s30  ;;  %4880 = vst.msk [vmem:[%s7036_s28] sm:$0xff] %vm1663_vm3, %v7077_v33  ;;  %v2200_v12 = vmul.f32 1.442695, %v2124_v27 }
 0x290   : > { %v7082_v59 = vpop.f32.mrb[34].mxu1  ;;  %v1775_v31 = vmax.f32 %v1773_v37, %v1774_v36  ;;  %v7097_v46 = vadd.f32 %v6953_v58, %v6863_v15  ;;  %v2352_v60 = vadd.f32 %v2351_v20, %v7024_v50  ;;  %v2370_v45 = vrot.slane %v2369_v35, 2 }
 0x291   : > { %9882 = vst [vmem:[#allocation70_spill] sm:$0xff] %v7082_v59  ;;  %v1768_v29 = vmax.f32 %v1766_v48, %v1767_v7  ;;  %v1787_v25 = vmax.f32 %v1785_v49, %v1786_v41  ;;  %v7102_v23 = vpop.f32.mrb[35].mxu1  ;;  %5812 = vpow2.f32 %v2200_v12  ;;  %v1777_v36 = vrot.slane %v1776_v44, 4 }
 0x292   : > { %v7099_v5 = vpop.eup %5806  ;;  %9883 = vst [vmem:[#allocation71_spill] sm:$0xff] %v7102_v23  ;;  %v2127_v37 = vsub.f32 %v7009_v39, %v1775_v31  ;;  %v2362_v21 = vadd.f32 %v2361_v13, %v2360_v52  ;;  %v2383_v19 = vadd.f32 %v2382_v42, %v2381_v30  ;;  %v1797_v39 = vsel %vm1663_vm3, %v7097_v46, -inf }
 0x293   : > { %v2374_v27 = vsel %vm1663_vm3, %v7099_v5, 0.0  ;;  %v2126_v58 = vsub.f32 %v7013_v18, %v1768_v29  ;;  %v1788_v17 = vrot.slane %v1787_v25, 1  ;;  %3136 = vrot.lane.b32.xlu1 %v7077_v33, %s6071_s29  ;;  %3328 = vrot.lane.b32.xlu0 %v7077_v33, %s6073_s5  ;;  %v1778_v48 = vmax.f32 %v1776_v44, %v1777_v36 }
 0x294   : > { %v7112_v50 = vpop.f32.mrb[36].mxu1  ;;  %v2206_v20 = vmul.f32 1.442695, %v2127_v37  ;;  %v7118_v30 = vmul.f32 %v7040_v62, %v6941_v3  ;;  %v7120_v18 = vadd.f32 %v2370_v45, %v2369_v35  ;;  %v2375_v52 = vrot.slane %v2374_v27, 4 }
 0x295   : > { %9884 = vst [vmem:[#allocation72_spill] sm:$0xff] %v7112_v50  ;;  %v2204_v49 = vmul.f32 1.442695, %v2126_v58  ;;  %v1789_v13 = vmax.f32 %v1787_v25, %v1788_v17  ;;  %v1779_v42 = vrot.slane %v1778_v48, 2  ;;  %v1798_v7 = vrot.slane %v1797_v39, 4  ;;  %v7129_v12 = vpop.eup %5808 }
 0x296   : > { %9885 = vst [vmem:[#allocation73_spill] sm:$0xff] %v7118_v30  ;;  %5814 = vpow2.f32 %v2206_v20  ;;  %4883 = vst.msk [vmem:[%s7036_s28 + $0x18] sm:$0xff] %vm1663_vm3, %v7118_v30  ;;  %v7127_v41 = vadd.f32 %v6863_v15, %v6959_v22  ;;  %v2363_v31 = vrot.slane %v2362_v21, 2  ;;  %v2384_v3 = vrot.slane %v2383_v19, 2 }
 0x297   : > { %5816 = vpow2.f32 %v2204_v49  ;;  %v2129_v62 = vsub.f32 %v7044_v10, %v1789_v13  ;;  %2950 = vrot.lane.b32.xlu1 %v7118_v30, %s6072_s30  ;;  %3142 = vrot.lane.b32.xlu0 %v7118_v30, %s6071_s29  ;;  %v1780_v25 = vmax.f32 %v1778_v48, %v1779_v42  ;;  %v1799_v35 = vmax.f32 %v1797_v39, %v1798_v7 }
 0x298   : > { %v7136_v17 = vpop.eup %5810  ;;  %v1790_v22 = vsel %vm1663_vm3, %v7127_v41, -inf  ;;  %v7142_v44 = vmul.f32 %v7046_v28, %v6946_v61  ;;  %5818 = vrcp.f32 %v2352_v60  ;;  %v2376_v45 = vadd.f32 %v2375_v52, %v2374_v27 }
 0x299   : > { %v2395_v10 = vsel %vm1663_vm3, %v7136_v17, 0.0  ;;  %v2210_v29 = vmul.f32 1.442695, %v2129_v62  ;;  %v1781_v37 = vrot.slane %v1780_v25, 1  ;;  %v1800_v36 = vrot.slane %v1799_v35, 2 }
 0x29a   : > { %9886 = vst [vmem:[#allocation74_spill] sm:$0xff] %v7142_v44  ;;  %v1791_v58 = vrot.slane %v1790_v22, 4  ;;  %4882 = vst.msk [vmem:[%s7036_s28 + $0x10] sm:$0xff] %vm1663_vm3, %v7142_v44  ;;  %v2372_v20 = vrot.slane %v7120_v18, 1  ;;  %v2364_v48 = vadd.f32 %v2363_v31, %v2362_v21  ;;  %v7156_v61 = vadd.f32 %v6969_v11, %v6863_v15 }
 0x29b   : > { %3334 = vrot.lane.b32.xlu1 %v7118_v30, %s6073_s5  ;;  %2948 = vrot.lane.b32.xlu0 %v7142_v44, %s6072_s30  ;;  %v7160_v28 = vadd.f32 %v6863_v15, %v6971_v8  ;;  %v7162_v60 = vpop.eup %5812  ;;  %v2385_v27 = vadd.f32 %v2384_v3, %v2383_v19  ;;  %v2396_v39 = vrot.slane %v2395_v10, 4  ;;  %v1782_v52 = vmax.f32 %v1780_v25, %v1781_v37  ;;  %v7175_v25 = vpop.f32.mrb[37].mxu1 }
 0x29c   : > { %v1801_v21 = vmax.f32 %v1799_v35, %v1800_v36  ;;  %v2377_v49 = vrot.slane %v2376_v45, 2  ;;  %v2388_v13 = vsel %vm1663_vm3, %v7162_v60, 0.0  ;;  %v1792_v42 = vmax.f32 %v1790_v22, %v1791_v58  ;;  %9887 = vst [vmem:[#allocation75_spill] sm:$0xff] %v7175_v25  ;;  %v7185_v59 = vpop.f32.mrb[38].mxu1 }
 0x29d   : > { %v1811_v7 = vsel %vm1663_vm3, %v7156_v61, -inf  ;;  %v2389_v11 = vrot.slane %v2388_v13, 4  ;;  %5820 = vpow2.f32 %v2210_v29  ;;  %v2128_v31 = vsub.f32 %v7072_v47, %v1782_v52  ;;  %9889 = vst [vmem:[#allocation77_spill] sm:$0xff] %v7185_v59 }
 0x29e   : > { %v1802_v8 = vrot.slane %v1801_v21, 1  ;;  %v2365_v62 = vrot.slane %v2364_v48, 1  ;;  %v1793_v30 = vrot.slane %v1792_v42, 2  ;;  %v1812_v19 = vrot.slane %v1811_v7, 4 }
 0x29f   : > { %3140 = vrot.lane.b32.xlu1 %v7142_v44, %s6071_s29  ;;  %3332 = vrot.lane.b32.xlu0 %v7142_v44, %s6073_s5  ;;  %v1804_v3 = vsel %vm1663_vm3, %v7160_v28, -inf  ;;  %v2397_v22 = vadd.f32 %v2396_v39, %v2395_v10  ;;  %v2390_v29 = vadd.f32 %v2389_v11, %v2388_v13  ;;  %v2208_v47 = vmul.f32 1.442695, %v2128_v31 }
 0x2a0   : > { %v7177_v35 = vpop.eup %5814  ;;  %v1803_v37 = vmax.f32 %v1801_v21, %v1802_v8  ;;  %v1794_v52 = vmax.f32 %v1792_v42, %v1793_v30  ;;  %v1813_v33 = vmax.f32 %v1811_v7, %v1812_v19  ;;  %v1805_v44 = vrot.slane %v1804_v3, 4 }
 0x2a1   : > { %v7179_v36 = vpop.eup %5816  ;;  %v2409_v58 = vsel %vm1663_vm3, %v7177_v35, 0.0  ;;  %v2386_v32 = vrot.slane %v2385_v27, 1  ;;  %v2378_v50 = vadd.f32 %v2377_v49, %v2376_v45  ;;  %v2373_v39 = vadd.f32 %v2372_v20, %v7120_v18 }
 0x2a2   : > { %9888 = vst [vmem:[#allocation76_spill] sm:$0xff] %v7179_v36  ;;  %v2410_v23 = vrot.slane %v2409_v58, 4  ;;  %v2402_v25 = vsel %vm1663_vm3, %v7179_v36, 0.0  ;;  %v7187_v10 = vpop.eup %5818  ;;  %v2366_v21 = vadd.f32 %v2365_v62, %v2364_v48  ;;  %v2131_v13 = vsub.f32 %v7097_v46, %v1803_v37  ;;  %v7194_v62 = vpop.f32.mrb[39].mxu1 }
 0x2a3   : > { %v1795_v11 = vrot.slane %v1794_v52, 1  ;;  %v2398_v31 = vrot.slane %v2397_v22, 2  ;;  %v2391_v30 = vrot.slane %v2390_v29, 2  ;;  %v2403_v42 = vrot.slane %v2402_v25, 4 }
 0x2a4   : > { %v1814_v7 = vrot.slane %v1813_v33, 2  ;;  %5822 = vpow2.f32 %v2208_v47  ;;  %v2214_v45 = vmul.f32 1.442695, %v2131_v13  ;;  %v1806_v8 = vmax.f32 %v1804_v3, %v1805_v44 }
 0x2a5   : > { %v1796_v49 = vmax.f32 %v1794_v52, %v1795_v11  ;;  %v2387_v19 = vadd.f32 %v2386_v32, %v2385_v27  ;;  %v2379_v55 = vrot.slane %v2378_v50, 1  ;;  %v2411_v9 = vadd.f32 %v2410_v23, %v2409_v58 }
 0x2a6   : > { %v1815_v59 = vmax.f32 %v1813_v33, %v1814_v7  ;;  %5824 = vrcp.f32 %v2373_v39  ;;  %v2399_v46 = vadd.f32 %v2398_v31, %v2397_v22  ;;  %v2392_v20 = vadd.f32 %v2391_v30, %v2390_v29 }
 0x2a7   : > { %v2130_v36 = vsub.f32 %v7127_v41, %v1796_v49  ;;  %v7192_v18 = vpop.eup %5820  ;;  %5826 = vrcp.f32 %v2366_v21  ;;  %v2404_v47 = vadd.f32 %v2403_v42, %v2402_v25  ;;  %v1807_v37 = vrot.slane %v1806_v8, 2 }
 0x2a8   : > { %v1816_v48 = vrot.slane %v1815_v59, 1  ;;  %5828 = vpow2.f32 %v2214_v45  ;;  %v7198_v32 = vmul.f32 %v7068_v16, %v6961_v34  ;;  %v2380_v23 = vadd.f32 %v2379_v55, %v2378_v50 }
 0x2a9   : > { %5830 = vrcp.f32 %v2387_v19  ;;  %v2412_v33 = vrot.slane %v2411_v9, 2  ;;  %v2423_v44 = vsel %vm1663_vm3, %v7192_v18, 0.0  ;;  %v2212_v27 = vmul.f32 1.442695, %v2130_v36 }
 0x2aa   : > { %9890 = vst [vmem:[#allocation78_spill] sm:$0xff] %v7198_v32  ;;  %v1817_v41 = vmax.f32 %v1815_v59, %v1816_v48  ;;  %v1808_v3 = vmax.f32 %v1806_v8, %v1807_v37  ;;  %3338 = vrot.lane.b32.xlu0 %v7198_v32, %s6073_s5  ;;  %4885 = vst.msk [vmem:[%s7036_s28 + $0x28] sm:$0xff] %vm1663_vm3, %v7198_v32  ;;  %2954 = vrot.lane.b32.xlu1 %v7198_v32, %s6072_s30  ;;  %v2400_v55 = vrot.slane %v2399_v46, 1 }
 0x2ab   : > { %v7211_v34 = vmul.f32 %v7084_v43, %v6963_v26  ;;  %v2393_v16 = vrot.slane %v2392_v20, 1  ;;  %v7216_v50 = vadd.f32 %v6979_v38, %v6863_v15  ;;  %v2405_v25 = vrot.slane %v2404_v47, 2  ;;  %v7229_v43 = vpop.f32.mrb[40].mxu1 }
 0x2ac   : > { %v2133_v59 = vsub.f32 %v7156_v61, %v1817_v41  ;;  %v1809_v22 = vrot.slane %v1808_v3, 1  ;;  %v7223_v29 = vadd.f32 %v6863_v15, %v6984_v1  ;;  %v7227_v26 = vmul.f32 %v7129_v12, %v6973_v40  ;;  %v7257_v19 = vpop.f32.mrb[41].mxu1 }
 0x2ad   : > { %9891 = vst [vmem:[#allocation79_spill] sm:$0xff] %v7211_v34  ;;  %4884 = vst.msk [vmem:[%s7036_s28 + $0x20] sm:$0xff] %vm1663_vm3, %v7211_v34  ;;  %5832 = vrcp.f32 %v2380_v23  ;;  %v2413_v61 = vadd.f32 %v2412_v33, %v2411_v9  ;;  %v2424_v38 = vrot.slane %v2423_v44, 4  ;;  %v1825_v40 = vsel %vm1663_vm3, %v7216_v50, -inf }
 0x2ae   : > { %9892 = vst [vmem:[#allocation80_spill] sm:$0xff] %v7227_v26  ;;  %v7231_v36 = vpop.eup %5822  ;;  %5834 = vpow2.f32 %v2212_v27  ;;  %v2218_v58 = vmul.f32 1.442695, %v2133_v59  ;;  %v1810_v52 = vmax.f32 %v1808_v3, %v1809_v22  ;;  %3146 = vrot.lane.b32.xlu1 %v7198_v32, %s6071_s29  ;;  %2952 = vrot.lane.b32.xlu0 %v7211_v34, %s6072_s30  ;;  %4887 = vst.msk [vmem:[%s7036_s28 + $0x38] sm:$0xff] %vm1663_vm3, %v7227_v26  ;;  %v1826_v12 = vrot.slane %v1825_v40, 4 }
 0x2af   : > { %v2401_v1 = vadd.f32 %v2400_v55, %v2399_v46  ;;  %v2394_v9 = vadd.f32 %v2393_v16, %v2392_v20  ;;  %v1818_v39 = vsel %vm1663_vm3, %v7223_v29, -inf  ;;  %v2406_v13 = vadd.f32 %v2405_v25, %v2404_v47 }
 0x2b0   : > { %v5825_v21 = vpop.eup %5824  ;;  %v2132_v11 = vsub.f32 %v7160_v28, %v1810_v52  ;;  %v1819_v31 = vrot.slane %v1818_v39, 4  ;;  %v7247_v30 = vadd.f32 %v6990_v51, %v6863_v15  ;;  %v2414_v7 = vrot.slane %v2413_v61, 1 }
 0x2b1   : > { %v7249_v42 = vpop.eup %5826  ;;  %v2416_v45 = vsel %vm1663_vm3, %v7231_v36, 0.0  ;;  %v1827_v49 = vmax.f32 %v1825_v40, %v1826_v12  ;;  %v7255_v8 = vadd.f32 %v6863_v15, %v6992_v56  ;;  %v2425_v28 = vadd.f32 %v2424_v38, %v2423_v44  ;;  %v7283_v40 = vpop.f32.mrb[42].mxu1 }
 0x2b2   : > { %v7259_v46 = vpop.eup %5828  ;;  %5836 = vpow2.f32 %v2218_v58  ;;  %v2216_v20 = vmul.f32 1.442695, %v2132_v11  ;;  %v1820_v51 = vmax.f32 %v1818_v39, %v1819_v31  ;;  %3144 = vrot.lane.b32.xlu1 %v7211_v34, %s6071_s29  ;;  %3150 = vrot.lane.b32.xlu0 %v7227_v26, %s6071_s29  ;;  %v1839_v15 = vsel %vm1663_vm3, %v7247_v30, -inf }
 0x2b3   : > { %v7265_v48 = vpop.eup %5830  ;;  %5838 = vrcp.f32 %v2401_v1  ;;  %v1828_v47 = vrot.slane %v1827_v49, 2  ;;  %v1832_v56 = vsel %vm1663_vm3, %v7255_v8, -inf  ;;  %v2407_v37 = vrot.slane %v2406_v13, 1 }
 0x2b4   : > { %v2417_v23 = vrot.slane %v2416_v45, 4  ;;  %5840 = vpow2.f32 %v2216_v20  ;;  %v1821_v33 = vrot.slane %v1820_v51, 2  ;;  %v2437_v41 = vsel %vm1663_vm3, %v7259_v46, 0.0 }
 0x2b5   : > { %v1829_v44 = vmax.f32 %v1827_v49, %v1828_v47  ;;  %v1840_v27 = vrot.slane %v1839_v15, 4  ;;  %v1833_v3 = vrot.slane %v1832_v56, 4  ;;  %5842 = vrcp.f32 %v2394_v9 }
 0x2b6   : > { %v2415_v55 = vadd.f32 %v2414_v7, %v2413_v61  ;;  %v2426_v16 = vrot.slane %v2425_v28, 2  ;;  %v1822_v59 = vmax.f32 %v1820_v51, %v1821_v33  ;;  %3336 = vrot.lane.b32.xlu1 %v7211_v34, %s6073_s5  ;;  %3342 = vrot.lane.b32.xlu0 %v7227_v26, %s6073_s5  ;;  %v7281_v52 = vmul.f32 %v7187_v10, %v6982_v14  ;;  %v7308_v51 = vld [vmem:[%s9681_s1 + $0x58] ss:$0 sm:$0xff] }
 0x2b7   : > { %v7277_v25 = vpop.eup %5832  ;;  %v1830_v22 = vrot.slane %v1829_v44, 1  ;;  %v1841_v38 = vmax.f32 %v1839_v15, %v1840_v27  ;;  %v1834_v58 = vmax.f32 %v1832_v56, %v1833_v3  ;;  %v2408_v1 = vadd.f32 %v2407_v37, %v2406_v13 }
 0x2b8   : > { %9893 = vst [vmem:[#allocation81_spill] sm:$0xff] %v7281_v52  ;;  %v7285_v61 = vpop.eup %5834  ;;  %v2418_v9 = vadd.f32 %v2417_v23, %v2416_v45  ;;  %v2438_v12 = vrot.slane %v2437_v41, 4  ;;  %v1823_v39 = vrot.slane %v1822_v59, 1  ;;  %4886 = vst.msk [vmem:[%s7036_s28 + $0x30] sm:$0xff] %vm1663_vm3, %v7281_v52  ;;  %v7291_v49 = vmul.f32 %v5825_v21, %v7005_v24 }
 0x2b9   : > { %v1831_v11 = vmax.f32 %v1829_v44, %v1830_v22  ;;  %v1842_v31 = vrot.slane %v1841_v38, 2  ;;  %v1835_v7 = vrot.slane %v1834_v58, 2  ;;  %5844 = vrcp.f32 %v2415_v55 }
 0x2ba   : > { %9894 = vst [vmem:[#allocation82_spill] sm:$0xff] %v7291_v49  ;;  %v2427_v14 = vadd.f32 %v2426_v16, %v2425_v28  ;;  %2958 = vrot.lane.b32.xlu1 %v7227_v26, %s6072_s30  ;;  %2956 = vrot.lane.b32.xlu0 %v7281_v52, %s6072_s30  ;;  %v2430_v10 = vsel %vm1663_vm3, %v7285_v61, 0.0  ;;  %v1824_v45 = vmax.f32 %v1822_v59, %v1823_v39  ;;  %4889 = vst.msk [vmem:[%s7036_s28 + $0x48] sm:$0xff] %vm1663_vm3, %v7291_v49 }
 0x2bb   : > { %v2135_v13 = vsub.f32 %v7216_v50, %v1831_v11  ;;  %v1843_v20 = vmax.f32 %v1841_v38, %v1842_v31  ;;  %5846 = vrcp.f32 %v2408_v1  ;;  %v2419_v21 = vrot.slane %v2418_v9, 2  ;;  %v7314_v50 = vpop.f32.mrb[43].mxu1 }
 0x2bc   : > { %v7303_v24 = vpop.eup %5836  ;;  %v1836_v28 = vmax.f32 %v1834_v58, %v1835_v7  ;;  %v7312_v47 = vadd.f32 %v7308_v51, %v6999_v0  ;;  %v2439_v56 = vadd.f32 %v2438_v12, %v2437_v41  ;;  %v2134_v23 = vsub.f32 %v7223_v29, %v1824_v45  ;;  %v7325_v16 = vpop.f32.mrb[44].mxu1 }
 0x2bd   : > { %v5839_v15 = vpop.eup %5838  ;;  %v2222_v37 = vmul.f32 1.442695, %v2135_v13  ;;  %v1844_v33 = vrot.slane %v1843_v20, 1  ;;  %v2428_v27 = vrot.slane %v2427_v14, 1  ;;  %v2431_v3 = vrot.slane %v2430_v10, 4 }
 0x2be   : > { %v7317_v44 = vpop.eup %5840  ;;  %v1837_v55 = vrot.slane %v1836_v28, 1  ;;  %3148 = vrot.lane.b32.xlu1 %v7281_v52, %s6071_s29  ;;  %3340 = vrot.lane.b32.xlu0 %v7281_v52, %s6073_s5  ;;  %v1853_v0 = vsel %vm1663_vm3, %v7312_v47, -inf  ;;  %v2451_v29 = vsel %vm1663_vm3, %v7303_v24, 0.0  ;;  %v2220_v41 = vmul.f32 1.442695, %v2134_v23 }
 0x2bf   : > { %5848 = vpow2.f32 %v2222_v37  ;;  %v5843_v59 = vpop.eup %5842  ;;  %v7329_v22 = vadd.f32 %v2419_v21, %v2418_v9  ;;  %v2444_v38 = vsel %vm1663_vm3, %v7317_v44, 0.0  ;;  %v1845_v58 = vmax.f32 %v1843_v20, %v1844_v33 }
 0x2c0   : > { %v1838_v1 = vmax.f32 %v1836_v28, %v1837_v55  ;;  %v2440_v12 = vrot.slane %v2439_v56, 2  ;;  %5850 = vpow2.f32 %v2220_v41  ;;  %v1854_v39 = vrot.slane %v1853_v0, 4 }
 0x2c1   : > { %v7335_v11 = vadd.f32 %v7308_v51, %v7001_v57  ;;  %v7337_v31 = vadd.f32 %v2428_v27, %v2427_v14  ;;  %v2432_v7 = vadd.f32 %v2431_v3, %v2430_v10  ;;  %v2452_v13 = vrot.slane %v2451_v29, 4 }
 0x2c2   : > { %v2137_v9 = vsub.f32 %v7247_v30, %v1845_v58  ;;  %3346 = vrot.lane.b32.xlu0 %v7291_v49, %s6073_s5  ;;  %2962 = vrot.lane.b32.xlu1 %v7291_v49, %s6072_s30  ;;  %v2445_v45 = vrot.slane %v2444_v38, 4  ;;  %v1855_v20 = vmax.f32 %v1853_v0, %v1854_v39  ;;  %v7348_v57 = vmul.f32 %v7249_v42, %v7026_v4 }
 0x2c3   : > { %v1846_v21 = vsel %vm1663_vm3, %v7335_v11, -inf  ;;  %v5845_v14 = vpop.eup %5844  ;;  %v2421_v10 = vrot.slane %v7329_v22, 1  ;;  %v2136_v30 = vsub.f32 %v7255_v8, %v1838_v1  ;;  %v7352_v23 = vadd.f32 %v2440_v12, %v2439_v56 }
 0x2c4   : > { %9895 = vst [vmem:[#allocation83_spill] sm:$0xff] %v7348_v57  ;;  %v2226_v28 = vmul.f32 1.442695, %v2137_v9  ;;  %v1847_v37 = vrot.slane %v1846_v21, 4  ;;  %v1856_v33 = vrot.slane %v1855_v20, 2  ;;  %4888 = vst.msk [vmem:[%s7036_s28 + $0x40] sm:$0xff] %vm1663_vm3, %v7348_v57  ;;  %v7359_v27 = vmul.f32 %v7265_v48, %v7074_v63 }
 0x2c5   : > { %v7363_v4 = vmul.f32 %v7277_v25, %v7099_v5  ;;  %v7365_v42 = vpop.eup %5846  ;;  %v2433_v8 = vrot.slane %v2432_v7, 2  ;;  %v2453_v3 = vadd.f32 %v2452_v13, %v2451_v29  ;;  %v7373_v56 = vadd.f32 %v7308_v51, %v7015_v54  ;;  %v7375_v63 = vpop.f32.mrb[45].mxu1 }
 0x2c6   : > { %9896 = vst [vmem:[#allocation84_spill] sm:$0xff] %v7359_v27  ;;  %v1848_v55 = vmax.f32 %v1846_v21, %v1847_v37  ;;  %3154 = vrot.lane.b32.xlu1 %v7291_v49, %s6071_s29  ;;  %2960 = vrot.lane.b32.xlu0 %v7348_v57, %s6072_s30  ;;  %v2446_v5 = vadd.f32 %v2445_v45, %v2444_v38  ;;  %4891 = vst.msk [vmem:[%s7036_s28 + $0x58] sm:$0xff] %vm1663_vm3, %v7359_v27  ;;  %5852 = vpow2.f32 %v2226_v28  ;;  %v7416_v37 = vpop.f32.mrb[46].mxu1 }
 0x2c7   : > { %9897 = vst [vmem:[#allocation85_spill] sm:$0xff] %v7363_v4  ;;  %v1857_v48 = vmax.f32 %v1855_v20, %v1856_v33  ;;  %4890 = vst.msk [vmem:[%s7036_s28 + $0x50] sm:$0xff] %vm1663_vm3, %v7363_v4  ;;  %v7385_v25 = vadd.f32 %v7308_v51, %v7018_v2  ;;  %v7388_v0 = vmul.f32 %v5839_v15, %v7136_v17  ;;  %v2224_v54 = vmul.f32 1.442695, %v2136_v30 }
 0x2c8   : > { %v1849_v29 = vrot.slane %v1848_v55, 2  ;;  %v1867_v41 = vsel %vm1663_vm3, %v7373_v56, -inf  ;;  %v7400_v2 = vmul.f32 %v5843_v59, %v7162_v60  ;;  %v2434_v17 = vadd.f32 %v2433_v8, %v2432_v7 }
 0x2c9   : > { %9898 = vst [vmem:[#allocation86_spill] sm:$0xff] %v7388_v0  ;;  %v7392_v38 = vpop.eup %5848  ;;  %v1858_v58 = vrot.slane %v1857_v48, 1  ;;  %v1868_v1 = vrot.slane %v1867_v41, 4  ;;  %v1860_v12 = vsel %vm1663_vm3, %v7385_v25, -inf  ;;  %4893 = vst.msk [vmem:[%s7036_s28 + $0x68] sm:$0xff] %vm1663_vm3, %v7388_v0  ;;  %v2454_v45 = vrot.slane %v2453_v3, 2 }
 0x2ca   : > { %9899 = vst [vmem:[#allocation87_spill] sm:$0xff] %v7400_v2  ;;  %v2465_v15 = vsel %vm1663_vm3, %v7392_v38, 0.0  ;;  %v1850_v39 = vmax.f32 %v1848_v55, %v1849_v29  ;;  %3344 = vrot.lane.b32.xlu1 %v7348_v57, %s6073_s5  ;;  %3152 = vrot.lane.b32.xlu0 %v7348_v57, %s6071_s29  ;;  %v1861_v13 = vrot.slane %v1860_v12, 4  ;;  %v7408_v9 = vpop.eup %5850  ;;  %4892 = vst.msk [vmem:[%s7036_s28 + $0x60] sm:$0xff] %vm1663_vm3, %v7400_v2  ;;  %v2447_v59 = vrot.slane %v2446_v5, 2 }
 0x2cb   : > { %v1859_v20 = vmax.f32 %v1857_v48, %v1858_v58  ;;  %v1869_v21 = vmax.f32 %v1867_v41, %v1868_v1  ;;  %v7414_v60 = vmul.f32 %v5845_v14, %v7177_v35  ;;  %v2466_v7 = vrot.slane %v2465_v15, 4 }
 0x2cc   : > { %v1851_v28 = vrot.slane %v1850_v39, 1  ;;  %v1862_v30 = vmax.f32 %v1860_v12, %v1861_v13  ;;  %v2458_v33 = vsel %vm1663_vm3, %v7408_v9, 0.0  ;;  %5854 = vpow2.f32 %v2224_v54 }
 0x2cd   : > { %9900 = vst [vmem:[#allocation88_spill] sm:$0xff] %v7414_v60  ;;  %v2139_v8 = vsub.f32 %v7312_v47, %v1859_v20  ;;  %v1870_v55 = vrot.slane %v1869_v21, 2  ;;  %4895 = vst.msk [vmem:[%s7036_s28 + $0x78] sm:$0xff] %vm1663_vm3, %v7414_v60  ;;  %v2442_v48 = vrot.slane %v7352_v23, 1  ;;  %v2435_v35 = vrot.slane %v2434_v17, 1 }
 0x2ce   : > { %3158 = vrot.lane.b32.xlu0 %v7359_v27, %s6071_s29  ;;  %2966 = vrot.lane.b32.xlu1 %v7359_v27, %s6072_s30  ;;  %v1863_v14 = vrot.slane %v1862_v30, 2  ;;  %v7431_v29 = vadd.f32 %v7308_v51, %v7030_v53  ;;  %v1852_v47 = vmax.f32 %v1850_v39, %v1851_v28  ;;  %v7435_v58 = vadd.f32 %v7308_v51, %v7038_v6 }
 0x2cf   : > { %v2230_v54 = vmul.f32 1.442695, %v2139_v8  ;;  %v1871_v41 = vmax.f32 %v1869_v21, %v1870_v55  ;;  %v2422_v1 = vadd.f32 %v2421_v10, %v7329_v22  ;;  %v2467_v12 = vadd.f32 %v2466_v7, %v2465_v15 }
 0x2d0   : > { %v2459_v13 = vrot.slane %v2458_v33, 4  ;;  %v1881_v20 = vsel %vm1663_vm3, %v7431_v29, -inf  ;;  %5856 = vrcp.f32 %v7337_v31  ;;  %v2455_v53 = vadd.f32 %v2454_v45, %v2453_v3  ;;  %v7443_v8 = vpop.eup %5852  ;;  %v7453_v3 = vpop.f32.mrb[47].mxu1 }
 0x2d1   : > { %v2448_v57 = vadd.f32 %v2447_v59, %v2446_v5  ;;  %v2443_v39 = vadd.f32 %v2442_v48, %v7352_v23  ;;  %v2436_v21 = vadd.f32 %v2435_v35, %v2434_v17  ;;  %v1872_v6 = vrot.slane %v1871_v41, 1 }
 0x2d2   : > { %3350 = vrot.lane.b32.xlu0 %v7359_v27, %s6073_s5  ;;  %3156 = vrot.lane.b32.xlu1 %v7363_v4, %s6071_s29  ;;  %v1864_v22 = vmax.f32 %v1862_v30, %v1863_v14  ;;  %5858 = vpow2.f32 %v2230_v54  ;;  %v2138_v10 = vsub.f32 %v7335_v11, %v1852_v47  ;;  %v1882_v15 = vrot.slane %v1881_v20, 4 }
 0x2d3   : > { %v1874_v31 = vsel %vm1663_vm3, %v7435_v58, -inf  ;;  %5860 = vrcp.f32 %v2422_v1  ;;  %v2468_v23 = vrot.slane %v2467_v12, 2  ;;  %v2460_v5 = vadd.f32 %v2459_v13, %v2458_v33  ;;  %v7464_v1 = vpop.f32.mrb[48].mxu1 }
 0x2d4   : > { %v1873_v17 = vmax.f32 %v1871_v41, %v1872_v6  ;;  %v2456_v45 = vrot.slane %v2455_v53, 1  ;;  %v2449_v59 = vrot.slane %v2448_v57, 1  ;;  %v2479_v7 = vsel %vm1663_vm3, %v7443_v8, 0.0 }
 0x2d5   : > { %v1883_v28 = vmax.f32 %v1881_v20, %v1882_v15  ;;  %5862 = vrcp.f32 %v2443_v39  ;;  %v1865_v11 = vrot.slane %v1864_v22, 1  ;;  %v1875_v55 = vrot.slane %v1874_v31, 4  ;;  %v9901_v39 = vld [vmem:[#allocation76_spill] sm:$0xff] }
 0x2d6   : > { %v2141_v30 = vsub.f32 %v7373_v56, %v1873_v17  ;;  %2964 = vrot.lane.b32.xlu0 %v7363_v4, %s6072_s30  ;;  %2970 = vrot.lane.b32.xlu1 %v7388_v0, %s6072_s30  ;;  %v7462_v48 = vpop.eup %5854  ;;  %5864 = vrcp.f32 %v2436_v21  ;;  %v2228_v33 = vmul.f32 1.442695, %v2138_v10  ;;  %v2469_v14 = vadd.f32 %v2468_v23, %v2467_v12  ;;  %v9904_v23 = vld [vmem:[#allocation68_spill] sm:$0xff] }
 0x2d7   : > { %v1884_v35 = vrot.slane %v1883_v28, 2  ;;  %v2461_v54 = vrot.slane %v2460_v5, 2  ;;  %v2480_v47 = vrot.slane %v2479_v7, 4  ;;  %v1876_v41 = vmax.f32 %v1874_v31, %v1875_v55 }
 0x2d8   : > { %v2457_v56 = vadd.f32 %v2456_v45, %v2455_v53  ;;  %v2450_v13 = vadd.f32 %v2449_v59, %v2448_v57  ;;  %v7468_v6 = vmul.f32 %v7365_v42, %v9901_v39  ;;  %v2472_v15 = vsel %vm1663_vm3, %v7462_v48, 0.0  ;;  %v9903_v42 = vld [vmem:[#allocation67_spill] sm:$0xff]  ;;  %v7493_v39 = vpop.f32.mrb[49].mxu1 }
 0x2d9   : > { %v1885_v20 = vmax.f32 %v1883_v28, %v1884_v35  ;;  %v2234_v21 = vmul.f32 1.442695, %v2141_v30  ;;  %v1866_v10 = vmax.f32 %v1864_v22, %v1865_v11  ;;  %v1877_v12 = vrot.slane %v1876_v41, 2 }
 0x2da   : > { %9902 = vst [vmem:[#allocation76_spill] sm:$0xff] %v7468_v6  ;;  %3348 = vrot.lane.b32.xlu0 %v7363_v4, %s6073_s5  ;;  %3354 = vrot.lane.b32.xlu1 %v7388_v0, %s6073_s5  ;;  %v5857_v31 = vpop.eup %5856  ;;  %5866 = vpow2.f32 %v2228_v33  ;;  %4894 = vst.msk [vmem:[%s7036_s28 + $0x70] sm:$0xff] %vm1663_vm3, %v7468_v6  ;;  %v7481_v53 = vadd.f32 %v7308_v51, %v9903_v42  ;;  %v7485_v22 = vadd.f32 %v7308_v51, %v9904_v23 }
 0x2db   : > { %v1886_v57 = vrot.slane %v1885_v20, 1  ;;  %v2470_v17 = vrot.slane %v2469_v14, 1  ;;  %v2462_v45 = vadd.f32 %v2461_v54, %v2460_v5  ;;  %v2481_v59 = vadd.f32 %v2480_v47, %v2479_v7 }
 0x2dc   : > { %v1878_v28 = vmax.f32 %v1876_v41, %v1877_v12  ;;  %v7487_v30 = vpop.eup %5858  ;;  %v2473_v11 = vrot.slane %v2472_v15, 4  ;;  %v1895_v33 = vsel %vm1663_vm3, %v7481_v53, -inf  ;;  %v1888_v35 = vsel %vm1663_vm3, %v7485_v22, -inf }
 0x2dd   : > { %v1887_v55 = vmax.f32 %v1885_v20, %v1886_v57  ;;  %v5861_v42 = vpop.eup %5860  ;;  %5868 = vpow2.f32 %v2234_v21  ;;  %v2140_v23 = vsub.f32 %v7385_v25, %v1866_v10  ;;  %v1896_v7 = vrot.slane %v1895_v33, 4 }
 0x2de   : > { %3162 = vrot.lane.b32.xlu0 %v7388_v0, %s6071_s29  ;;  %3352 = vrot.lane.b32.xlu1 %v7400_v2, %s6073_s5  ;;  %v1879_v5 = vrot.slane %v1878_v28, 1  ;;  %5870 = vrcp.f32 %v2457_v56  ;;  %v1889_v47 = vrot.slane %v1888_v35, 4  ;;  %v2471_v20 = vadd.f32 %v2470_v17, %v2469_v14  ;;  %v7506_v56 = vpop.f32.mrb[50].mxu1 }
 0x2df   : > { %v2143_v54 = vsub.f32 %v7431_v29, %v1887_v55  ;;  %v5863_v41 = vpop.eup %5862  ;;  %v2463_v12 = vrot.slane %v2462_v45, 1  ;;  %v2493_v21 = vsel %vm1663_vm3, %v7487_v30, 0.0  ;;  %v1897_v57 = vmax.f32 %v1895_v33, %v1896_v7 }
 0x2e0   : > { %v5865_v25 = vpop.eup %5864  ;;  %v2482_v10 = vrot.slane %v2481_v59, 2  ;;  %v1880_v0 = vmax.f32 %v1878_v28, %v1879_v5  ;;  %v1890_v4 = vmax.f32 %v1888_v35, %v1889_v47  ;;  %v7504_v27 = vmul.f32 %v5857_v31, %v7192_v18  ;;  %v9907_v18 = vld [vmem:[#allocation70_spill] sm:$0xff] }
 0x2e1   : > { %5872 = vrcp.f32 %v2450_v13  ;;  %v2474_v29 = vadd.f32 %v2473_v11, %v2472_v15  ;;  %v2232_v55 = vmul.f32 1.442695, %v2140_v23  ;;  %v7513_v14 = vmul.f32 %v5861_v42, %v7231_v36  ;;  %v9908_v11 = vld [vmem:[#allocation71_spill] sm:$0xff] }
 0x2e2   : > { %9905 = vst [vmem:[#allocation67_spill] sm:$0xff] %v7504_v27  ;;  %2968 = vrot.lane.b32.xlu0 %v7400_v2, %s6072_s30  ;;  %2974 = vrot.lane.b32.xlu1 %v7414_v60, %s6072_s30  ;;  %v2494_v17 = vrot.slane %v2493_v21, 4  ;;  %v2238_v28 = vmul.f32 1.442695, %v2143_v54  ;;  %v1891_v33 = vrot.slane %v1890_v4, 2  ;;  %4897 = vst.msk [vmem:[%s7036_s28 + $0x88] sm:$0xff] %vm1663_vm3, %v7504_v27  ;;  %v7520_v13 = vadd.f32 %v7308_v51, %v9907_v18 }
 0x2e3   : > { %9906 = vst [vmem:[#allocation68_spill] sm:$0xff] %v7513_v14  ;;  %5874 = vrcp.f32 %v2471_v20  ;;  %v2464_v15 = vadd.f32 %v2463_v12, %v2462_v45  ;;  %v1898_v31 = vrot.slane %v1897_v57, 2  ;;  %4896 = vst.msk [vmem:[%s7036_s28 + $0x80] sm:$0xff] %vm1663_vm3, %v7513_v14  ;;  %v7527_v36 = vadd.f32 %v7308_v51, %v9908_v11  ;;  %v7544_v12 = vpop.f32.mrb[51].mxu1 }
 0x2e4   : > { %v7529_v35 = vpop.eup %5866  ;;  %v2483_v42 = vadd.f32 %v2482_v10, %v2481_v59  ;;  %v2142_v23 = vsub.f32 %v7435_v58, %v1880_v0  ;;  %v1892_v5 = vmax.f32 %v1890_v4, %v1891_v33  ;;  %v1909_v7 = vsel %vm1663_vm3, %v7520_v13, -inf  ;;  %9909 = vst [vmem:[#allocation70_spill] sm:$0xff] %v7544_v12 }
 0x2e5   : > { %v2475_v54 = vrot.slane %v2474_v29, 2  ;;  %5876 = vpow2.f32 %v2232_v55  ;;  %v2495_v45 = vadd.f32 %v2494_v17, %v2493_v21  ;;  %v2486_v0 = vsel %vm1663_vm3, %v7529_v35, 0.0 }
 0x2e6   : > { %3160 = vrot.lane.b32.xlu0 %v7400_v2, %s6071_s29  ;;  %3166 = vrot.lane.b32.xlu1 %v7414_v60, %s6071_s29  ;;  %5878 = vpow2.f32 %v2238_v28  ;;  %v1893_v47 = vrot.slane %v1892_v5, 1  ;;  %v1899_v4 = vmax.f32 %v1897_v57, %v1898_v31  ;;  %v1910_v58 = vrot.slane %v1909_v7, 4 }
 0x2e7   : > { %v7538_v20 = vpop.eup %5868  ;;  %v1902_v59 = vsel %vm1663_vm3, %v7527_v36, -inf  ;;  %5880 = vrcp.f32 %v2464_v15  ;;  %v2484_v55 = vrot.slane %v2483_v42, 1  ;;  %v2236_v33 = vmul.f32 1.442695, %v2142_v23 }
 0x2e8   : > { %v5871_v10 = vpop.eup %5870  ;;  %v2476_v21 = vadd.f32 %v2475_v54, %v2474_v29  ;;  %v1894_v17 = vmax.f32 %v1892_v5, %v1893_v47  ;;  %v1911_v57 = vmax.f32 %v1909_v7, %v1910_v58  ;;  %v1903_v28 = vrot.slane %v1902_v59, 4 }
 0x2e9   : > { %v2487_v18 = vrot.slane %v2486_v0, 4  ;;  %v2507_v31 = vsel %vm1663_vm3, %v7538_v20, 0.0  ;;  %v7553_v11 = vmul.f32 %v5863_v41, %v7259_v46  ;;  %v2496_v23 = vrot.slane %v2495_v45, 2  ;;  %v7566_v41 = vpop.f32.mrb[52].mxu1 }
 0x2ea   : > { %3358 = vrot.lane.b32.xlu0 %v7414_v60, %s6073_s5  ;;  %3164 = vrot.lane.b32.xlu1 %v7468_v6, %s6071_s29  ;;  %v1900_v2 = vrot.slane %v1899_v4, 1  ;;  %v1904_v29 = vmax.f32 %v1902_v59, %v1903_v28  ;;  %5882 = vpow2.f32 %v2236_v33  ;;  %v1912_v54 = vrot.slane %v1911_v57, 2  ;;  %9912 = vst [vmem:[#allocation90_spill] sm:$0xff] %v7566_v41 }
 0x2eb   : > { %9910 = vst [vmem:[#allocation71_spill] sm:$0xff] %v7553_v11  ;;  %v5873_v15 = vpop.eup %5872  ;;  %4899 = vst.msk [vmem:[%s7036_s28 + $0x98] sm:$0xff] %vm1663_vm3, %v7553_v11  ;;  %v7559_v5 = vmul.f32 %v5865_v25, %v7285_v61  ;;  %v2485_v47 = vadd.f32 %v2484_v55, %v2483_v42  ;;  %v2477_v58 = vrot.slane %v2476_v21, 1  ;;  %v2508_v60 = vrot.slane %v2507_v31, 4 }
 0x2ec   : > { %v2144_v46 = vsub.f32 %v7485_v22, %v1894_v17  ;;  %v2488_v59 = vadd.f32 %v2487_v18, %v2486_v0  ;;  %v1905_v33 = vrot.slane %v1904_v29, 2  ;;  %v2497_v25 = vadd.f32 %v2496_v23, %v2495_v45  ;;  %v7582_v0 = vpop.f32.mrb[53].mxu1 }
 0x2ed   : > { %9911 = vst [vmem:[#allocation89_spill] sm:$0xff] %v7559_v5  ;;  %v5875_v7 = vpop.eup %5874  ;;  %4898 = vst.msk [vmem:[%s7036_s28 + $0x90] sm:$0xff] %vm1663_vm3, %v7559_v5  ;;  %v1901_v42 = vmax.f32 %v1899_v4, %v1900_v2  ;;  %v1913_v22 = vmax.f32 %v1911_v57, %v1912_v54  ;;  %v7576_v17 = vmul.f32 %v5871_v10, %v7303_v24  ;;  %5884 = vrcp.f32 %v2485_v47  ;;  %v9915_v24 = vld [vmem:[#allocation72_spill] sm:$0xff]  ;;  %v7629_v49 = vpop.f32.mrb[54].mxu1 }
 0x2ee   : > { %3356 = vrot.lane.b32.xlu1 %v7468_v6, %s6073_s5  ;;  %2972 = vrot.lane.b32.xlu0 %v7468_v6, %s6072_s30  ;;  %v2478_v28 = vadd.f32 %v2477_v58, %v2476_v21  ;;  %v2509_v6 = vadd.f32 %v2508_v60, %v2507_v31  ;;  %v2240_v52 = vmul.f32 1.442695, %v2144_v46  ;;  %9914 = vst [vmem:[#allocation92_spill] sm:$0xff] %v7582_v0  ;;  %v2489_v2 = vrot.slane %v2488_v59, 2  ;;  %v9916_v31 = vld [vmem:[#allocation75_spill] sm:$0xff]  ;;  %v7667_v12 = vpop.f32.mrb[55].mxu1 }
 0x2ef   : > { %v7571_v61 = vpop.eup %5876  ;;  %9913 = vst [vmem:[#allocation91_spill] sm:$0xff] %v7576_v17  ;;  %v1906_v57 = vmax.f32 %v1904_v29, %v1905_v33  ;;  %4901 = vst.msk [vmem:[%s7036_s28 + $0xa8] sm:$0xff] %vm1663_vm3, %v7576_v17  ;;  %v7591_v60 = vadd.f32 %v7308_v51, %v9915_v24  ;;  %v2498_v10 = vrot.slane %v2497_v25, 1  ;;  %v2145_v18 = vsub.f32 %v7481_v53, %v1901_v42 }
 0x2f0   : > { %v7573_v55 = vpop.eup %5878  ;;  %v2500_v4 = vsel %vm1663_vm3, %v7571_v61, 0.0  ;;  %v7598_v23 = vadd.f32 %v7308_v51, %v9916_v31  ;;  %v1914_v29 = vrot.slane %v1913_v22, 1  ;;  %v7603_v47 = vmul.f32 %v5873_v15, %v7317_v44 }
 0x2f1   : > { %v5881_v45 = vpop.eup %5880  ;;  %v2521_v21 = vsel %vm1663_vm3, %v7573_v55, 0.0  ;;  %v1923_v54 = vsel %vm1663_vm3, %v7591_v60, -inf  ;;  %v7606_v58 = vmul.f32 %v5875_v7, %v7392_v38  ;;  %v2510_v46 = vrot.slane %v2509_v6, 2  ;;  %v9920_v38 = vld [vmem:[#allocation77_spill] sm:$0xff] }
 0x2f2   : > { %3170 = vrot.lane.b32.xlu0 %v7504_v27, %s6071_s29  ;;  %2978 = vrot.lane.b32.xlu1 %v7504_v27, %s6072_s30  ;;  %9917 = vst [vmem:[#allocation72_spill] sm:$0xff] %v7603_v47  ;;  %v2501_v33 = vrot.slane %v2500_v4, 4  ;;  %5886 = vpow2.f32 %v2240_v52  ;;  %v1924_v53 = vrot.slane %v1923_v54, 4  ;;  %v1907_v24 = vrot.slane %v1906_v57, 1  ;;  %4900 = vst.msk [vmem:[%s7036_s28 + $0xa0] sm:$0xff] %vm1663_vm3, %v7603_v47 }
 0x2f3   : > { %9918 = vst [vmem:[#allocation75_spill] sm:$0xff] %v7606_v58  ;;  %v1916_v44 = vsel %vm1663_vm3, %v7598_v23, -inf  ;;  %4903 = vst.msk [vmem:[%s7036_s28 + $0xb8] sm:$0xff] %vm1663_vm3, %v7606_v58  ;;  %v7623_v52 = vmul.f32 %v5881_v45, %v7408_v9  ;;  %v7627_v15 = vadd.f32 %v7308_v51, %v9920_v38  ;;  %v2490_v7 = vadd.f32 %v2489_v2, %v2488_v59 }
 0x2f4   : > { %v7612_v42 = vpop.eup %5882  ;;  %v2522_v31 = vrot.slane %v2521_v21, 4  ;;  %v1925_v34 = vmax.f32 %v1923_v54, %v1924_v53  ;;  %9921 = vst [vmem:[#allocation77_spill] sm:$0xff] %v7629_v49  ;;  %v1915_v32 = vmax.f32 %v1913_v22, %v1914_v29  ;;  %v1917_v26 = vrot.slane %v1916_v44, 4 }
 0x2f5   : > { %9919 = vst [vmem:[#allocation93_spill] sm:$0xff] %v7623_v52  ;;  %4902 = vst.msk [vmem:[%s7036_s28 + $0xb0] sm:$0xff] %vm1663_vm3, %v7623_v52  ;;  %v1937_v0 = vsel %vm1663_vm3, %v7627_v15, -inf  ;;  %v7638_v9 = vadd.f32 %v7308_v51, %v7194_v62  ;;  %v2499_v45 = vadd.f32 %v2498_v10, %v2497_v25  ;;  %v2502_v38 = vadd.f32 %v2501_v33, %v2500_v4 }
 0x2f6   : > { %3362 = vrot.lane.b32.xlu1 %v7504_v27, %s6073_s5  ;;  %2976 = vrot.lane.b32.xlu0 %v7513_v14, %s6072_s30  ;;  %v2242_v27 = vmul.f32 1.442695, %v2145_v18  ;;  %v2514_v59 = vsel %vm1663_vm3, %v7612_v42, 0.0  ;;  %v1926_v22 = vrot.slane %v1925_v34, 2  ;;  %5888 = vrcp.f32 %v2478_v28 }
 0x2f7   : > { %v2511_v2 = vadd.f32 %v2510_v46, %v2509_v6  ;;  %v1908_v18 = vmax.f32 %v1906_v57, %v1907_v24  ;;  %v1918_v29 = vmax.f32 %v1916_v44, %v1917_v26  ;;  %v5885_v54 = vpop.eup %5884  ;;  %v2523_v53 = vadd.f32 %v2522_v31, %v2521_v21 }
 0x2f8   : > { %5890 = vpow2.f32 %v2242_v27  ;;  %v1927_v4 = vmax.f32 %v1925_v34, %v1926_v22  ;;  %v1938_v10 = vrot.slane %v1937_v0, 4  ;;  %v2515_v33 = vrot.slane %v2514_v59, 4 }
 0x2f9   : > { %v2147_v49 = vsub.f32 %v7520_v13, %v1915_v32  ;;  %v1919_v41 = vrot.slane %v1918_v29, 2  ;;  %5892 = vrcp.f32 %v2499_v45  ;;  %v2491_v6 = vrot.slane %v2490_v7, 1 }
 0x2fa   : > { %3168 = vrot.lane.b32.xlu1 %v7513_v14, %s6071_s29  ;;  %3360 = vrot.lane.b32.xlu0 %v7513_v14, %s6073_s5  ;;  %v1930_v14 = vsel %vm1663_vm3, %v7638_v9, -inf  ;;  %v2503_v28 = vrot.slane %v2502_v38, 2  ;;  %v1928_v26 = vrot.slane %v1927_v4, 1  ;;  %v2512_v27 = vrot.slane %v2511_v2, 1 }
 0x2fb   : > { %v2146_v34 = vsub.f32 %v7527_v36, %v1908_v18  ;;  %v1920_v57 = vmax.f32 %v1918_v29, %v1919_v41  ;;  %v1939_v21 = vmax.f32 %v1937_v0, %v1938_v10  ;;  %v2524_v13 = vrot.slane %v2523_v53, 2  ;;  %v7680_v29 = vpop.f32.mrb[56].mxu1 }
 0x2fc   : > { %v7658_v32 = vpop.eup %5886  ;;  %v1931_v44 = vrot.slane %v1930_v14, 4  ;;  %v7665_v31 = vmul.f32 %v5885_v54, %v7443_v8  ;;  %v2516_v45 = vadd.f32 %v2515_v33, %v2514_v59  ;;  %v2246_v22 = vmul.f32 1.442695, %v2147_v49 }
 0x2fd   : > { %v7646_v62 = vpop.permute.xlu1 %2946  ;;  %v7648_v25 = vpop.permute.xlu0 %3138  ;;  %v2492_v36 = vadd.f32 %v2491_v6, %v2490_v7  ;;  %v1940_v41 = vrot.slane %v1939_v21, 2  ;;  %v7678_v8 = vadd.f32 %v7308_v51, %v7229_v43  ;;  %v2513_v49 = vadd.f32 %v2512_v27, %v2511_v2 }
 0x2fe   : > { %9922 = vst [vmem:[#allocation94_spill] sm:$0xff] %v7646_v62  ;;  %9923 = vst [vmem:[#allocation95_spill] sm:$0xff] %v7648_v25  ;;  %2982 = vrot.lane.b32.xlu1 %v7553_v11, %s6072_s30  ;;  %3174 = vrot.lane.b32.xlu0 %v7553_v11, %s6071_s29  ;;  %v1929_v25 = vmax.f32 %v1927_v4, %v1928_v26  ;;  %v1921_v62 = vrot.slane %v1920_v57, 1  ;;  %v2504_v0 = vadd.f32 %v2503_v28, %v2502_v38 }
 0x2ff   : > { %9926 = vst [vmem:[#allocation98_spill] sm:$0xff] %v7665_v31  ;;  %4905 = vst.msk [vmem:[%s7036_s28 + $0xc8] sm:$0xff] %vm1663_vm3, %v7665_v31  ;;  %v2244_v59 = vmul.f32 1.442695, %v2146_v34  ;;  %v2525_v7 = vadd.f32 %v2524_v13, %v2523_v53  ;;  %v2528_v54 = vsel %vm1663_vm3, %v7658_v32, 0.0  ;;  %v1941_v33 = vmax.f32 %v1939_v21, %v1940_v41 }
 0x300   : > { %v1922_v18 = vmax.f32 %v1920_v57, %v1921_v62  ;;  %v1932_v6 = vmax.f32 %v1930_v14, %v1931_v44  ;;  %v5889_v26 = vpop.eup %5888  ;;  %5894 = vpow2.f32 %v2246_v22  ;;  %v2149_v43 = vsub.f32 %v7591_v60, %v1929_v25 }
 0x301   : > { %v7660_v46 = vpop.permute.xlu1 %3330  ;;  %v7662_v24 = vpop.permute.xlu0 %2944  ;;  %5896 = vrcp.f32 %v2492_v36  ;;  %v1951_v53 = vsel %vm1663_vm3, %v7678_v8, -inf  ;;  %v2529_v14 = vrot.slane %v2528_v54, 4  ;;  %v1942_v62 = vrot.slane %v1941_v33, 1 }
 0x302   : > { %9924 = vst [vmem:[#allocation96_spill] sm:$0xff] %v7660_v46  ;;  %9925 = vst [vmem:[#allocation97_spill] sm:$0xff] %v7662_v24  ;;  %3172 = vrot.lane.b32.xlu1 %v7559_v5, %s6071_s29  ;;  %3366 = vrot.lane.b32.xlu0 %v7553_v11, %s6073_s5  ;;  %v2517_v11 = vrot.slane %v2516_v45, 2  ;;  %v7689_v38 = vpop.eup %5890  ;;  %v2148_v2 = vsub.f32 %v7598_v23, %v1922_v18  ;;  %5898 = vpow2.f32 %v2244_v59  ;;  %v2505_v60 = vrot.slane %v2504_v0, 1 }
 0x303   : > { %v5893_v28 = vpop.eup %5892  ;;  %5900 = vrcp.f32 %v2513_v49  ;;  %v2526_v25 = vrot.slane %v2525_v7, 1  ;;  %v1933_v27 = vrot.slane %v1932_v6, 2  ;;  %v2250_v57 = vmul.f32 1.442695, %v2149_v43 }
 0x304   : > { %v2518_v34 = vadd.f32 %v2517_v11, %v2516_v45  ;;  %v1943_v21 = vmax.f32 %v1941_v33, %v1942_v62  ;;  %v1952_v13 = vrot.slane %v1951_v53, 4  ;;  %v2535_v44 = vsel %vm1663_vm3, %v7689_v38, 0.0 }
 0x305   : > { %v7684_v4 = vpop.permute.xlu1 %3136  ;;  %v7686_v10 = vpop.permute.xlu0 %3328  ;;  %v2248_v22 = vmul.f32 1.442695, %v2148_v2  ;;  %v1934_v41 = vmax.f32 %v1932_v6, %v1933_v27  ;;  %v2530_v11 = vadd.f32 %v2529_v14, %v2528_v54  ;;  %v7710_v49 = vadd.f32 %v7308_v51, %v7257_v19 }
 0x306   : > { %9927 = vst [vmem:[#allocation99_spill] sm:$0xff] %v7684_v4  ;;  %9928 = vst [vmem:[#allocation100_spill] sm:$0xff] %v7686_v10  ;;  %2986 = vrot.lane.b32.xlu1 %v7576_v17, %s6072_s30  ;;  %2980 = vrot.lane.b32.xlu0 %v7559_v5, %s6072_s30  ;;  %v1953_v45 = vmax.f32 %v1951_v53, %v1952_v13  ;;  %v7713_v59 = vmul.f32 %v5889_v26, %v7462_v48  ;;  %5902 = vpow2.f32 %v2250_v57  ;;  %v7722_v19 = vpop.f32.mrb[57].mxu1 }
 0x307   : > { %v2506_v18 = vadd.f32 %v2505_v60, %v2504_v0  ;;  %v2151_v33 = vsub.f32 %v7627_v15, %v1943_v21  ;;  %v1935_v43 = vrot.slane %v1934_v41, 1  ;;  %v7717_v2 = vmul.f32 %v5893_v28, %v7487_v30 }
 0x308   : > { %9931 = vst [vmem:[#allocation103_spill] sm:$0xff] %v7713_v59  ;;  %v2527_v62 = vadd.f32 %v2526_v25, %v2525_v7  ;;  %v1954_v54 = vrot.slane %v1953_v45, 2  ;;  %4904 = vst.msk [vmem:[%s7036_s28 + $0xc0] sm:$0xff] %vm1663_vm3, %v7713_v59  ;;  %v2536_v6 = vrot.slane %v2535_v44, 4  ;;  %5904 = vpow2.f32 %v2248_v22 }
 0x309   : > { %v7704_v23 = vpop.permute.xlu1 %2950  ;;  %v7706_v36 = vpop.permute.xlu0 %3142  ;;  %9932 = vst [vmem:[#allocation104_spill] sm:$0xff] %v7717_v2  ;;  %v1936_v48 = vmax.f32 %v1934_v41, %v1935_v43  ;;  %v1944_v30 = vsel %vm1663_vm3, %v7710_v49, -inf  ;;  %4907 = vst.msk [vmem:[%s7036_s28 + $0xd8] sm:$0xff] %vm1663_vm3, %v7717_v2  ;;  %v2531_v0 = vrot.slane %v2530_v11, 2  ;;  %v7737_v53 = vadd.f32 %v7308_v51, %v7283_v40 }
 0x30a   : > { %3368 = vrot.lane.b32.xlu1 %v7603_v47, %s6073_s5  ;;  %3364 = vrot.lane.b32.xlu0 %v7559_v5, %s6073_s5  ;;  %9929 = vst [vmem:[#allocation101_spill] sm:$0xff] %v7704_v23  ;;  %9930 = vst [vmem:[#allocation102_spill] sm:$0xff] %v7706_v36  ;;  %v2519_v5 = vrot.slane %v2518_v34, 1  ;;  %v7733_v15 = vpop.eup %5894  ;;  %v1955_v7 = vmax.f32 %v1953_v45, %v1954_v54  ;;  %v1945_v26 = vrot.slane %v1944_v30, 4  ;;  %5906 = vrcp.f32 %v2506_v18 }
 0x30b   : > { %v5897_v14 = vpop.eup %5896  ;;  %v2254_v28 = vmul.f32 1.442695, %v2151_v33  ;;  %v2150_v60 = vsub.f32 %v7638_v9, %v1936_v48  ;;  %v7746_v57 = vadd.f32 %v7308_v51, %v7314_v50  ;;  %5908 = vrcp.f32 %v2527_v62 }
 0x30c   : > { %v7748_v21 = vpop.eup %5898  ;;  %v1956_v13 = vrot.slane %v1955_v7, 1  ;;  %v1946_v22 = vmax.f32 %v1944_v30, %v1945_v26  ;;  %v2520_v41 = vadd.f32 %v2519_v5, %v2518_v34  ;;  %v2537_v45 = vadd.f32 %v2536_v6, %v2535_v44 }
 0x30d   : > { %v7740_v25 = vpop.permute.xlu1 %3334  ;;  %v7742_v27 = vpop.permute.xlu0 %2948  ;;  %v2549_v18 = vsel %vm1663_vm3, %v7733_v15, 0.0  ;;  %v2252_v9 = vmul.f32 1.442695, %v2150_v60  ;;  %v7756_v50 = vadd.f32 %v2531_v0, %v2530_v11  ;;  %v1965_v43 = vsel %vm1663_vm3, %v7737_v53, -inf }
 0x30e   : > { %2990 = vrot.lane.b32.xlu1 %v7606_v58, %s6072_s30  ;;  %3178 = vrot.lane.b32.xlu0 %v7576_v17, %s6071_s29  ;;  %9933 = vst [vmem:[#allocation105_spill] sm:$0xff] %v7740_v25  ;;  %9934 = vst [vmem:[#allocation106_spill] sm:$0xff] %v7742_v27  ;;  %v5901_v40 = vpop.eup %5900  ;;  %v1947_v33 = vrot.slane %v1946_v22, 2  ;;  %v1958_v5 = vsel %vm1663_vm3, %v7746_v57, -inf  ;;  %v2542_v34 = vsel %vm1663_vm3, %v7748_v21, 0.0  ;;  %5910 = vpow2.f32 %v2254_v28 }
 0x30f   : > { %v1957_v44 = vmax.f32 %v1955_v7, %v1956_v13  ;;  %v1966_v62 = vrot.slane %v1965_v43, 4  ;;  %v2550_v54 = vrot.slane %v2549_v18, 4  ;;  %5912 = vpow2.f32 %v2252_v9 }
 0x310   : > { %v1948_v6 = vmax.f32 %v1946_v22, %v1947_v33  ;;  %v1959_v48 = vrot.slane %v1958_v5, 4  ;;  %v2538_v30 = vrot.slane %v2537_v45, 2  ;;  %v7773_v7 = vmul.f32 %v5897_v14, %v7529_v35  ;;  %v7778_v60 = vpop.eup %5902  ;;  %v7780_v33 = vpop.f32.mrb[58].mxu1 }
 0x311   : > { %v7768_v11 = vpop.permute.xlu1 %3140  ;;  %v7770_v0 = vpop.permute.xlu0 %3332  ;;  %v1967_v26 = vmax.f32 %v1965_v43, %v1966_v62  ;;  %v7776_v28 = vmul.f32 %v5901_v40, %v7538_v20  ;;  %v2543_v13 = vrot.slane %v2542_v34, 4  ;;  %v2153_v25 = vsub.f32 %v7678_v8, %v1957_v44 }
 0x312   : > { %3180 = vrot.lane.b32.xlu1 %v7623_v52, %s6071_s29  ;;  %3370 = vrot.lane.b32.xlu0 %v7576_v17, %s6073_s5  ;;  %9935 = vst [vmem:[#allocation107_spill] sm:$0xff] %v7768_v11  ;;  %9936 = vst [vmem:[#allocation108_spill] sm:$0xff] %v7770_v0  ;;  %v1949_v22 = vrot.slane %v1948_v6, 1  ;;  %v1960_v9 = vmax.f32 %v1958_v5, %v1959_v48  ;;  %v7782_v17 = vpop.eup %5904  ;;  %v7793_v35 = vadd.f32 %v7308_v51, %v7325_v16  ;;  %v7795_v20 = vpop.f32.mrb[59].mxu1 }
 0x313   : > { %9937 = vst [vmem:[#allocation109_spill] sm:$0xff] %v7773_v7  ;;  %9938 = vst [vmem:[#allocation110_spill] sm:$0xff] %v7776_v28  ;;  %v1968_v36 = vrot.slane %v1967_v26, 2  ;;  %5914 = vrcp.f32 %v2520_v41  ;;  %v2551_v14 = vadd.f32 %v2550_v54, %v2549_v18  ;;  %v2539_v62 = vadd.f32 %v2538_v30, %v2537_v45 }
 0x314   : > { %4906 = vst.msk [vmem:[%s7036_s28 + $0xd0] sm:$0xff] %vm1663_vm3, %v7773_v7  ;;  %4909 = vst.msk [vmem:[%s7036_s28 + $0xe8] sm:$0xff] %vm1663_vm3, %v7776_v28  ;;  %v1950_v40 = vmax.f32 %v1948_v6, %v1949_v22  ;;  %v1961_v43 = vrot.slane %v1960_v9, 2  ;;  %v5907_v5 = vpop.eup %5906  ;;  %v2533_v8 = vrot.slane %v7756_v50, 1  ;;  %v1979_v16 = vsel %vm1663_vm3, %v7793_v35, -inf }
 0x315   : > { %v1969_v44 = vmax.f32 %v1967_v26, %v1968_v36  ;;  %v5909_v48 = vpop.eup %5908  ;;  %v2544_v0 = vadd.f32 %v2543_v13, %v2542_v34  ;;  %v2563_v41 = vsel %vm1663_vm3, %v7778_v60, 0.0  ;;  %v2556_v45 = vsel %vm1663_vm3, %v7782_v17, 0.0 }
 0x316   : > { %2994 = vrot.lane.b32.xlu1 %v7665_v31, %s6072_s30  ;;  %2984 = vrot.lane.b32.xlu0 %v7603_v47, %s6072_s30  ;;  %v1962_v18 = vmax.f32 %v1960_v9, %v1961_v43  ;;  %v2258_v54 = vmul.f32 1.442695, %v2153_v25  ;;  %v7814_v36 = vadd.f32 %v7308_v51, %v7375_v63  ;;  %v2552_v26 = vrot.slane %v2551_v14, 2 }
 0x317   : > { %v1970_v22 = vrot.slane %v1969_v44, 1  ;;  %v2152_v34 = vsub.f32 %v7710_v49, %v1950_v40  ;;  %v2564_v11 = vrot.slane %v2563_v41, 4  ;;  %v2534_v51 = vadd.f32 %v2533_v8, %v7756_v50 }
 0x318   : > { %v7817_v13 = vpop.eup %5910  ;;  %v1963_v9 = vrot.slane %v1962_v18, 1  ;;  %v2557_v63 = vrot.slane %v2556_v45, 4  ;;  %v2545_v27 = vrot.slane %v2544_v0, 2  ;;  %5916 = vpow2.f32 %v2258_v54 }
 0x319   : > { %v1971_v25 = vmax.f32 %v1969_v44, %v1970_v22  ;;  %v1972_v10 = vsel %vm1663_vm3, %v7814_v36, -inf  ;;  %v7832_v46 = vadd.f32 %v2552_v26, %v2551_v14  ;;  %v2256_v44 = vmul.f32 1.442695, %v2152_v34 }
 0x31a   : > { %3186 = vrot.lane.b32.xlu1 %v7665_v31, %s6071_s29  ;;  %3176 = vrot.lane.b32.xlu0 %v7603_v47, %s6071_s29  ;;  %v1980_v47 = vrot.slane %v1979_v16, 4  ;;  %v2565_v50 = vadd.f32 %v2564_v11, %v2563_v41  ;;  %v1964_v54 = vmax.f32 %v1962_v18, %v1963_v9  ;;  %v2558_v26 = vadd.f32 %v2557_v63, %v2556_v45 }
 0x31b   : > { %v7844_v34 = vmul.f32 %v5907_v5, %v7571_v61  ;;  %5918 = vrcp.f32 %v2534_v51  ;;  %v2546_v41 = vadd.f32 %v2545_v27, %v2544_v0  ;;  %v2554_v61 = vrot.slane %v7832_v46, 1  ;;  %v7868_v0 = vld [vmem:[%s9681_s1 + $0x58] ss:$0 sm:$0xff] }
 0x31c   : > { %v7808_v6 = vpop.permute.xlu1 %2954  ;;  %v7810_v30 = vpop.permute.xlu0 %3338  ;;  %v1981_v43 = vmax.f32 %v1979_v16, %v1980_v47  ;;  %v2577_v47 = vsel %vm1663_vm3, %v7817_v13, 0.0  ;;  %v2155_v16 = vsub.f32 %v7737_v53, %v1971_v25  ;;  %v7847_v53 = vmul.f32 %v5909_v48, %v7573_v55 }
 0x31d   : > { %9939 = vst [vmem:[#allocation111_spill] sm:$0xff] %v7808_v6  ;;  %9940 = vst [vmem:[#allocation112_spill] sm:$0xff] %v7810_v30  ;;  %v7823_v30 = vpop.eup %5912  ;;  %v2540_v6 = vrot.slane %v2539_v62, 1  ;;  %v2578_v25 = vrot.slane %v2577_v47, 4  ;;  %5920 = vpow2.f32 %v2256_v44  ;;  %v2154_v55 = vsub.f32 %v7746_v57, %v1964_v54 }
 0x31e   : > { %3376 = vrot.lane.b32.xlu1 %v7713_v59, %s6073_s5  ;;  %3182 = vrot.lane.b32.xlu0 %v7606_v58, %s6071_s29  ;;  %v1982_v23 = vrot.slane %v1981_v43, 2  ;;  %v2570_v8 = vsel %vm1663_vm3, %v7823_v30, 0.0  ;;  %v5915_v14 = vpop.eup %5914  ;;  %9943 = vst [vmem:[#allocation115_spill] sm:$0xff] %v7844_v34  ;;  %9944 = vst [vmem:[#allocation116_spill] sm:$0xff] %v7847_v53  ;;  %v2262_v18 = vmul.f32 1.442695, %v2155_v16  ;;  %v7872_v5 = vadd.f32 %v7868_v0, %v7416_v37 }
 0x31f   : > { %v2541_v11 = vadd.f32 %v2540_v6, %v2539_v62  ;;  %4908 = vst.msk [vmem:[%s7036_s28 + $0xe0] sm:$0xff] %vm1663_vm3, %v7844_v34  ;;  %4911 = vst.msk [vmem:[%s7036_s28 + $0xf8] sm:$0xff] %vm1663_vm3, %v7847_v53  ;;  %v2566_v62 = vrot.slane %v2565_v50, 2  ;;  %v2559_v48 = vrot.slane %v2558_v26, 2  ;;  %v7876_v57 = vadd.f32 %v7868_v0, %v7453_v3 }
 0x320   : > { %v7826_v49 = vpop.permute.xlu1 %3146  ;;  %v7828_v40 = vpop.permute.xlu0 %2952  ;;  %v1983_v22 = vmax.f32 %v1981_v43, %v1982_v23  ;;  %v2571_v23 = vrot.slane %v2570_v8, 4  ;;  %v2579_v6 = vadd.f32 %v2578_v25, %v2577_v47  ;;  %v1993_v63 = vsel %vm1663_vm3, %v7872_v5, -inf }
 0x321   : > { %9941 = vst [vmem:[#allocation113_spill] sm:$0xff] %v7826_v49  ;;  %9942 = vst [vmem:[#allocation114_spill] sm:$0xff] %v7828_v40  ;;  %v1973_v40 = vrot.slane %v1972_v10, 4  ;;  %v7885_v37 = vmul.f32 %v5915_v14, %v7612_v42  ;;  %5922 = vpow2.f32 %v2262_v18  ;;  %v1994_v16 = vrot.slane %v1993_v63, 4 }
 0x322   : > { %2998 = vrot.lane.b32.xlu1 %v7717_v2, %s6072_s30  ;;  %3374 = vrot.lane.b32.xlu0 %v7606_v58, %s6073_s5  ;;  %v1984_v9 = vrot.slane %v1983_v22, 1  ;;  %v7888_v3 = vpop.eup %5916  ;;  %v2547_v47 = vrot.slane %v2546_v41, 1  ;;  %v2260_v54 = vmul.f32 1.442695, %v2154_v55  ;;  %v1986_v42 = vsel %vm1663_vm3, %v7876_v57, -inf }
 0x323   : > { %v1974_v27 = vmax.f32 %v1972_v10, %v1973_v40  ;;  %9949 = vst [vmem:[#allocation121_spill] sm:$0xff] %v7885_v37  ;;  %v2572_v40 = vadd.f32 %v2571_v23, %v2570_v8  ;;  %4910 = vst.msk [vmem:[%s7036_s28 + $0xf0] sm:$0xff] %vm1663_vm3, %v7885_v37  ;;  %v2567_v8 = vadd.f32 %v2566_v62, %v2565_v50  ;;  %5924 = vrcp.f32 %v2541_v11 }
 0x324   : > { %v7849_v49 = vpop.permute.xlu1 %3144  ;;  %v7851_v58 = vpop.permute.xlu0 %3150  ;;  %v1985_v45 = vmax.f32 %v1983_v22, %v1984_v9  ;;  %v1995_v25 = vmax.f32 %v1993_v63, %v1994_v16  ;;  %v1987_v55 = vrot.slane %v1986_v42, 4  ;;  %v2591_v50 = vsel %vm1663_vm3, %v7888_v3, 0.0 }
 0x325   : > { %9945 = vst [vmem:[#allocation117_spill] sm:$0xff] %v7849_v49  ;;  %9946 = vst [vmem:[#allocation118_spill] sm:$0xff] %v7851_v58  ;;  %v1975_v51 = vrot.slane %v1974_v27, 2  ;;  %v2548_v62 = vadd.f32 %v2547_v47, %v2546_v41  ;;  %5926 = vpow2.f32 %v2260_v54  ;;  %v2568_v63 = vrot.slane %v2567_v8, 1 }
 0x326   : > { %3190 = vrot.lane.b32.xlu1 %v7717_v2, %s6071_s29  ;;  %2988 = vrot.lane.b32.xlu0 %v7623_v52, %s6072_s30  ;;  %v2157_v44 = vsub.f32 %v7793_v35, %v1985_v45  ;;  %v2560_v35 = vadd.f32 %v2559_v48, %v2558_v26  ;;  %v2555_v45 = vadd.f32 %v2554_v61, %v7832_v46  ;;  %v5919_v26 = vpop.eup %5918  ;;  %v1996_v48 = vrot.slane %v1995_v25, 2 }
 0x327   : > { %v1976_v22 = vmax.f32 %v1974_v27, %v1975_v51  ;;  %v7905_v27 = vadd.f32 %v7868_v0, %v7464_v1  ;;  %v2580_v51 = vrot.slane %v2579_v6, 2  ;;  %v7914_v1 = vpop.eup %5920  ;;  %v1988_v61 = vmax.f32 %v1986_v42, %v1987_v55 }
 0x328   : > { %v7878_v43 = vpop.permute.xlu1 %3336  ;;  %v7880_v10 = vpop.permute.xlu0 %3342  ;;  %v2266_v14 = vmul.f32 1.442695, %v2157_v44  ;;  %v2561_v46 = vrot.slane %v2560_v35, 1  ;;  %v2592_v44 = vrot.slane %v2591_v50, 4  ;;  %v1997_v47 = vmax.f32 %v1995_v25, %v1996_v48 }
 0x329   : > { %9947 = vst [vmem:[#allocation119_spill] sm:$0xff] %v7878_v43  ;;  %9948 = vst [vmem:[#allocation120_spill] sm:$0xff] %v7880_v10  ;;  %v1977_v9 = vrot.slane %v1976_v22, 1  ;;  %v2007_v54 = vsel %vm1663_vm3, %v7905_v27, -inf  ;;  %v1989_v25 = vrot.slane %v1988_v61, 2 }
 0x32a   : > { %3188 = vrot.lane.b32.xlu1 %v7773_v7, %s6071_s29  ;;  %3372 = vrot.lane.b32.xlu0 %v7623_v52, %s6073_s5  ;;  %v2573_v52 = vrot.slane %v2572_v40, 2  ;;  %5928 = vpow2.f32 %v2266_v14  ;;  %v1998_v14 = vrot.slane %v1997_v47, 1  ;;  %v2008_v55 = vrot.slane %v2007_v54, 4 }
 0x32b   : > { %v1978_v11 = vmax.f32 %v1976_v22, %v1977_v9  ;;  %5930 = vrcp.f32 %v2555_v45  ;;  %v2581_v22 = vadd.f32 %v2580_v51, %v2579_v6  ;;  %v7929_v42 = vpop.eup %5922  ;;  %v2562_v45 = vadd.f32 %v2561_v46, %v2560_v35 }
 0x32c   : > { %v7899_v23 = vpop.permute.xlu1 %2958  ;;  %v7901_v18 = vpop.permute.xlu0 %2956  ;;  %v2574_v9 = vadd.f32 %v2573_v52, %v2572_v40  ;;  %5932 = vrcp.f32 %v2548_v62  ;;  %v2593_v6 = vadd.f32 %v2592_v44, %v2591_v50  ;;  %v7937_v51 = vadd.f32 %v7868_v0, %v7493_v39 }
 0x32d   : > { %9950 = vst [vmem:[#allocation122_spill] sm:$0xff] %v7899_v23  ;;  %9951 = vst [vmem:[#allocation123_spill] sm:$0xff] %v7901_v18  ;;  %v2156_v41 = vsub.f32 %v7814_v36, %v1978_v11  ;;  %v2569_v11 = vadd.f32 %v2568_v63, %v2567_v8  ;;  %v2582_v62 = vrot.slane %v2581_v22, 1  ;;  %v5925_v43 = vpop.eup %5924  ;;  %v2605_v49 = vsel %vm1663_vm3, %v7929_v42, 0.0 }
 0x32e   : > { %3380 = vrot.lane.b32.xlu1 %v7773_v7, %s6073_s5  ;;  %3378 = vrot.lane.b32.xlu0 %v7665_v31, %s6073_s5  ;;  %v2584_v31 = vsel %vm1663_vm3, %v7914_v1, 0.0  ;;  %v2575_v48 = vrot.slane %v2574_v9, 1  ;;  %v2009_v8 = vmax.f32 %v2007_v54, %v2008_v55  ;;  %v2000_v39 = vsel %vm1663_vm3, %v7937_v51, -inf }
 0x32f   : > { %v2264_v36 = vmul.f32 1.442695, %v2156_v41  ;;  %v2585_v41 = vrot.slane %v2584_v31, 4  ;;  %v2001_v63 = vrot.slane %v2000_v39, 4  ;;  %v7948_v46 = vpop.eup %5926  ;;  %v7955_v54 = vmul.f32 %v5919_v26, %v7658_v32 }
 0x330   : > { %v7916_v16 = vpop.permute.xlu1 %3148  ;;  %v7918_v18 = vpop.permute.xlu0 %3340  ;;  %v2606_v55 = vrot.slane %v2605_v49, 4  ;;  %v2576_v26 = vadd.f32 %v2575_v48, %v2574_v9 }
 0x331   : > { %9952 = vst [vmem:[#allocation124_spill] sm:$0xff] %v7916_v16  ;;  %9953 = vst [vmem:[#allocation125_spill] sm:$0xff] %v7918_v18  ;;  %v1999_v18 = vmax.f32 %v1997_v47, %v1998_v14  ;;  %v1990_v16 = vmax.f32 %v1988_v61, %v1989_v25  ;;  %5934 = vpow2.f32 %v2264_v36  ;;  %v2594_v61 = vrot.slane %v2593_v6, 2 }
 0x332   : > { %3002 = vrot.lane.b32.xlu1 %v7776_v28, %s6072_s30  ;;  %2992 = vrot.lane.b32.xlu0 %v7713_v59, %s6072_s30  ;;  %5936 = vrcp.f32 %v2569_v11  ;;  %v2010_v14 = vrot.slane %v2009_v8, 2  ;;  %9958 = vst [vmem:[#allocation130_spill] sm:$0xff] %v7955_v54  ;;  %4912 = vst.msk [vmem:[%s7036_s28 + $0x100] sm:$0xff] %vm1663_vm3, %v7955_v54 }
 0x333   : > { %v2159_v35 = vsub.f32 %v7872_v5, %v1999_v18  ;;  %v1991_v50 = vrot.slane %v1990_v16, 1  ;;  %5938 = vrcp.f32 %v2562_v45  ;;  %v2583_v5 = vadd.f32 %v2582_v62, %v2581_v22 }
 0x334   : > { %v7931_v52 = vpop.permute.xlu1 %2962  ;;  %v7933_v40 = vpop.permute.xlu0 %3346  ;;  %v2586_v18 = vadd.f32 %v2585_v41, %v2584_v31  ;;  %v7967_v45 = vmul.f32 %v5925_v43, %v7689_v38  ;;  %v2595_v22 = vadd.f32 %v2594_v61, %v2593_v6  ;;  %v2598_v62 = vsel %vm1663_vm3, %v7948_v46, 0.0 }
 0x335   : > { %9954 = vst [vmem:[#allocation126_spill] sm:$0xff] %v7931_v52  ;;  %9955 = vst [vmem:[#allocation127_spill] sm:$0xff] %v7933_v40  ;;  %v7957_v25 = vpop.eup %5928  ;;  %v2270_v36 = vmul.f32 1.442695, %v2159_v35  ;;  %v1992_v11 = vmax.f32 %v1990_v16, %v1991_v50  ;;  %v7985_v38 = vadd.f32 %v7868_v0, %v7506_v56  ;;  %v2607_v6 = vadd.f32 %v2606_v55, %v2605_v49 }
 0x336   : > { %3386 = vrot.lane.b32.xlu1 %v7776_v28, %s6073_s5  ;;  %3184 = vrot.lane.b32.xlu0 %v7713_v59, %s6071_s29  ;;  %v5931_v32 = vpop.eup %5930  ;;  %v2011_v59 = vmax.f32 %v2009_v8, %v2010_v14  ;;  %9959 = vst [vmem:[#allocation131_spill] sm:$0xff] %v7967_v45  ;;  %v2619_v16 = vsel %vm1663_vm3, %v7957_v25, 0.0  ;;  %4913 = vst.msk [vmem:[%s7036_s28 + $0x108] sm:$0xff] %vm1663_vm3, %v7967_v45  ;;  %v2587_v43 = vrot.slane %v2586_v18, 2  ;;  %v2599_v49 = vrot.slane %v2598_v62, 4 }
 0x337   : > { %v7969_v31 = vpop.eup %5932  ;;  %v2158_v9 = vsub.f32 %v7876_v57, %v1992_v11  ;;  %5940 = vpow2.f32 %v2270_v36  ;;  %v9962_v57 = vld [vmem:[#allocation70_spill] sm:$0xff]  ;;  %v2021_v56 = vsel %vm1663_vm3, %v7985_v38, -inf  ;;  %v2620_v36 = vrot.slane %v2619_v16, 4 }
 0x338   : > { %v7950_v44 = vpop.permute.xlu1 %3154  ;;  %v7952_v47 = vpop.permute.xlu0 %2960  ;;  %v2012_v48 = vrot.slane %v2011_v59, 1  ;;  %v7993_v50 = vadd.f32 %v7868_v0, %v9962_v57  ;;  %5942 = vrcp.f32 %v2583_v5  ;;  %v2588_v57 = vadd.f32 %v2587_v43, %v2586_v18 }
 0x339   : > { %9956 = vst [vmem:[#allocation128_spill] sm:$0xff] %v7950_v44  ;;  %9957 = vst [vmem:[#allocation129_spill] sm:$0xff] %v7952_v47  ;;  %v2002_v47 = vmax.f32 %v2000_v39, %v2001_v63  ;;  %v2268_v39 = vmul.f32 1.442695, %v2158_v9  ;;  %5944 = vrcp.f32 %v2576_v26  ;;  %v2022_v9 = vrot.slane %v2021_v56, 4 }
 0x33a   : > { %3192 = vrot.lane.b32.xlu1 %v7844_v34, %s6071_s29  ;;  %3382 = vrot.lane.b32.xlu0 %v7717_v2, %s6073_s5  ;;  %v2013_v63 = vmax.f32 %v2011_v59, %v2012_v48  ;;  %v2596_v26 = vrot.slane %v2595_v22, 1  ;;  %v2600_v40 = vadd.f32 %v2599_v49, %v2598_v62 }
 0x33b   : > { %v2003_v8 = vrot.slane %v2002_v47, 2  ;;  %v8003_v2 = vpop.eup %5934  ;;  %5946 = vpow2.f32 %v2268_v39  ;;  %v2023_v39 = vmax.f32 %v2021_v56, %v2022_v9  ;;  %v2621_v9 = vadd.f32 %v2620_v36, %v2619_v16 }
 0x33c   : > { %v7975_v41 = vpop.permute.xlu1 %3344  ;;  %v7977_v35 = vpop.permute.xlu0 %3152  ;;  %v2161_v5 = vsub.f32 %v7905_v27, %v2013_v63  ;;  %v2612_v18 = vsel %vm1663_vm3, %v8003_v2, 0.0 }
 0x33d   : > { %9960 = vst [vmem:[#allocation132_spill] sm:$0xff] %v7975_v41  ;;  %9961 = vst [vmem:[#allocation133_spill] sm:$0xff] %v7977_v35  ;;  %v2004_v61 = vmax.f32 %v2002_v47, %v2003_v8  ;;  %v7997_v14 = vpop.f32.mrb[60].mxu1  ;;  %v2014_v47 = vsel %vm1663_vm3, %v7993_v50, -inf  ;;  %v8010_v8 = vpop.eup %5936  ;;  %v2024_v44 = vrot.slane %v2023_v39, 2  ;;  %v2613_v16 = vrot.slane %v2612_v18, 4 }
 0x33e   : > { %3384 = vrot.lane.b32.xlu1 %v7844_v34, %s6073_s5  ;;  %2996 = vrot.lane.b32.xlu0 %v7773_v7, %s6072_s30  ;;  %v8008_v48 = vpop.f32.mrb[61].mxu1  ;;  %v2608_v7 = vrot.slane %v2607_v6, 2  ;;  %v8016_v27 = vpop.eup %5938  ;;  %v2274_v63 = vmul.f32 1.442695, %v2161_v5  ;;  %v2015_v35 = vrot.slane %v2014_v47, 4 }
 0x33f   : > { %v2005_v59 = vrot.slane %v2004_v61, 1  ;;  %v2025_v49 = vmax.f32 %v2023_v39, %v2024_v44 }
 0x340   : > { %v7999_v55 = vpop.permute.xlu1 %2966  ;;  %v8001_v11 = vpop.permute.xlu0 %3158  ;;  %5948 = vpow2.f32 %v2274_v63  ;;  %v2016_v5 = vmax.f32 %v2014_v47, %v2015_v35  ;;  %v2609_v62 = vadd.f32 %v2608_v7, %v2607_v6  ;;  %v8049_v47 = vmul.f32 %v7969_v31, %v7748_v21 }
 0x341   : > { %9963 = vst [vmem:[#allocation70_spill] sm:$0xff] %v7999_v55  ;;  %9964 = vst [vmem:[#allocation134_spill] sm:$0xff] %v8001_v11  ;;  %v2006_v41 = vmax.f32 %v2004_v61, %v2005_v59  ;;  %v8019_v11 = vmul.f32 %v5931_v32, %v7733_v15  ;;  %v2597_v15 = vadd.f32 %v2596_v26, %v2595_v22  ;;  %v2589_v32 = vrot.slane %v2588_v57, 1  ;;  %v8053_v39 = vpop.f32.mrb[62].mxu1 }
 0x342   : > { %3006 = vrot.lane.b32.xlu1 %v7847_v53, %s6072_s30  ;;  %3194 = vrot.lane.b32.xlu0 %v7776_v28, %s6071_s29  ;;  %v9968_v28 = vld [vmem:[#allocation90_spill] sm:$0xff]  ;;  %v2017_v59 = vrot.slane %v2016_v5, 2  ;;  %v2026_v35 = vrot.slane %v2025_v49, 1  ;;  %9971 = vst [vmem:[#allocation139_spill] sm:$0xff] %v8049_v47  ;;  %v2622_v26 = vrot.slane %v2621_v9, 2  ;;  %4914 = vst.msk [vmem:[%s7036_s28 + $0x110] sm:$0xff] %vm1663_vm3, %v8049_v47 }
 0x343   : > { %9965 = vst [vmem:[#allocation135_spill] sm:$0xff] %v8019_v11  ;;  %v8029_v56 = vadd.f32 %v7868_v0, %v9968_v28  ;;  %v2160_v61 = vsub.f32 %v7937_v51, %v2006_v41  ;;  %4915 = vst.msk [vmem:[%s7036_s28 + $0x118] sm:$0xff] %vm1663_vm3, %v8019_v11  ;;  %v8039_v28 = vpop.eup %5940  ;;  %v2601_v41 = vrot.slane %v2600_v40, 2  ;;  %v8066_v31 = vpop.f32.mrb[63].mxu1 }
 0x344   : > { %v8023_v43 = vpop.permute.xlu1 %3156  ;;  %v8025_v55 = vpop.permute.xlu0 %3350  ;;  %v2027_v21 = vmax.f32 %v2025_v49, %v2026_v35  ;;  %v9973_v49 = vld [vmem:[#allocation92_spill] sm:$0xff]  ;;  %v2623_v58 = vadd.f32 %v2622_v26, %v2621_v9 }
 0x345   : > { %9966 = vst [vmem:[#allocation136_spill] sm:$0xff] %v8023_v43  ;;  %9967 = vst [vmem:[#allocation137_spill] sm:$0xff] %v8025_v55  ;;  %v2272_v36 = vmul.f32 1.442695, %v2160_v61  ;;  %v2035_v51 = vsel %vm1663_vm3, %v8029_v56, -inf  ;;  %v8051_v44 = vpop.eup %5942  ;;  %v2633_v61 = vsel %vm1663_vm3, %v8039_v28, 0.0  ;;  %v2602_v55 = vadd.f32 %v2601_v41, %v2600_v40 }
 0x346   : > { %3198 = vrot.lane.b32.xlu1 %v7847_v53, %s6071_s29  ;;  %3000 = vrot.lane.b32.xlu0 %v7844_v34, %s6072_s30  ;;  %v2036_v6 = vrot.slane %v2035_v51, 4  ;;  %v8055_v63 = vpop.eup %5944  ;;  %v2590_v34 = vadd.f32 %v2589_v32, %v2588_v57  ;;  %v2163_v52 = vsub.f32 %v7985_v38, %v2027_v21  ;;  %v8077_v35 = vadd.f32 %v7868_v0, %v9973_v49 }
 0x347   : > { %5950 = vpow2.f32 %v2272_v36  ;;  %v8068_v36 = vpop.eup %5946  ;;  %v2634_v23 = vrot.slane %v2633_v61, 4  ;;  %v2603_v41 = vrot.slane %v2602_v55, 1 }
 0x348   : > { %v8043_v22 = vpop.permute.xlu1 %2970  ;;  %v8045_v7 = vpop.permute.xlu0 %2964  ;;  %5952 = vrcp.f32 %v2597_v15  ;;  %v2018_v15 = vmax.f32 %v2016_v5, %v2017_v59  ;;  %v2037_v43 = vmax.f32 %v2035_v51, %v2036_v6  ;;  %v2626_v57 = vsel %vm1663_vm3, %v8068_v36, 0.0 }
 0x349   : > { %9969 = vst [vmem:[#allocation90_spill] sm:$0xff] %v8043_v22  ;;  %9970 = vst [vmem:[#allocation138_spill] sm:$0xff] %v8045_v7  ;;  %v2614_v22 = vadd.f32 %v2613_v16, %v2612_v18  ;;  %v2610_v7 = vrot.slane %v2609_v62, 1  ;;  %v2278_v40 = vmul.f32 1.442695, %v2163_v52  ;;  %v2028_v38 = vsel %vm1663_vm3, %v8077_v35, -inf }
 0x34a   : > { %3390 = vrot.lane.b32.xlu1 %v7847_v53, %s6073_s5  ;;  %3004 = vrot.lane.b32.xlu0 %v7885_v37, %s6072_s30  ;;  %v2019_v4 = vrot.slane %v2018_v15, 1  ;;  %v2038_v24 = vrot.slane %v2037_v43, 2  ;;  %v8089_v18 = vmul.f32 %v8010_v8, %v7778_v60  ;;  %v8091_v9 = vpop.eup %5948  ;;  %v2029_v59 = vrot.slane %v2028_v38, 4 }
 0x34b   : > { %v2615_v5 = vrot.slane %v2614_v22, 2  ;;  %v2611_v51 = vadd.f32 %v2610_v7, %v2609_v62  ;;  %5954 = vpow2.f32 %v2278_v40  ;;  %v8102_v60 = vmul.f32 %v8016_v27, %v7782_v17 }
 0x34c   : > { %v8070_v10 = vpop.permute.xlu1 %3354  ;;  %v8072_v53 = vpop.permute.xlu0 %3348  ;;  %9974 = vst [vmem:[#allocation92_spill] sm:$0xff] %v8089_v18  ;;  %v2020_v32 = vmax.f32 %v2018_v15, %v2019_v4  ;;  %v2039_v16 = vmax.f32 %v2037_v43, %v2038_v24  ;;  %4917 = vst.msk [vmem:[%s7036_s28 + $0x128] sm:$0xff] %vm1663_vm3, %v8089_v18  ;;  %5956 = vrcp.f32 %v2590_v34  ;;  %v2635_v52 = vadd.f32 %v2634_v23, %v2633_v61 }
 0x34d   : > { %9972 = vst [vmem:[#allocation140_spill] sm:$0xff] %v8070_v10  ;;  %9976 = vst [vmem:[#allocation142_spill] sm:$0xff] %v8102_v60  ;;  %v2627_v4 = vrot.slane %v2626_v57, 4  ;;  %v2624_v8 = vrot.slane %v2623_v58, 1  ;;  %v2647_v43 = vsel %vm1663_vm3, %v8091_v9, 0.0  ;;  %v2030_v7 = vmax.f32 %v2028_v38, %v2029_v59 }
 0x34e   : > { %3196 = vrot.lane.b32.xlu1 %v7885_v37, %s6071_s29  ;;  %3008 = vrot.lane.b32.xlu0 %v7955_v54, %s6072_s30  ;;  %v2162_v24 = vsub.f32 %v7993_v50, %v2020_v32  ;;  %v2040_v62 = vrot.slane %v2039_v16, 1  ;;  %4916 = vst.msk [vmem:[%s7036_s28 + $0x120] sm:$0xff] %vm1663_vm3, %v8102_v60  ;;  %v2616_v34 = vadd.f32 %v2615_v5, %v2614_v22  ;;  %v9977_v50 = vld [vmem:[#allocation77_spill] sm:$0xff]  ;;  %5958 = vrcp.f32 %v2611_v51 }
 0x34f   : > { %v8118_v27 = vadd.f32 %v7868_v0, %v9977_v50  ;;  %v8122_v61 = vadd.f32 %v7868_v0, %v7667_v12  ;;  %v2604_v15 = vadd.f32 %v2603_v41, %v2602_v55  ;;  %v2031_v32 = vrot.slane %v2030_v7, 2 }
 0x350   : > { %v8093_v6 = vpop.permute.xlu1 %3352  ;;  %v8095_v26 = vpop.permute.xlu0 %3162  ;;  %v2276_v23 = vmul.f32 1.442695, %v2162_v24  ;;  %v2041_v38 = vmax.f32 %v2039_v16, %v2040_v62  ;;  %v2636_v59 = vrot.slane %v2635_v52, 2  ;;  %v2628_v22 = vadd.f32 %v2627_v4, %v2626_v57 }
 0x351   : > { %9975 = vst [vmem:[#allocation141_spill] sm:$0xff] %v8093_v6  ;;  %v8114_v17 = vpop.eup %5950  ;;  %v2648_v5 = vrot.slane %v2647_v43, 4  ;;  %v2032_v55 = vmax.f32 %v2030_v7, %v2031_v32  ;;  %v2625_v51 = vadd.f32 %v2624_v8, %v2623_v58  ;;  %v2617_v41 = vrot.slane %v2616_v34, 1 }
 0x352   : > { %3388 = vrot.lane.b32.xlu1 %v7885_v37, %s6073_s5  ;;  %3200 = vrot.lane.b32.xlu0 %v7955_v54, %s6071_s29  ;;  %v5953_v21 = vpop.eup %5952  ;;  %v2640_v24 = vsel %vm1663_vm3, %v8114_v17, 0.0  ;;  %5960 = vpow2.f32 %v2276_v23  ;;  %v2165_v12 = vsub.f32 %v8029_v56, %v2041_v38  ;;  %v2049_v16 = vsel %vm1663_vm3, %v8118_v27, -inf }
 0x353   : > { %v2042_v57 = vsel %vm1663_vm3, %v8122_v61, -inf  ;;  %v2641_v4 = vrot.slane %v2640_v24, 4  ;;  %5962 = vrcp.f32 %v2604_v15  ;;  %v2637_v23 = vadd.f32 %v2636_v59, %v2635_v52 }
 0x354   : > { %v8124_v49 = vpop.permute.xlu1 %2974  ;;  %v8126_v40 = vpop.permute.xlu0 %2968  ;;  %v2282_v37 = vmul.f32 1.442695, %v2165_v12  ;;  %v2629_v56 = vrot.slane %v2628_v22, 2  ;;  %v2649_v7 = vadd.f32 %v2648_v5, %v2647_v43  ;;  %v2043_v32 = vrot.slane %v2042_v57, 4 }
 0x355   : > { %9978 = vst [vmem:[#allocation77_spill] sm:$0xff] %v8124_v49  ;;  %v2033_v49 = vrot.slane %v2032_v55, 1  ;;  %v8143_v58 = vpop.eup %5954  ;;  %v8152_v43 = vmul.f32 %v5953_v21, %v7888_v3  ;;  %v2642_v15 = vadd.f32 %v2641_v4, %v2640_v24  ;;  %v8164_v3 = vmul.f32 %v8051_v44, %v7817_v13 }
 0x356   : > { %3010 = vrot.lane.b32.xlu1 %v7967_v45, %s6072_s30  ;;  %3392 = vrot.lane.b32.xlu0 %v7955_v54, %s6073_s5  ;;  %v2050_v54 = vrot.slane %v2049_v16, 4  ;;  %5964 = vpow2.f32 %v2282_v37  ;;  %v5957_v12 = vpop.eup %5956  ;;  %v2661_v52 = vsel %vm1663_vm3, %v8143_v58, 0.0  ;;  %v2650_v21 = vrot.slane %v2649_v7, 2 }
 0x357   : > { %v2034_v8 = vmax.f32 %v2032_v55, %v2033_v49  ;;  %5966 = vrcp.f32 %v2625_v51  ;;  %9981 = vst [vmem:[#allocation145_spill] sm:$0xff] %v8152_v43  ;;  %v2044_v49 = vmax.f32 %v2042_v57, %v2043_v32  ;;  %v2638_v55 = vrot.slane %v2637_v23, 1  ;;  %4921 = vst.msk [vmem:[%s7036_s28 + $0x148] sm:$0xff] %vm1663_vm3, %v8152_v43 }
 0x358   : > { %v8139_v62 = vpop.permute.xlu1 %3166  ;;  %v8141_v50 = vpop.permute.xlu0 %3160  ;;  %v2051_v38 = vmax.f32 %v2049_v16, %v2050_v54  ;;  %v2630_v16 = vadd.f32 %v2629_v56, %v2628_v22  ;;  %v2662_v51 = vrot.slane %v2661_v52, 4  ;;  %9983 = vst [vmem:[#allocation147_spill] sm:$0xff] %v8164_v3  ;;  %4919 = vst.msk [vmem:[%s7036_s28 + $0x138] sm:$0xff] %vm1663_vm3, %v8164_v3  ;;  %v8175_v13 = vadd.f32 %v7868_v0, %v7680_v29 }
 0x359   : > { %9979 = vst [vmem:[#allocation143_spill] sm:$0xff] %v8139_v62  ;;  %9980 = vst [vmem:[#allocation144_spill] sm:$0xff] %v8141_v50  ;;  %v2618_v62 = vadd.f32 %v2617_v41, %v2616_v34  ;;  %v2164_v37 = vsub.f32 %v8077_v35, %v2034_v8  ;;  %v5959_v34 = vpop.eup %5958  ;;  %v2045_v41 = vrot.slane %v2044_v49, 2  ;;  %v8179_v44 = vadd.f32 %v7868_v0, %v7722_v19 }
 0x35a   : > { %3202 = vrot.lane.b32.xlu1 %v7967_v45, %s6071_s29  ;;  %3206 = vrot.lane.b32.xlu0 %v8019_v11, %s6071_s29  ;;  %v2052_v54 = vrot.slane %v2051_v38, 2  ;;  %v8182_v22 = vmul.f32 %v5957_v12, %v7914_v1  ;;  %v2643_v4 = vrot.slane %v2642_v15, 2  ;;  %v2639_v32 = vadd.f32 %v2638_v55, %v2637_v23 }
 0x35b   : > { %v2280_v35 = vmul.f32 1.442695, %v2164_v37  ;;  %5968 = vrcp.f32 %v2618_v62  ;;  %v2663_v29 = vadd.f32 %v2662_v51, %v2661_v52  ;;  %v2063_v19 = vsel %vm1663_vm3, %v8175_v13, -inf }
 0x35c   : > { %v8154_v59 = vpop.permute.xlu1 %3164  ;;  %v8156_v5 = vpop.permute.xlu0 %3358  ;;  %v2053_v24 = vmax.f32 %v2051_v38, %v2052_v54  ;;  %9984 = vst [vmem:[#allocation148_spill] sm:$0xff] %v8182_v22  ;;  %v2046_v38 = vmax.f32 %v2044_v49, %v2045_v41  ;;  %4920 = vst.msk [vmem:[%s7036_s28 + $0x140] sm:$0xff] %vm1663_vm3, %v8182_v22  ;;  %v2631_v1 = vrot.slane %v2630_v16, 1  ;;  %v2651_v12 = vadd.f32 %v2650_v21, %v2649_v7 }
 0x35d   : > { %9982 = vst [vmem:[#allocation146_spill] sm:$0xff] %v8156_v5  ;;  %v8184_v57 = vpop.eup %5960  ;;  %5970 = vpow2.f32 %v2280_v35  ;;  %v2064_v55 = vrot.slane %v2063_v19, 4  ;;  %v2056_v51 = vsel %vm1663_vm3, %v8179_v44, -inf  ;;  %v8206_v35 = vmul.f32 %v5959_v34, %v7929_v42 }
 0x35e   : > { %3394 = vrot.lane.b32.xlu1 %v7967_v45, %s6073_s5  ;;  %3398 = vrot.lane.b32.xlu0 %v8019_v11, %s6073_s5  ;;  %v2054_v8 = vrot.slane %v2053_v24, 1  ;;  %v2654_v37 = vsel %vm1663_vm3, %v8184_v57, 0.0  ;;  %v8201_v52 = vpop.eup %5962  ;;  %v2047_v49 = vrot.slane %v2046_v38, 1  ;;  %v2644_v21 = vadd.f32 %v2643_v4, %v2642_v15 }
 0x35f   : > { %v2655_v54 = vrot.slane %v2654_v37, 4  ;;  %9985 = vst [vmem:[#allocation149_spill] sm:$0xff] %v8206_v35  ;;  %v2664_v6 = vrot.slane %v2663_v29, 2  ;;  %v2065_v42 = vmax.f32 %v2063_v19, %v2064_v55  ;;  %4923 = vst.msk [vmem:[%s7036_s28 + $0x158] sm:$0xff] %vm1663_vm3, %v8206_v35  ;;  %5972 = vrcp.f32 %v2639_v32 }
 0x360   : > { %v8186_v56 = vpop.permute.xlu1 %3356  ;;  %v8188_v62 = vpop.permute.xlu0 %2972  ;;  %v2055_v23 = vmax.f32 %v2053_v24, %v2054_v8  ;;  %v2057_v8 = vrot.slane %v2056_v51, 4  ;;  %v2048_v10 = vmax.f32 %v2046_v38, %v2047_v49  ;;  %v2652_v38 = vrot.slane %v2651_v12, 1 }
 0x361   : > { %v8208_v7 = vpop.eup %5964  ;;  %v2656_v41 = vadd.f32 %v2655_v54, %v2654_v37  ;;  %v2066_v37 = vrot.slane %v2065_v42, 2  ;;  %v8233_v55 = vmul.f32 %v8055_v63, %v7823_v30  ;;  %v8250_v63 = vadd.f32 %v7868_v0, %v7780_v33 }
 0x362   : > { %3014 = vrot.lane.b32.xlu1 %v8019_v11, %s6072_s30  ;;  %3012 = vrot.lane.b32.xlu0 %v8049_v47, %s6072_s30  ;;  %v2167_v24 = vsub.f32 %v8118_v27, %v2055_v23  ;;  %v8215_v5 = vpop.eup %5966  ;;  %v2675_v50 = vsel %vm1663_vm3, %v8208_v7, 0.0  ;;  %v2166_v4 = vsub.f32 %v8122_v61, %v2048_v10  ;;  %v2058_v54 = vmax.f32 %v2056_v51, %v2057_v8 }
 0x363   : > { %v2657_v15 = vrot.slane %v2656_v41, 2  ;;  %v2676_v34 = vrot.slane %v2675_v50, 4  ;;  %v2632_v23 = vadd.f32 %v2631_v1, %v2630_v16  ;;  %9989 = vst [vmem:[#allocation153_spill] sm:$0xff] %v8233_v55  ;;  %4918 = vst.msk [vmem:[%s7036_s28 + $0x130] sm:$0xff] %vm1663_vm3, %v8233_v55 }
 0x364   : > { %v8210_v11 = vpop.permute.xlu1 %2978  ;;  %v8212_v45 = vpop.permute.xlu0 %3170  ;;  %v2286_v27 = vmul.f32 1.442695, %v2167_v24  ;;  %v2665_v24 = vadd.f32 %v2664_v6, %v2663_v29  ;;  %v2284_v10 = vmul.f32 1.442695, %v2166_v4  ;;  %v2059_v51 = vrot.slane %v2058_v54, 2 }
 0x365   : > { %9986 = vst [vmem:[#allocation150_spill] sm:$0xff] %v8210_v11  ;;  %9987 = vst [vmem:[#allocation151_spill] sm:$0xff] %v8212_v45  ;;  %v2677_v19 = vadd.f32 %v2676_v34, %v2675_v50  ;;  %v8235_v45 = vpop.eup %5968  ;;  %v2658_v16 = vadd.f32 %v2657_v15, %v2656_v41  ;;  %v2067_v50 = vmax.f32 %v2065_v42, %v2066_v37  ;;  %v2077_v4 = vsel %vm1663_vm3, %v8250_v63, -inf }
 0x366   : > { %3204 = vrot.lane.b32.xlu1 %v8049_v47, %s6071_s29  ;;  %3396 = vrot.lane.b32.xlu0 %v8049_v47, %s6073_s5  ;;  %v2645_v47 = vrot.slane %v2644_v21, 1  ;;  %5974 = vpow2.f32 %v2286_v27  ;;  %v8254_v6 = vadd.f32 %v7868_v0, %v7795_v20  ;;  %v2653_v34 = vadd.f32 %v2652_v38, %v2651_v12 }
 0x367   : > { %v8237_v61 = vpop.eup %5970  ;;  %v2678_v1 = vrot.slane %v2677_v19, 2  ;;  %5976 = vpow2.f32 %v2284_v10  ;;  %v2068_v15 = vrot.slane %v2067_v50, 1  ;;  %v2060_v27 = vmax.f32 %v2058_v54, %v2059_v51 }
 0x368   : > { %v8227_v49 = vpop.permute.xlu1 %3362  ;;  %v8229_v32 = vpop.permute.xlu0 %2976  ;;  %v2668_v30 = vsel %vm1663_vm3, %v8237_v61, 0.0  ;;  %5978 = vrcp.f32 %v2632_v23  ;;  %v2070_v33 = vsel %vm1663_vm3, %v8254_v6, -inf  ;;  %v2646_v37 = vadd.f32 %v2645_v47, %v2644_v21 }
 0x369   : > { %9988 = vst [vmem:[#allocation152_spill] sm:$0xff] %v8227_v49  ;;  %v2679_v29 = vadd.f32 %v2678_v1, %v2677_v19  ;;  %v2669_v41 = vrot.slane %v2668_v30, 4  ;;  %v2666_v10 = vrot.slane %v2665_v24, 1  ;;  %v2659_v20 = vrot.slane %v2658_v16, 1  ;;  %v8268_v38 = vpop.eup %5972 }
 0x36a   : > { %3018 = vrot.lane.b32.xlu1 %v8089_v18, %s6072_s30  ;;  %3016 = vrot.lane.b32.xlu0 %v8102_v60, %s6072_s30  ;;  %v2069_v23 = vmax.f32 %v2067_v50, %v2068_v15  ;;  %v2061_v19 = vrot.slane %v2060_v27, 1  ;;  %v2078_v12 = vrot.slane %v2077_v4, 4  ;;  %v2071_v54 = vrot.slane %v2070_v33, 4 }
 0x36b   : > { %v2670_v49 = vadd.f32 %v2669_v41, %v2668_v30  ;;  %v2680_v1 = vrot.slane %v2679_v29, 1  ;;  %v8276_v30 = vmul.f32 %v8201_v52, %v7948_v46  ;;  %v8280_v50 = vmul.f32 %v8215_v5, %v7957_v25 }
 0x36c   : > { %v8256_v8 = vpop.permute.xlu1 %3168  ;;  %v8258_v42 = vpop.permute.xlu0 %3360  ;;  %5980 = vrcp.f32 %v2653_v34  ;;  %v2169_v41 = vsub.f32 %v8175_v13, %v2069_v23  ;;  %v2062_v15 = vmax.f32 %v2060_v27, %v2061_v19  ;;  %v2079_v11 = vmax.f32 %v2077_v4, %v2078_v12 }
 0x36d   : > { %9990 = vst [vmem:[#allocation154_spill] sm:$0xff] %v8256_v8  ;;  %9991 = vst [vmem:[#allocation155_spill] sm:$0xff] %v8258_v42  ;;  %v2671_v51 = vrot.slane %v2670_v49, 2  ;;  %5982 = vrcp.f32 %v2646_v37  ;;  %v2667_v42 = vadd.f32 %v2666_v10, %v2665_v24  ;;  %v2072_v46 = vmax.f32 %v2070_v33, %v2071_v54 }
 0x36e   : > { %3210 = vrot.lane.b32.xlu1 %v8089_v18, %s6071_s29  ;;  %3208 = vrot.lane.b32.xlu0 %v8102_v60, %s6071_s29  ;;  %9992 = vst [vmem:[#allocation156_spill] sm:$0xff] %v8276_v30  ;;  %9993 = vst [vmem:[#allocation157_spill] sm:$0xff] %v8280_v50  ;;  %v2290_v5 = vmul.f32 1.442695, %v2169_v41  ;;  %v2168_v13 = vsub.f32 %v8179_v44, %v2062_v15  ;;  %v2080_v52 = vrot.slane %v2079_v11, 2 }
 0x36f   : > { %v2672_v8 = vadd.f32 %v2671_v51, %v2670_v49  ;;  %4922 = vst.msk [vmem:[%s7036_s28 + $0x150] sm:$0xff] %vm1663_vm3, %v8276_v30  ;;  %4925 = vst.msk [vmem:[%s7036_s28 + $0x168] sm:$0xff] %vm1663_vm3, %v8280_v50  ;;  %v8298_v49 = vadd.f32 %v7868_v0, %v7997_v14  ;;  %v2660_v24 = vadd.f32 %v2659_v20, %v2658_v16  ;;  %v2073_v37 = vrot.slane %v2072_v46, 2 }
 0x370   : > { %v8270_v47 = vpop.permute.xlu1 %2982  ;;  %v8272_v21 = vpop.permute.xlu0 %3174  ;;  %v2681_v34 = vadd.f32 %v2680_v1, %v2679_v29  ;;  %5984 = vpow2.f32 %v2290_v5  ;;  %v2288_v44 = vmul.f32 1.442695, %v2168_v13  ;;  %v2081_v16 = vmax.f32 %v2079_v11, %v2080_v52 }
 0x371   : > { %v8293_v25 = vpop.eup %5974  ;;  %v2673_v23 = vrot.slane %v2672_v8, 1  ;;  %v2074_v29 = vmax.f32 %v2072_v46, %v2073_v37  ;;  %v8316_v20 = vadd.f32 %v7868_v0, %v8008_v48  ;;  %v2091_v51 = vsel %vm1663_vm3, %v8298_v49, -inf }
 0x372   : > { %3402 = vrot.lane.b32.xlu1 %v8089_v18, %s6073_s5  ;;  %3400 = vrot.lane.b32.xlu0 %v8102_v60, %s6073_s5  ;;  %v2689_v27 = vsel %vm1663_vm3, %v8293_v25, 0.0  ;;  %v8306_v10 = vpop.eup %5976  ;;  %5986 = vpow2.f32 %v2288_v44  ;;  %v2082_v5 = vrot.slane %v2081_v16, 1  ;;  %v2092_v60 = vrot.slane %v2091_v51, 4 }
 0x373   : > { %v2690_v19 = vrot.slane %v2689_v27, 4  ;;  %v5979_v12 = vpop.eup %5978  ;;  %v2682_v14 = vsel %vm1663_vm3, %v8306_v10, 0.0  ;;  %5988 = vrcp.f32 %v2667_v42  ;;  %v2075_v13 = vrot.slane %v2074_v29, 1 }
 0x374   : > { %v8302_v4 = vpop.permute.xlu1 %3172  ;;  %v8304_v33 = vpop.permute.xlu0 %3366  ;;  %v2683_v1 = vrot.slane %v2682_v14, 4  ;;  %5990 = vrcp.f32 %v2660_v24  ;;  %v2674_v11 = vadd.f32 %v2673_v23, %v2672_v8  ;;  %v2083_v48 = vmax.f32 %v2081_v16, %v2082_v5 }
 0x375   : > { %v2691_v54 = vadd.f32 %v2690_v19, %v2689_v27  ;;  %5992 = vrcp.f32 %v2681_v34  ;;  %v2076_v42 = vmax.f32 %v2074_v29, %v2075_v13  ;;  %v2084_v27 = vsel %vm1663_vm3, %v8316_v20, -inf }
 0x376   : > { %3026 = vrot.lane.b32.xlu1 %v8152_v43, %s6072_s30  ;;  %3022 = vrot.lane.b32.xlu0 %v8164_v3, %s6072_s30  ;;  %v2684_v52 = vadd.f32 %v2683_v1, %v2682_v14  ;;  %v5981_v37 = vpop.eup %5980  ;;  %v2093_v18 = vmax.f32 %v2091_v51, %v2092_v60  ;;  %v2085_v24 = vrot.slane %v2084_v27, 4  ;;  %v2171_v14 = vsub.f32 %v8250_v63, %v2083_v48 }
 0x377   : > { %v2692_v46 = vrot.slane %v2691_v54, 2  ;;  %v5983_v8 = vpop.eup %5982  ;;  %v2170_v16 = vsub.f32 %v8254_v6, %v2076_v42  ;;  %v8338_v29 = vmul.f32 %v8235_v45, %v8003_v2  ;;  %5994 = vrcp.f32 %v2674_v11 }
 0x378   : > { %v8320_v41 = vpop.permute.xlu1 %2986  ;;  %v8322_v15 = vpop.permute.xlu0 %2980  ;;  %v2685_v44 = vrot.slane %v2684_v52, 2  ;;  %v2094_v51 = vrot.slane %v2093_v18, 2  ;;  %v2294_v63 = vmul.f32 1.442695, %v2171_v14  ;;  %v2086_v5 = vmax.f32 %v2084_v27, %v2085_v24 }
 0x379   : > { %v2693_v19 = vadd.f32 %v2692_v46, %v2691_v54  ;;  %9994 = vst [vmem:[#allocation158_spill] sm:$0xff] %v8338_v29  ;;  %v8342_v54 = vmul.f32 %v8268_v38, %v8039_v28  ;;  %v2292_v6 = vmul.f32 1.442695, %v2170_v16  ;;  %4924 = vst.msk [vmem:[%s7036_s28 + $0x160] sm:$0xff] %vm1663_vm3, %v8338_v29  ;;  %v8355_v2 = vmul.f32 %v5979_v12, %v8068_v36 }
 0x37a   : > { %3218 = vrot.lane.b32.xlu1 %v8152_v43, %s6071_s29  ;;  %3214 = vrot.lane.b32.xlu0 %v8164_v3, %s6071_s29  ;;  %v2686_v1 = vadd.f32 %v2685_v44, %v2684_v52  ;;  %v8357_v45 = vpop.eup %5984  ;;  %v2095_v13 = vmax.f32 %v2093_v18, %v2094_v51  ;;  %v8361_v11 = vadd.f32 %v7868_v0, %v8053_v39  ;;  %5996 = vpow2.f32 %v2294_v63 }
 0x37b   : > { %9995 = vst [vmem:[#allocation159_spill] sm:$0xff] %v8342_v54  ;;  %v2694_v60 = vrot.slane %v2693_v19, 1  ;;  %4927 = vst.msk [vmem:[%s7036_s28 + $0x178] sm:$0xff] %vm1663_vm3, %v8342_v54  ;;  %v2703_v46 = vsel %vm1663_vm3, %v8357_v45, 0.0  ;;  %v2087_v42 = vrot.slane %v2086_v5, 2  ;;  %v8374_v36 = vadd.f32 %v7868_v0, %v8066_v31 }
 0x37c   : > { %v8330_v23 = vpop.permute.xlu1 %3368  ;;  %v8332_v34 = vpop.permute.xlu0 %3364  ;;  %9996 = vst [vmem:[#allocation160_spill] sm:$0xff] %v8355_v2  ;;  %v2687_v38 = vrot.slane %v2686_v1, 1  ;;  %4926 = vst.msk [vmem:[%s7036_s28 + $0x170] sm:$0xff] %vm1663_vm3, %v8355_v2  ;;  %v2704_v12 = vrot.slane %v2703_v46, 4  ;;  %v2096_v44 = vrot.slane %v2095_v13, 1  ;;  %v2105_v63 = vsel %vm1663_vm3, %v8361_v11, -inf }
 0x37d   : > { %v2695_v28 = vadd.f32 %v2694_v60, %v2693_v19  ;;  %v8376_v18 = vpop.eup %5986  ;;  %v2088_v14 = vmax.f32 %v2086_v5, %v2087_v42 }
 0x37e   : > { %3408 = vrot.lane.b32.xlu1 %v8182_v22, %s6073_s5  ;;  %3406 = vrot.lane.b32.xlu0 %v8164_v3, %s6073_s5  ;;  %v2688_v39 = vadd.f32 %v2687_v38, %v2686_v1  ;;  %v5989_v27 = vpop.eup %5988  ;;  %v2696_v19 = vsel %vm1663_vm3, %v8376_v18, 0.0  ;;  %v2705_v0 = vadd.f32 %v2704_v12, %v2703_v46  ;;  %v2097_v51 = vmax.f32 %v2095_v13, %v2096_v44 }
 0x37f   : > { %5998 = vrcp.f32 %v2695_v28  ;;  %v5991_v24 = vpop.eup %5990  ;;  %v2697_v31 = vrot.slane %v2696_v19, 4  ;;  %v2098_v28 = vsel %vm1663_vm3, %v8374_v36, -inf  ;;  %v2106_v13 = vrot.slane %v2105_v63, 4 }
 0x380   : > { %v8365_v52 = vpop.permute.xlu1 %2990  ;;  %v8367_v48 = vpop.permute.xlu0 %3178  ;;  %6000 = vpow2.f32 %v2292_v6  ;;  %v8393_v6 = vmul.f32 %v5981_v37, %v8091_v9  ;;  %v2706_v38 = vrot.slane %v2705_v0, 2  ;;  %v2173_v5 = vsub.f32 %v8298_v49, %v2097_v51 }
 0x381   : > { %9997 = vst [vmem:[#allocation161_spill] sm:$0xff] %v8365_v52  ;;  %6002 = vrcp.f32 %v2688_v39  ;;  %v5993_v16 = vpop.eup %5992  ;;  %v2698_v46 = vadd.f32 %v2697_v31, %v2696_v19  ;;  %v2089_v39 = vrot.slane %v2088_v14, 1  ;;  %v2099_v42 = vrot.slane %v2098_v28, 4 }
 0x382   : > { %3030 = vrot.lane.b32.xlu1 %v8206_v35, %s6072_s30  ;;  %3020 = vrot.lane.b32.xlu0 %v8233_v55, %s6072_s30  ;;  %9999 = vst [vmem:[#allocation163_spill] sm:$0xff] %v8393_v6  ;;  %4929 = vst.msk [vmem:[%s7036_s28 + $0x188] sm:$0xff] %vm1663_vm3, %v8393_v6  ;;  %v8404_v9 = vmul.f32 %v5983_v8, %v8114_v17  ;;  %v5995_v37 = vpop.eup %5994  ;;  %v2707_v12 = vadd.f32 %v2706_v38, %v2705_v0  ;;  %v2298_v49 = vmul.f32 1.442695, %v2173_v5 }
 0x383   : > { %v2699_v19 = vrot.slane %v2698_v46, 2  ;;  %v2090_v44 = vmax.f32 %v2088_v14, %v2089_v39  ;;  %v8407_v31 = vmul.f32 %v5989_v27, %v8143_v58  ;;  %v2107_v51 = vmax.f32 %v2105_v63, %v2106_v13 }
 0x384   : > { %v8384_v60 = vpop.permute.xlu1 %3180  ;;  %v8386_v1 = vpop.permute.xlu0 %3370  ;;  %10000 = vst [vmem:[#allocation164_spill] sm:$0xff] %v8404_v9  ;;  %v2100_v52 = vmax.f32 %v2098_v28, %v2099_v42  ;;  %4928 = vst.msk [vmem:[%s7036_s28 + $0x180] sm:$0xff] %vm1663_vm3, %v8404_v9  ;;  %v8417_v17 = vmul.f32 %v5993_v16, %v8208_v7  ;;  %v2708_v8 = vrot.slane %v2707_v12, 1  ;;  %6004 = vpow2.f32 %v2298_v49 }
 0x385   : > { %9998 = vst [vmem:[#allocation162_spill] sm:$0xff] %v8384_v60  ;;  %10001 = vst [vmem:[#allocation165_spill] sm:$0xff] %v8407_v31  ;;  %v2700_v0 = vadd.f32 %v2699_v19, %v2698_v46  ;;  %v8422_v58 = vpop.eup %5996  ;;  %v2172_v27 = vsub.f32 %v8316_v20, %v2090_v44  ;;  %v2108_v14 = vrot.slane %v2107_v51, 2  ;;  %v8435_v46 = vmul.f32 %v5991_v24, %v8184_v57 }
 0x386   : > { %3222 = vrot.lane.b32.xlu1 %v8206_v35, %s6071_s29  ;;  %3212 = vrot.lane.b32.xlu0 %v8233_v55, %s6071_s29  ;;  %10002 = vst [vmem:[#allocation166_spill] sm:$0xff] %v8417_v17  ;;  %4931 = vst.msk [vmem:[%s7036_s28 + $0x198] sm:$0xff] %vm1663_vm3, %v8407_v31  ;;  %v2101_v63 = vrot.slane %v2100_v52, 2  ;;  %v2709_v16 = vadd.f32 %v2708_v8, %v2707_v12  ;;  %v2717_v38 = vsel %vm1663_vm3, %v8422_v58, 0.0 }
 0x387   : > { %4933 = vst.msk [vmem:[%s7036_s28 + $0x1a8] sm:$0xff] %vm1663_vm3, %v8417_v17  ;;  %v2701_v28 = vrot.slane %v2700_v0, 1  ;;  %10003 = vst [vmem:[#allocation167_spill] sm:$0xff] %v8435_v46  ;;  %v2718_v5 = vrot.slane %v2717_v38, 4  ;;  %v2296_v42 = vmul.f32 1.442695, %v2172_v27  ;;  %v2109_v19 = vmax.f32 %v2107_v51, %v2108_v14 }
 0x388   : > { %v8409_v3 = vpop.permute.xlu1 %2994  ;;  %v8411_v60 = vpop.permute.xlu0 %2984  ;;  %v2102_v44 = vmax.f32 %v2100_v52, %v2101_v63  ;;  %6006 = vrcp.f32 %v2709_v16  ;;  %4930 = vst.msk [vmem:[%s7036_s28 + $0x190] sm:$0xff] %vm1663_vm3, %v8435_v46 }
 0x389   : > { %v5999_v7 = vpop.eup %5998  ;;  %v2702_v12 = vadd.f32 %v2701_v28, %v2700_v0  ;;  %v2719_v57 = vadd.f32 %v2718_v5, %v2717_v38  ;;  %6008 = vpow2.f32 %v2296_v42  ;;  %v2110_v52 = vrot.slane %v2109_v19, 1 }
 0x38a   : > { %3414 = vrot.lane.b32.xlu1 %v8206_v35, %s6073_s5  ;;  %3404 = vrot.lane.b32.xlu0 %v8233_v55, %s6073_s5  ;;  %v8437_v39 = vpop.eup %6000  ;;  %v2103_v51 = vrot.slane %v2102_v44, 1  ;;  %v8453_v0 = vmul.f32 %v5995_v37, %v8237_v61  ;;  %v8460_v28 = vmul.f32 %v5999_v7, %v8293_v25 }
 0x38b   : > { %v6003_v49 = vpop.eup %6002  ;;  %v2710_v8 = vsel %vm1663_vm3, %v8437_v39, 0.0  ;;  %6010 = vrcp.f32 %v2702_v12  ;;  %v2720_v27 = vrot.slane %v2719_v57, 2  ;;  %v2111_v5 = vmax.f32 %v2109_v19, %v2110_v52 }
 0x38c   : > { %v8439_v13 = vpop.permute.xlu1 %3186  ;;  %v8441_v20 = vpop.permute.xlu0 %3176  ;;  %v2711_v24 = vrot.slane %v2710_v8, 4  ;;  %10004 = vst [vmem:[#allocation168_spill] sm:$0xff] %v8453_v0  ;;  %10005 = vst [vmem:[#allocation169_spill] sm:$0xff] %v8460_v28  ;;  %v8463_v38 = vmul.f32 %v6003_v49, %v8306_v10  ;;  %v2104_v42 = vmax.f32 %v2102_v44, %v2103_v51 }
 0x38d   : > { %4932 = vst.msk [vmem:[%s7036_s28 + $0x1a0] sm:$0xff] %vm1663_vm3, %v8453_v0  ;;  %v2721_v12 = vadd.f32 %v2720_v27, %v2719_v57  ;;  %4935 = vst.msk [vmem:[%s7036_s28 + $0x1b8] sm:$0xff] %vm1663_vm3, %v8460_v28  ;;  %v2175_v25 = vsub.f32 %v8361_v11, %v2111_v5 }
 0x38e   : > { %3220 = vrot.lane.b32.xlu1 %v8276_v30, %s6071_s29  ;;  %3410 = vrot.lane.b32.xlu0 %v8152_v43, %s6073_s5  ;;  %v2712_v14 = vadd.f32 %v2711_v24, %v2710_v8  ;;  %10006 = vst [vmem:[#allocation170_spill] sm:$0xff] %v8463_v38  ;;  %4934 = vst.msk [vmem:[%s7036_s28 + $0x1b0] sm:$0xff] %vm1663_vm3, %v8463_v38  ;;  %v2174_v10 = vsub.f32 %v8374_v36, %v2104_v42  ;;  %v8480_v37 = vpop.eup %6004 }
 0x38f   : > { %v2722_v7 = vrot.slane %v2721_v12, 1  ;;  %v2731_v8 = vsel %vm1663_vm3, %v8480_v37, 0.0  ;;  %v2302_v57 = vmul.f32 1.442695, %v2175_v25 }
 0x390   : > { %v8455_v63 = vpop.permute.xlu1 %3376  ;;  %v8457_v16 = vpop.permute.xlu0 %3182  ;;  %v2713_v61 = vrot.slane %v2712_v14, 2  ;;  %v2732_v11 = vrot.slane %v2731_v8, 4  ;;  %v2300_v36 = vmul.f32 1.442695, %v2174_v10 }
 0x391   : > { %v2723_v24 = vadd.f32 %v2722_v7, %v2721_v12  ;;  %6012 = vpow2.f32 %v2302_v57 }
 0x392   : > { %3412 = vrot.lane.b32.xlu1 %v8276_v30, %s6073_s5  ;;  %3024 = vrot.lane.b32.xlu0 %v8182_v22, %s6072_s30  ;;  %v2714_v19 = vadd.f32 %v2713_v61, %v2712_v14  ;;  %v6007_v51 = vpop.eup %6006  ;;  %v2733_v12 = vadd.f32 %v2732_v11, %v2731_v8 }
 0x393   : > { %v8492_v27 = vpop.eup %6008  ;;  %6014 = vrcp.f32 %v2723_v24  ;;  %v8499_v61 = vmul.f32 %v6007_v51, %v8357_v45 }
 0x394   : > { %v8482_v44 = vpop.permute.xlu1 %2998  ;;  %v8484_v49 = vpop.permute.xlu0 %3374  ;;  %v2715_v52 = vrot.slane %v2714_v19, 1  ;;  %v2724_v10 = vsel %vm1663_vm3, %v8492_v27, 0.0  ;;  %6016 = vpow2.f32 %v2300_v36  ;;  %v2734_v7 = vrot.slane %v2733_v12, 2 }
 0x395   : > { %10007 = vst [vmem:[#allocation171_spill] sm:$0xff] %v8499_v61  ;;  %v6011_v25 = vpop.eup %6010  ;;  %4937 = vst.msk [vmem:[%s7036_s28 + $0x1c8] sm:$0xff] %vm1663_vm3, %v8499_v61 }
 0x396   : > { %3034 = vrot.lane.b32.xlu1 %v8280_v50, %s6072_s30  ;;  %3216 = vrot.lane.b32.xlu0 %v8182_v22, %s6071_s29  ;;  %v2716_v14 = vadd.f32 %v2715_v52, %v2714_v19  ;;  %v2725_v19 = vrot.slane %v2724_v10, 4  ;;  %v8511_v45 = vmul.f32 %v6011_v25, %v8376_v18  ;;  %v2735_v24 = vadd.f32 %v2734_v7, %v2733_v12 }
 0x398   : > { %v8494_v5 = vpop.permute.xlu1 %3190  ;;  %v8496_v42 = vpop.permute.xlu0 %2988  ;;  %6018 = vrcp.f32 %v2716_v14  ;;  %10008 = vst [vmem:[#allocation172_spill] sm:$0xff] %v8511_v45  ;;  %v2726_v52 = vadd.f32 %v2725_v19, %v2724_v10  ;;  %4936 = vst.msk [vmem:[%s7036_s28 + $0x1c0] sm:$0xff] %vm1663_vm3, %v8511_v45  ;;  %v2736_v11 = vrot.slane %v2735_v24, 1 }
 0x39a   : > { %3226 = vrot.lane.b32.xlu1 %v8280_v50, %s6071_s29  ;;  %3028 = vrot.lane.b32.xlu0 %v8276_v30, %s6072_s30  ;;  %v2727_v36 = vrot.slane %v2726_v52, 2  ;;  %v2737_v51 = vadd.f32 %v2736_v11, %v2735_v24 }
 0x39b   : > { %v6013_v35 = vpop.eup %6012 }
 0x39c   : > { %v8513_v8 = vpop.permute.xlu1 %3188  ;;  %v8515_v57 = vpop.permute.xlu0 %3372  ;;  %v2728_v18 = vadd.f32 %v2727_v36, %v2726_v52  ;;  %6020 = vrcp.f32 %v2737_v51  ;;  %v2745_v7 = vsel %vm1663_vm3, %v6013_v35, 0.0 }
 0x39d   : > { %v6015_v12 = vpop.eup %6014  ;;  %v2746_v24 = vrot.slane %v2745_v7, 4 }
 0x39e   : > { %3418 = vrot.lane.b32.xlu1 %v8280_v50, %s6073_s5  ;;  %3032 = vrot.lane.b32.xlu0 %v8338_v29, %s6072_s30  ;;  %v2729_v10 = vrot.slane %v2728_v18, 1  ;;  %v6017_v19 = vpop.eup %6016  ;;  %v8534_v52 = vmul.f32 %v6015_v12, %v8422_v58 }
 0x39f   : > { %v2738_v30 = vsel %vm1663_vm3, %v6017_v19, 0.0  ;;  %v2747_v43 = vadd.f32 %v2746_v24, %v2745_v7 }
 0x3a0   : > { %v8524_v14 = vpop.permute.xlu1 %3380  ;;  %v8526_v25 = vpop.permute.xlu0 %3378  ;;  %10009 = vst [vmem:[#allocation173_spill] sm:$0xff] %v8534_v52  ;;  %v2730_v36 = vadd.f32 %v2729_v10, %v2728_v18  ;;  %v2739_v22 = vrot.slane %v2738_v30, 4  ;;  %4939 = vst.msk [vmem:[%s7036_s28 + $0x1d8] sm:$0xff] %vm1663_vm3, %v8534_v52 }
 0x3a1   : > { %v2748_v18 = vrot.slane %v2747_v43, 2 }
 0x3a2   : > { %3038 = vrot.lane.b32.xlu1 %v8342_v54, %s6072_s30  ;;  %3224 = vrot.lane.b32.xlu0 %v8338_v29, %s6071_s29  ;;  %v6019_v11 = vpop.eup %6018  ;;  %6022 = vrcp.f32 %v2730_v36  ;;  %v2740_v12 = vadd.f32 %v2739_v22, %v2738_v30 }
 0x3a3   : > { %v8549_v58 = vmul.f32 %v6019_v11, %v8437_v39  ;;  %v2749_v7 = vadd.f32 %v2748_v18, %v2747_v43 }
 0x3a4   : > { %v8536_v50 = vpop.permute.xlu1 %3002  ;;  %v8538_v51 = vpop.permute.xlu0 %2992  ;;  %v2741_v24 = vrot.slane %v2740_v12, 2 }
 0x3a5   : > { %10010 = vst [vmem:[#allocation174_spill] sm:$0xff] %v8549_v58  ;;  %4938 = vst.msk [vmem:[%s7036_s28 + $0x1d0] sm:$0xff] %vm1663_vm3, %v8549_v58  ;;  %v2750_v39 = vrot.slane %v2749_v7, 1 }
 0x3a6   : > { %3230 = vrot.lane.b32.xlu1 %v8342_v54, %s6071_s29  ;;  %3416 = vrot.lane.b32.xlu0 %v8338_v29, %s6073_s5  ;;  %v2742_v11 = vadd.f32 %v2741_v24, %v2740_v12  ;;  %v6021_v36 = vpop.eup %6020 }
 0x3a7   : > { %v2751_v29 = vadd.f32 %v2750_v39, %v2749_v7  ;;  %v8567_v43 = vmul.f32 %v6021_v36, %v8480_v37 }
 0x3a8   : > { %v8551_v10 = vpop.permute.xlu1 %3386  ;;  %v8553_v55 = vpop.permute.xlu0 %3184 }
 0x3a9   : > { %10011 = vst [vmem:[#allocation175_spill] sm:$0xff] %v8551_v10  ;;  %v2743_v10 = vrot.slane %v2742_v11, 1  ;;  %10012 = vst [vmem:[#allocation176_spill] sm:$0xff] %v8567_v43  ;;  %6024 = vrcp.f32 %v2751_v29 }
 0x3aa   : > { %3036 = vrot.lane.b32.xlu1 %v8355_v2, %s6072_s30  ;;  %3422 = vrot.lane.b32.xlu0 %v8342_v54, %s6073_s5  ;;  %4941 = vst.msk [vmem:[%s7036_s28 + $0x1e8] sm:$0xff] %vm1663_vm3, %v8567_v43 }
 0x3ab   : > { %v2744_v18 = vadd.f32 %v2743_v10, %v2742_v11 }
 0x3ac   : > { %v8562_v22 = vpop.permute.xlu1 %3192  ;;  %v8564_v30 = vpop.permute.xlu0 %3382 }
 0x3ad   : > { %v6023_v12 = vpop.eup %6022  ;;  %6026 = vrcp.f32 %v2744_v18 }
 0x3ae   : > { %3228 = vrot.lane.b32.xlu1 %v8355_v2, %s6071_s29  ;;  %3042 = vrot.lane.b32.xlu0 %v8393_v6, %s6072_s30  ;;  %v8581_v37 = vmul.f32 %v6023_v12, %v8492_v27 }
 0x3b0   : > { %v8576_v24 = vpop.permute.xlu1 %3384  ;;  %v8578_v54 = vpop.permute.xlu0 %2996  ;;  %10014 = vst [vmem:[#allocation178_spill] sm:$0xff] %v8581_v37  ;;  %4940 = vst.msk [vmem:[%s7036_s28 + $0x1e0] sm:$0xff] %vm1663_vm3, %v8581_v37 }
 0x3b1   : > { %10013 = vst [vmem:[#allocation177_spill] sm:$0xff] %v8576_v24 }
 0x3b2   : > { %3420 = vrot.lane.b32.xlu1 %v8355_v2, %s6073_s5  ;;  %3234 = vrot.lane.b32.xlu0 %v8393_v6, %s6071_s29 }
 0x3b3   : > { %v6025_v39 = vpop.eup %6024 }
 0x3b4   : > { %v8590_v29 = vpop.permute.xlu1 %3006  ;;  %v8592_v10 = vpop.permute.xlu0 %3194  ;;  %v8606_v11 = vmul.f32 %v6025_v39, %v6013_v35 }
 0x3b5   : > { %10015 = vst [vmem:[#allocation179_spill] sm:$0xff] %v8590_v29 }
 0x3b6   : > { %3040 = vrot.lane.b32.xlu1 %v8404_v9, %s6072_s30  ;;  %3426 = vrot.lane.b32.xlu0 %v8393_v6, %s6073_s5  ;;  %10017 = vst [vmem:[#allocation181_spill] sm:$0xff] %v8606_v11  ;;  %4943 = vst.msk [vmem:[%s7036_s28 + $0x1f8] sm:$0xff] %vm1663_vm3, %v8606_v11 }
 0x3b7   : > { %v6027_v36 = vpop.eup %6026 }
 0x3b8   : > { %v8598_v27 = vpop.permute.xlu1 %3198  ;;  %v8600_v7 = vpop.permute.xlu0 %3000  ;;  %v8615_v6 = vmul.f32 %v6027_v36, %v6017_v19 }
 0x3b9   : > { %10016 = vst [vmem:[#allocation180_spill] sm:$0xff] %v8598_v27 }
 0x3ba   : > { %3232 = vrot.lane.b32.xlu1 %v8404_v9, %s6071_s29  ;;  %3046 = vrot.lane.b32.xlu0 %v8407_v31, %s6072_s30  ;;  %10019 = vst [vmem:[#allocation183_spill] sm:$0xff] %v8615_v6  ;;  %4942 = vst.msk [vmem:[%s7036_s28 + $0x1f0] sm:$0xff] %vm1663_vm3, %v8615_v6 }
 0x3bc   : > { %v8608_v18 = vpop.permute.xlu1 %3390  ;;  %v8610_v12 = vpop.permute.xlu0 %3004 }
 0x3bd   : > { %10018 = vst [vmem:[#allocation182_spill] sm:$0xff] %v8608_v18 }
 0x3be   : > { %3424 = vrot.lane.b32.xlu1 %v8404_v9, %s6073_s5  ;;  %3238 = vrot.lane.b32.xlu0 %v8407_v31, %s6071_s29 }
 0x3c0   : > { %v8624_v35 = vpop.permute.xlu1 %3196  ;;  %v8626_v39 = vpop.permute.xlu0 %3008 }
 0x3c2   : > { %3050 = vrot.lane.b32.xlu1 %v8417_v17, %s6072_s30  ;;  %3430 = vrot.lane.b32.xlu0 %v8407_v31, %s6073_s5 }
 0x3c4   : > { %v8632_v19 = vpop.permute.xlu1 %3388  ;;  %v8634_v36 = vpop.permute.xlu0 %3200 }
 0x3c6   : > { %3434 = vrot.lane.b32.xlu1 %v8417_v17, %s6073_s5  ;;  %3044 = vrot.lane.b32.xlu0 %v8435_v46, %s6072_s30 }
 0x3c8   : > { %v8640_v9 = vpop.permute.xlu1 %3010  ;;  %v8642_v2 = vpop.permute.xlu0 %3392 }
 0x3c9   : > { %10020 = vst [vmem:[#allocation184_spill] sm:$0xff] %v8640_v9 }
 0x3ca   : > { %3432 = vrot.lane.b32.xlu1 %v8453_v0, %s6073_s5  ;;  %3236 = vrot.lane.b32.xlu0 %v8435_v46, %s6071_s29 }
 0x3cc   : > { %v8648_v31 = vpop.permute.xlu1 %3202  ;;  %v8650_v18 = vpop.permute.xlu0 %3206 }
 0x3cd   : > { %10021 = vst [vmem:[#allocation185_spill] sm:$0xff] %v8648_v31  ;;  %10022 = vst [vmem:[#allocation186_spill] sm:$0xff] %v8650_v18 }
 0x3ce   : > { %3054 = vrot.lane.b32.xlu1 %v8460_v28, %s6072_s30  ;;  %3428 = vrot.lane.b32.xlu0 %v8435_v46, %s6073_s5 }
 0x3d0   : > { %v8656_v27 = vpop.permute.xlu1 %3394  ;;  %v8658_v9 = vpop.permute.xlu0 %3398 }
 0x3d1   : > { %10023 = vst [vmem:[#allocation187_spill] sm:$0xff] %v8656_v27  ;;  %10024 = vst [vmem:[#allocation188_spill] sm:$0xff] %v8658_v9 }
 0x3d2   : > { %3438 = vrot.lane.b32.xlu1 %v8460_v28, %s6073_s5  ;;  %3242 = vrot.lane.b32.xlu0 %v8417_v17, %s6071_s29 }
 0x3d4   : > { %v8664_v29 = vpop.permute.xlu1 %3014  ;;  %v8666_v31 = vpop.permute.xlu0 %3012 }
 0x3d5   : > { %10025 = vst [vmem:[#allocation189_spill] sm:$0xff] %v8664_v29 }
 0x3d6   : > { %3244 = vrot.lane.b32.xlu1 %v8463_v38, %s6071_s29  ;;  %3048 = vrot.lane.b32.xlu0 %v8453_v0, %s6072_s30 }
 0x3d8   : > { %v8672_v46 = vpop.permute.xlu1 %3204  ;;  %v8674_v18 = vpop.permute.xlu0 %3396 }
 0x3d9   : > { %10026 = vst [vmem:[#allocation190_spill] sm:$0xff] %v8672_v46  ;;  %10027 = vst [vmem:[#allocation191_spill] sm:$0xff] %v8674_v18  ;;  %v10045_v18 = vld [vmem:[#allocation69_spill] sm:$0xff] }
 0x3da   : > { %3056 = vrot.lane.b32.xlu1 %v8511_v45, %s6072_s30  ;;  %3240 = vrot.lane.b32.xlu0 %v8453_v0, %s6071_s29 }
 0x3dc   : > { %v8680_v17 = vpop.permute.xlu1 %3018  ;;  %v8682_v9 = vpop.permute.xlu0 %3016 }
 0x3dd   : > { %10028 = vst [vmem:[#allocation192_spill] sm:$0xff] %v8680_v17  ;;  %10029 = vst [vmem:[#allocation193_spill] sm:$0xff] %v8682_v9 }
 0x3de   : > { %3248 = vrot.lane.b32.xlu1 %v8511_v45, %s6071_s29  ;;  %3246 = vrot.lane.b32.xlu0 %v8460_v28, %s6071_s29 }
 0x3e0   : > { %v8688_v27 = vpop.permute.xlu1 %3210  ;;  %v8690_v29 = vpop.permute.xlu0 %3208 }
 0x3e1   : > { %10030 = vst [vmem:[#allocation194_spill] sm:$0xff] %v8688_v27  ;;  %10031 = vst [vmem:[#allocation195_spill] sm:$0xff] %v8690_v29  ;;  %v10044_v27 = vld [vmem:[#allocation97_spill] sm:$0xff] }
 0x3e2   : > { %3440 = vrot.lane.b32.xlu1 %v8511_v45, %s6073_s5  ;;  %3052 = vrot.lane.b32.xlu0 %v8463_v38, %s6072_s30 }
 0x3e4   : > { %v8696_v0 = vpop.permute.xlu1 %3402  ;;  %v8698_v17 = vpop.permute.xlu0 %3400 }
 0x3e5   : > { %10032 = vst [vmem:[#allocation196_spill] sm:$0xff] %v8696_v0  ;;  %10033 = vst [vmem:[#allocation197_spill] sm:$0xff] %v8698_v17  ;;  %v10043_v17 = vld [vmem:[#allocation66_spill] sm:$0xff] }
 0x3e6   : > { %3062 = vrot.lane.b32.xlu1 %v8534_v52, %s6072_s30  ;;  %3436 = vrot.lane.b32.xlu0 %v8463_v38, %s6073_s5 }
 0x3e8   : > { %v8704_v28 = vpop.permute.xlu1 %3026  ;;  %v8706_v9 = vpop.permute.xlu0 %3022 }
 0x3e9   : > { %10034 = vst [vmem:[#allocation198_spill] sm:$0xff] %v8704_v28  ;;  %10035 = vst [vmem:[#allocation199_spill] sm:$0xff] %v8706_v9 }
 0x3ea   : > { %3254 = vrot.lane.b32.xlu1 %v8534_v52, %s6071_s29  ;;  %3058 = vrot.lane.b32.xlu0 %v8499_v61, %s6072_s30 }
 0x3ec   : > { %v8712_v45 = vpop.permute.xlu1 %3218  ;;  %v8714_v29 = vpop.permute.xlu0 %3214 }
 0x3ed   : > { %10036 = vst [vmem:[#allocation200_spill] sm:$0xff] %v8712_v45  ;;  %10037 = vst [vmem:[#allocation201_spill] sm:$0xff] %v8714_v29  ;;  %v10042_v29 = vld [vmem:[#allocation94_spill] sm:$0xff] }
 0x3ee   : > { %3060 = vrot.lane.b32.xlu1 %v8549_v58, %s6072_s30  ;;  %3250 = vrot.lane.b32.xlu0 %v8499_v61, %s6071_s29  ;;  %v3521_v0 = vsel %vm1663_vm3, %v10043_v17, %v10042_v29  ;;  %v10049_v29 = vld [vmem:[#allocation96_spill] sm:$0xff] }
 0x3f0   : > { %v8720_v38 = vpop.permute.xlu1 %3408  ;;  %v8722_v28 = vpop.permute.xlu0 %3406 }
 0x3f1   : > { %10038 = vst [vmem:[#allocation202_spill] sm:$0xff] %v8720_v38  ;;  %10039 = vst [vmem:[#allocation203_spill] sm:$0xff] %v8722_v28  ;;  %v3520_v38 = vsel %vm1663_vm3, %v10045_v18, %v10044_v27  ;;  %v10046_v28 = vld [vmem:[#allocation99_spill] sm:$0xff]  ;;  %v10050_v18 = vld [vmem:[#allocation100_spill] sm:$0xff] }
 0x3f2   : > { %3252 = vrot.lane.b32.xlu1 %v8549_v58, %s6071_s29  ;;  %3442 = vrot.lane.b32.xlu0 %v8499_v61, %s6073_s5  ;;  %v3585_v46 = vsel %vm3584_vm4, %v3520_v38, %v10046_v28  ;;  %v10047_v61 = vld [vmem:[#allocation95_spill] sm:$0xff] }
 0x3f3   : > { %v3650_v24 = vsel %vm3649_vm5, %v3585_v46, %v10050_v18  ;;  %v10059_v18 = vld [vmem:[#allocation106_spill] sm:$0xff] }
 0x3f4   : > { %v8728_v9 = vpop.permute.xlu1 %3030  ;;  %v8730_v45 = vpop.permute.xlu0 %3020 }
 0x3f5   : > { %10040 = vst [vmem:[#allocation204_spill] sm:$0xff] %v8728_v9  ;;  %10041 = vst [vmem:[#allocation205_spill] sm:$0xff] %v8730_v45  ;;  %v3586_v9 = vsel %vm3584_vm4, %v3521_v0, %v10047_v61 }
 0x3f6   : > { %3444 = vrot.lane.b32.xlu1 %v8549_v58, %s6073_s5  ;;  %3446 = vrot.lane.b32.xlu0 %v8534_v52, %s6073_s5  ;;  %v3651_v27 = vsel %vm3649_vm5, %v3586_v9, %v10049_v29  ;;  %v10058_v29 = vld [vmem:[#allocation73_spill] sm:$0xff]  ;;  %v10060_v58 = vld [vmem:[#allocation74_spill] sm:$0xff] }
 0x3f7   : > { %v3522_v52 = vsel %vm1663_vm3, %v10060_v58, %v10059_v18  ;;  %v10066_v58 = vld [vmem:[#allocation108_spill] sm:$0xff] }
 0x3f8   : > { %v8746_v45 = vpop.permute.xlu1 %3222  ;;  %v8748_v17 = vpop.permute.xlu0 %3212 }
 0x3f9   : > { %10048 = vst [vmem:[#allocation94_spill] sm:$0xff] %v8746_v45 }
 0x3fa   : > { %3780 = vrot.lane.b32.xlu1 %v3651_v27, %s6074_s10  ;;  %3778 = vrot.lane.b32.xlu0 %v3650_v24, %s6074_s10  ;;  %v10057_v24 = vld [vmem:[#allocation101_spill] sm:$0xff] }
 0x3fb   : > { %v3523_v27 = vsel %vm1663_vm3, %v10058_v29, %v10057_v24  ;;  %v10065_v24 = vld [vmem:[#allocation105_spill] sm:$0xff] }
 0x3fc   : > { %v8756_v28 = vpop.permute.xlu1 %3414  ;;  %v8758_v38 = vpop.permute.xlu0 %3404 }
 0x3fd   : > { %10051 = vst [vmem:[#allocation66_spill] sm:$0xff] %v8756_v28  ;;  %10052 = vst [vmem:[#allocation97_spill] sm:$0xff] %v8758_v38  ;;  %v10061_v28 = vld [vmem:[#allocation107_spill] sm:$0xff] }
 0x3fe   : > { %3066 = vrot.lane.b32.xlu1 %v8567_v43, %s6072_s30  ;;  %3258 = vrot.lane.b32.xlu0 %v8567_v43, %s6071_s29  ;;  %v3587_v45 = vsel %vm3584_vm4, %v3522_v52, %v10061_v28  ;;  %v10096_v38 = vld [vmem:[#allocation127_spill] sm:$0xff] }
 0x3ff   : > { %v3652_v18 = vsel %vm3649_vm5, %v3587_v45, %v10066_v58  ;;  %v10071_v45 = vld [vmem:[#allocation122_spill] sm:$0xff] }
 0x400   : > { %v8764_v0 = vpop.permute.xlu1 %3220  ;;  %v8766_v9 = vpop.permute.xlu0 %3410 }
 0x401   : > { %10053 = vst [vmem:[#allocation69_spill] sm:$0xff] %v8764_v0  ;;  %10054 = vst [vmem:[#allocation99_spill] sm:$0xff] %v8766_v9 }
 0x402   : > { %3450 = vrot.lane.b32.xlu1 %v8567_v43, %s6073_s5  ;;  %3064 = vrot.lane.b32.xlu0 %v8581_v37, %s6072_s30  ;;  %v10062_v43 = vld [vmem:[#allocation102_spill] sm:$0xff] }
 0x404   : > { %v8772_v46 = vpop.permute.xlu1 %3412  ;;  %v8774_v61 = vpop.permute.xlu0 %3024 }
 0x405   : > { %10055 = vst [vmem:[#allocation95_spill] sm:$0xff] %v8772_v46  ;;  %10056 = vst [vmem:[#allocation96_spill] sm:$0xff] %v8774_v61  ;;  %v3588_v46 = vsel %vm3584_vm4, %v3523_v27, %v10062_v43  ;;  %v10072_v27 = vld [vmem:[#allocation80_spill] sm:$0xff] }
 0x406   : > { %3256 = vrot.lane.b32.xlu1 %v8581_v37, %s6071_s29  ;;  %3448 = vrot.lane.b32.xlu0 %v8581_v37, %s6073_s5  ;;  %v3653_v29 = vsel %vm3649_vm5, %v3588_v46, %v10065_v24  ;;  %v3527_v24 = vsel %vm1663_vm3, %v10072_v27, %v10071_v45  ;;  %v10076_v37 = vld [vmem:[#allocation78_spill] sm:$0xff] }
 0x408   : > { %v8790_v0 = vpop.permute.xlu1 %3034  ;;  %v8792_v9 = vpop.permute.xlu0 %3216 }
 0x409   : > { %10063 = vst [vmem:[#allocation100_spill] sm:$0xff] %v8790_v0  ;;  %10064 = vst [vmem:[#allocation101_spill] sm:$0xff] %v8792_v9  ;;  %v10078_v0 = vld [vmem:[#allocation118_spill] sm:$0xff]  ;;  %v10088_v9 = vld [vmem:[#allocation117_spill] sm:$0xff] }
 0x40a   : > { %3784 = vrot.lane.b32.xlu1 %v3653_v29, %s6074_s10  ;;  %3782 = vrot.lane.b32.xlu0 %v3652_v18, %s6074_s10  ;;  %v10075_v18 = vld [vmem:[#allocation111_spill] sm:$0xff] }
 0x40c   : > { %v8800_v52 = vpop.permute.xlu1 %3226  ;;  %v8802_v28 = vpop.permute.xlu0 %3028 }
 0x40d   : > { %10067 = vst [vmem:[#allocation73_spill] sm:$0xff] %v8800_v52  ;;  %10068 = vst [vmem:[#allocation106_spill] sm:$0xff] %v8802_v28  ;;  %v10077_v52 = vld [vmem:[#allocation113_spill] sm:$0xff] }
 0x40e   : > { %3070 = vrot.lane.b32.xlu1 %v8606_v11, %s6072_s30  ;;  %3262 = vrot.lane.b32.xlu0 %v8606_v11, %s6071_s29 }
 0x410   : > { %v8808_v43 = vpop.permute.xlu1 %3418  ;;  %v8810_v46 = vpop.permute.xlu0 %3032 }
 0x411   : > { %10069 = vst [vmem:[#allocation74_spill] sm:$0xff] %v8808_v43  ;;  %10070 = vst [vmem:[#allocation107_spill] sm:$0xff] %v8810_v46  ;;  %v3525_v43 = vsel %vm1663_vm3, %v10076_v37, %v10075_v18  ;;  %v10083_v18 = vld [vmem:[#allocation112_spill] sm:$0xff] }
 0x412   : > { %3454 = vrot.lane.b32.xlu1 %v8606_v11, %s6073_s5  ;;  %3068 = vrot.lane.b32.xlu0 %v8615_v6, %s6072_s30  ;;  %v3590_v46 = vsel %vm3584_vm4, %v3525_v43, %v10077_v52  ;;  %v3592_v11 = vsel %vm3584_vm4, %v3527_v24, %v10078_v0  ;;  %v10084_v43 = vld [vmem:[#allocation120_spill] sm:$0xff] }
 0x413   : > { %v3655_v52 = vsel %vm3649_vm5, %v3590_v46, %v10083_v18  ;;  %v3657_v0 = vsel %vm3649_vm5, %v3592_v11, %v10084_v43  ;;  %v10085_v24 = vld [vmem:[#allocation128_spill] sm:$0xff]  ;;  %v10091_v18 = vld [vmem:[#allocation119_spill] sm:$0xff] }
 0x414   : > { %v8819_v29 = vpop.permute.xlu1 %3038  ;;  %v8821_v58 = vpop.permute.xlu0 %3224  ;;  %v10092_v43 = vld [vmem:[#allocation123_spill] sm:$0xff] }
 0x415   : > { %10073 = vst [vmem:[#allocation102_spill] sm:$0xff] %v8819_v29  ;;  %10074 = vst [vmem:[#allocation105_spill] sm:$0xff] %v8821_v58  ;;  %v10081_v29 = vld [vmem:[#allocation126_spill] sm:$0xff] }
 0x416   : > { %3260 = vrot.lane.b32.xlu1 %v8615_v6, %s6071_s29  ;;  %3452 = vrot.lane.b32.xlu0 %v8615_v6, %s6073_s5  ;;  %v10082_v58 = vld [vmem:[#allocation82_spill] sm:$0xff] }
 0x417   : > { %v3529_v37 = vsel %vm1663_vm3, %v10082_v58, %v10081_v29  ;;  %v10086_v6 = vld [vmem:[#allocation114_spill] sm:$0xff] }
 0x418   : > { %v8834_v45 = vpop.permute.xlu1 %3230  ;;  %v8836_v27 = vpop.permute.xlu0 %3416  ;;  %v3594_v28 = vsel %vm3584_vm4, %v3529_v37, %v10085_v24  ;;  %v10093_v37 = vld [vmem:[#allocation81_spill] sm:$0xff]  ;;  %v10094_v24 = vld [vmem:[#allocation70_spill] sm:$0xff] }
 0x419   : > { %10079 = vst [vmem:[#allocation108_spill] sm:$0xff] %v8834_v45  ;;  %10080 = vst [vmem:[#allocation122_spill] sm:$0xff] %v8836_v27  ;;  %v10087_v45 = vld [vmem:[#allocation79_spill] sm:$0xff] }
 0x41a   : > { %3788 = vrot.lane.b32.xlu1 %v3655_v52, %s6074_s10  ;;  %3792 = vrot.lane.b32.xlu0 %v3657_v0, %s6074_s10  ;;  %v3524_v27 = vsel %vm1663_vm3, %v10087_v45, %v10086_v6  ;;  %v3526_v52 = vsel %vm1663_vm3, %v10093_v37, %v10092_v43  ;;  %v10095_v0 = vld [vmem:[#allocation84_spill] sm:$0xff]  ;;  %v3659_v6 = vsel %vm3649_vm5, %v3594_v28, %v10096_v38  ;;  %v10099_v37 = vld [vmem:[#allocation125_spill] sm:$0xff] }
 0x41b   : > { %v3589_v29 = vsel %vm3584_vm4, %v3524_v27, %v10088_v9  ;;  %v3531_v61 = vsel %vm1663_vm3, %v10095_v0, %v10094_v24  ;;  %v10097_v45 = vld [vmem:[#allocation124_spill] sm:$0xff]  ;;  %v10098_v27 = vld [vmem:[#allocation134_spill] sm:$0xff]  ;;  %v10100_v0 = vld [vmem:[#allocation129_spill] sm:$0xff] }
 0x41c   : > { %v8854_v58 = vpop.permute.xlu1 %3036  ;;  %v8856_v46 = vpop.permute.xlu0 %3422  ;;  %v3654_v11 = vsel %vm3649_vm5, %v3589_v29, %v10091_v18  ;;  %v3591_v9 = vsel %vm3584_vm4, %v3526_v52, %v10097_v45  ;;  %v3596_v29 = vsel %vm3584_vm4, %v3531_v61, %v10098_v27  ;;  %v10102_v28 = vld [vmem:[#allocation137_spill] sm:$0xff] }
 0x41d   : > { %10089 = vst [vmem:[#allocation80_spill] sm:$0xff] %v8854_v58  ;;  %10090 = vst [vmem:[#allocation111_spill] sm:$0xff] %v8856_v46  ;;  %v3656_v24 = vsel %vm3649_vm5, %v3591_v9, %v10099_v37  ;;  %v10101_v46 = vld [vmem:[#allocation83_spill] sm:$0xff]  ;;  %v3661_v52 = vsel %vm3649_vm5, %v3596_v29, %v10102_v28  ;;  %v10104_v45 = vld [vmem:[#allocation85_spill] sm:$0xff] }
 0x41e   : > { %3786 = vrot.lane.b32.xlu1 %v3654_v11, %s6074_s10  ;;  %3796 = vrot.lane.b32.xlu0 %v3659_v6, %s6074_s10  ;;  %v3528_v38 = vsel %vm1663_vm3, %v10101_v46, %v10100_v0  ;;  %v10103_v11 = vld [vmem:[#allocation138_spill] sm:$0xff]  ;;  %v10105_v58 = vld [vmem:[#allocation133_spill] sm:$0xff]  ;;  %v10106_v9 = vld [vmem:[#allocation76_spill] sm:$0xff] }
 0x41f   : > { %v3530_v6 = vsel %vm1663_vm3, %v10104_v45, %v10103_v11  ;;  %v3593_v61 = vsel %vm3584_vm4, %v3528_v38, %v10105_v58  ;;  %v3534_v27 = vsel %vm1663_vm3, %v10106_v9, %v8188_v62  ;;  %v10107_v37 = vld [vmem:[#allocation136_spill] sm:$0xff]  ;;  %v10108_v28 = vld [vmem:[#allocation90_spill] sm:$0xff] }
 0x420   : > { %v8874_v18 = vpop.permute.xlu1 %3228  ;;  %v8876_v43 = vpop.permute.xlu0 %3042  ;;  %v3595_v46 = vsel %vm3584_vm4, %v3530_v6, %v10107_v37  ;;  %v10109_v11 = vld [vmem:[#allocation86_spill] sm:$0xff]  ;;  %v10111_v37 = vld [vmem:[#allocation87_spill] sm:$0xff] }
 0x421   : > { %v3533_v45 = vsel %vm1663_vm3, %v10109_v11, %v10108_v28  ;;  %v3660_v58 = vsel %vm3649_vm5, %v3595_v46, %v8072_v53  ;;  %v3532_v53 = vsel %vm1663_vm3, %v10111_v37, %v8126_v40  ;;  %v10114_v28 = vld [vmem:[#allocation144_spill] sm:$0xff] }
 0x422   : > { %3790 = vrot.lane.b32.xlu1 %v3656_v24, %s6074_s10  ;;  %3800 = vrot.lane.b32.xlu0 %v3661_v52, %s6074_s10  ;;  %v10110_v24 = vld [vmem:[#allocation132_spill] sm:$0xff]  ;;  %v3598_v62 = vsel %vm3584_vm4, %v3533_v45, %v8095_v26  ;;  %v3599_v52 = vsel %vm3584_vm4, %v3534_v27, %v8154_v59  ;;  %v3597_v11 = vsel %vm3584_vm4, %v3532_v53, %v10114_v28  ;;  %v10115_v45 = vld [vmem:[#allocation154_spill] sm:$0xff]  ;;  %v10119_v53 = vld [vmem:[#allocation77_spill] sm:$0xff] }
 0x423   : > { %v3658_v38 = vsel %vm3649_vm5, %v3593_v61, %v10110_v24  ;;  %v10112_v61 = vld [vmem:[#allocation68_spill] sm:$0xff]  ;;  %v3664_v26 = vsel %vm3649_vm5, %v3599_v52, %v8186_v56  ;;  %v10118_v52 = vld [vmem:[#allocation141_spill] sm:$0xff] }
 0x424   : > { %v8897_v0 = vpop.permute.xlu1 %3420  ;;  %v8899_v29 = vpop.permute.xlu0 %3234  ;;  %v3536_v46 = vsel %vm1663_vm3, %v10112_v61, %v8229_v32  ;;  %v10113_v59 = vld [vmem:[#allocation140_spill] sm:$0xff]  ;;  %v10116_v32 = vld [vmem:[#allocation155_spill] sm:$0xff]  ;;  %v3662_v37 = vsel %vm3649_vm5, %v3597_v11, %v10118_v52 }
 0x425   : > { %v3663_v27 = vsel %vm3649_vm5, %v3598_v62, %v10113_v59  ;;  %v10120_v61 = vld [vmem:[#allocation88_spill] sm:$0xff]  ;;  %v10126_v52 = vld [vmem:[#allocation151_spill] sm:$0xff] }
 0x426   : > { %3794 = vrot.lane.b32.xlu1 %v3658_v38, %s6074_s10  ;;  %3798 = vrot.lane.b32.xlu0 %v3660_v58, %s6074_s10  ;;  %v3601_v58 = vsel %vm3584_vm4, %v3536_v46, %v10115_v45  ;;  %v10117_v38 = vld [vmem:[#allocation89_spill] sm:$0xff]  ;;  %v3535_v46 = vsel %vm1663_vm3, %v10120_v61, %v10119_v53  ;;  %v10122_v45 = vld [vmem:[#allocation146_spill] sm:$0xff] }
 0x427   : > { %v3666_v56 = vsel %vm3649_vm5, %v3601_v58, %v10116_v32  ;;  %v3538_v62 = vsel %vm1663_vm3, %v10117_v38, %v8322_v15  ;;  %v10123_v58 = vld [vmem:[#allocation150_spill] sm:$0xff]  ;;  %v10124_v32 = vld [vmem:[#allocation67_spill] sm:$0xff] }
 0x428   : > { %v8914_v6 = vpop.permute.xlu1 %3040  ;;  %v8916_v9 = vpop.permute.xlu0 %3426 }
 0x42a   : > { %3806 = vrot.lane.b32.xlu1 %v3664_v26, %s6074_s10  ;;  %3804 = vrot.lane.b32.xlu0 %v3663_v27, %s6074_s10  ;;  %v10121_v26 = vld [vmem:[#allocation143_spill] sm:$0xff]  ;;  %v3603_v27 = vsel %vm3584_vm4, %v3538_v62, %v8302_v4 }
 0x42b   : > { %v3600_v59 = vsel %vm3584_vm4, %v3535_v46, %v10121_v26  ;;  %v3668_v38 = vsel %vm3649_vm5, %v3603_v27, %v8332_v34  ;;  %v10125_v4 = vld [vmem:[#allocation91_spill] sm:$0xff]  ;;  %v10127_v26 = vld [vmem:[#allocation152_spill] sm:$0xff] }
 0x42c   : > { %v8934_v40 = vpop.permute.xlu1 %3232  ;;  %v8936_v24 = vpop.permute.xlu0 %3046  ;;  %v3665_v11 = vsel %vm3649_vm5, %v3600_v59, %v10122_v45  ;;  %v3541_v62 = vsel %vm1663_vm3, %v10125_v4, %v8320_v41  ;;  %v10128_v59 = vld [vmem:[#allocation71_spill] sm:$0xff]  ;;  %v10129_v45 = vld [vmem:[#allocation72_spill] sm:$0xff] }
 0x42d   : > { %v3606_v53 = vsel %vm3584_vm4, %v3541_v62, %v8367_v48  ;;  %v3539_v27 = vsel %vm1663_vm3, %v10128_v59, %v8270_v47  ;;  %v10135_v59 = vld [vmem:[#allocation98_spill] sm:$0xff] }
 0x42e   : > { %3810 = vrot.lane.b32.xlu1 %v3666_v56, %s6074_s10  ;;  %3802 = vrot.lane.b32.xlu0 %v3662_v37, %s6074_s10  ;;  %v3537_v56 = vsel %vm1663_vm3, %v10124_v32, %v10123_v58  ;;  %v3671_v41 = vsel %vm3649_vm5, %v3606_v53, %v8386_v1  ;;  %v3604_v58 = vsel %vm3584_vm4, %v3539_v27, %v8272_v21  ;;  %v10132_v21 = vld [vmem:[#allocation75_spill] sm:$0xff] }
 0x42f   : > { %v3602_v37 = vsel %vm3584_vm4, %v3537_v56, %v10126_v52  ;;  %v3669_v1 = vsel %vm3649_vm5, %v3604_v58, %v8304_v33  ;;  %v10130_v56 = vld [vmem:[#allocation93_spill] sm:$0xff]  ;;  %v10133_v52 = vld [vmem:[#allocation162_spill] sm:$0xff]  ;;  %v3545_v27 = vsel %vm1663_vm3, %v10135_v59, %v8409_v3 }
 0x430   : > { %v8954_v28 = vpop.permute.xlu1 %3424  ;;  %v8956_v15 = vpop.permute.xlu0 %3238  ;;  %v3667_v34 = vsel %vm3649_vm5, %v3602_v37, %v10127_v26  ;;  %v10134_v26 = vld [vmem:[#allocation103_spill] sm:$0xff] }
 0x432   : > { %3814 = vrot.lane.b32.xlu1 %v3668_v38, %s6074_s10  ;;  %3808 = vrot.lane.b32.xlu0 %v3665_v11, %s6074_s10  ;;  %v3540_v11 = vsel %vm1663_vm3, %v10129_v45, %v8411_v60  ;;  %v3542_v60 = vsel %vm1663_vm3, %v10130_v56, %v8496_v42  ;;  %v10131_v38 = vld [vmem:[#allocation161_spill] sm:$0xff] }
 0x433   : > { %v3605_v48 = vsel %vm3584_vm4, %v3540_v11, %v8441_v20  ;;  %v3543_v4 = vsel %vm1663_vm3, %v10132_v21, %v10131_v38  ;;  %v3607_v33 = vsel %vm3584_vm4, %v3542_v60, %v10133_v52  ;;  %v10141_v21 = vld [vmem:[#allocation175_spill] sm:$0xff] }
 0x434   : > { %v8974_v61 = vpop.permute.xlu1 %3050  ;;  %v8976_v46 = vpop.permute.xlu0 %3430  ;;  %v3670_v20 = vsel %vm3649_vm5, %v3605_v48, %v8330_v23  ;;  %v3608_v62 = vsel %vm3584_vm4, %v3543_v4, %v8457_v16  ;;  %v3672_v53 = vsel %vm3649_vm5, %v3607_v33, %v8515_v57  ;;  %v3610_v57 = vsel %vm3584_vm4, %v3545_v27, %v8439_v13  ;;  %v10148_v27 = vld [vmem:[#allocation180_spill] sm:$0xff] }
 0x435   : > { %v3673_v23 = vsel %vm3649_vm5, %v3608_v62, %v8484_v49  ;;  %v10136_v49 = vld [vmem:[#allocation109_spill] sm:$0xff] }
 0x436   : > { %3820 = vrot.lane.b32.xlu1 %v3671_v41, %s6074_s10  ;;  %3812 = vrot.lane.b32.xlu0 %v3667_v34, %s6074_s10  ;;  %v3544_v34 = vsel %vm1663_vm3, %v10134_v26, %v8538_v51  ;;  %v3546_v41 = vsel %vm1663_vm3, %v10136_v49, %v8578_v54  ;;  %v10137_v54 = vld [vmem:[#allocation104_spill] sm:$0xff] }
 0x437   : > { %v3609_v16 = vsel %vm3584_vm4, %v3544_v34, %v8553_v55  ;;  %v3675_v55 = vsel %vm3649_vm5, %v3610_v57, %v8526_v25  ;;  %v3611_v3 = vsel %vm3584_vm4, %v3546_v41, %v8513_v8  ;;  %v3547_v13 = vsel %vm1663_vm3, %v10137_v54, %v8482_v44  ;;  %v10145_v34 = vld [vmem:[#allocation190_spill] sm:$0xff]  ;;  %v10152_v54 = vld [vmem:[#allocation131_spill] sm:$0xff] }
 0x438   : > { %v8994_v32 = vpop.permute.xlu1 %3434  ;;  %v8996_v47 = vpop.permute.xlu0 %3044  ;;  %v3674_v11 = vsel %vm3649_vm5, %v3609_v16, %v8455_v63  ;;  %v3612_v48 = vsel %vm3584_vm4, %v3547_v13, %v8494_v5  ;;  %v10138_v63 = vld [vmem:[#allocation110_spill] sm:$0xff]  ;;  %v3676_v56 = vsel %vm3649_vm5, %v3611_v3, %v8524_v14  ;;  %v10139_v5 = vld [vmem:[#allocation115_spill] sm:$0xff]  ;;  %v10147_v16 = vld [vmem:[#allocation116_spill] sm:$0xff] }
 0x439   : > { %v3677_v8 = vsel %vm3649_vm5, %v3612_v48, %v8564_v30  ;;  %v3548_v60 = vsel %vm1663_vm3, %v10139_v5, %v8600_v7  ;;  %v10149_v41 = vld [vmem:[#allocation182_spill] sm:$0xff]  ;;  %v10151_v3 = vld [vmem:[#allocation184_spill] sm:$0xff]  ;;  %v10153_v48 = vld [vmem:[#allocation189_spill] sm:$0xff] }
 0x43a   : > { %3818 = vrot.lane.b32.xlu1 %v3670_v20, %s6074_s10  ;;  %3816 = vrot.lane.b32.xlu0 %v3669_v1, %s6074_s10  ;;  %v3549_v1 = vsel %vm1663_vm3, %v10138_v63, %v8536_v50  ;;  %v10140_v20 = vld [vmem:[#allocation121_spill] sm:$0xff]  ;;  %v3613_v7 = vsel %vm3584_vm4, %v3548_v60, %v8562_v22  ;;  %v10143_v22 = vld [vmem:[#allocation139_spill] sm:$0xff]  ;;  %v3553_v13 = vsel %vm1663_vm3, %v10152_v54, %v10151_v3 }
 0x43b   : > { %v3614_v44 = vsel %vm3584_vm4, %v3549_v1, %v8592_v10  ;;  %v3550_v50 = vsel %vm1663_vm3, %v10140_v20, %v8610_v12  ;;  %v10142_v12 = vld [vmem:[#allocation130_spill] sm:$0xff]  ;;  %v10154_v63 = vld [vmem:[#allocation135_spill] sm:$0xff]  ;;  %v10157_v5 = vld [vmem:[#allocation185_spill] sm:$0xff] }
 0x43c   : > { %v9014_v37 = vpop.permute.xlu1 %3432  ;;  %v9016_v42 = vpop.permute.xlu0 %3236  ;;  %v3615_v30 = vsel %vm3584_vm4, %v3550_v50, %v8624_v35  ;;  %v3679_v4 = vsel %vm3649_vm5, %v3614_v44, %v10141_v21  ;;  %v3552_v35 = vsel %vm1663_vm3, %v10142_v12, %v8626_v39  ;;  %v3555_v1 = vsel %vm1663_vm3, %v10154_v63, %v10153_v48  ;;  %v10158_v20 = vld [vmem:[#allocation194_spill] sm:$0xff]  ;;  %v10159_v21 = vld [vmem:[#allocation187_spill] sm:$0xff]  ;;  %v10171_v54 = vld [vmem:[#allocation201_spill] sm:$0xff] }
 0x43d   : > { %v3680_v10 = vsel %vm3649_vm5, %v3615_v30, %v8632_v19  ;;  %v3617_v62 = vsel %vm3584_vm4, %v3552_v35, %v8634_v36  ;;  %v10146_v36 = vld [vmem:[#allocation179_spill] sm:$0xff]  ;;  %v3618_v60 = vsel %vm3584_vm4, %v3553_v13, %v10157_v5  ;;  %v10161_v35 = vld [vmem:[#allocation186_spill] sm:$0xff] }
 0x43e   : > { %3822 = vrot.lane.b32.xlu1 %v3672_v53, %s6074_s10  ;;  %3824 = vrot.lane.b32.xlu0 %v3673_v23, %s6074_s10  ;;  %v3682_v33 = vsel %vm3649_vm5, %v3617_v62, %v8642_v2  ;;  %v3554_v23 = vsel %vm1663_vm3, %v10143_v22, %v8666_v31  ;;  %v10144_v53 = vld [vmem:[#allocation177_spill] sm:$0xff]  ;;  %v3551_v59 = vsel %vm1663_vm3, %v10147_v16, %v10146_v36  ;;  %v10163_v22 = vld [vmem:[#allocation142_spill] sm:$0xff] }
 0x43f   : > { %v3678_v26 = vsel %vm3649_vm5, %v3613_v7, %v10144_v53  ;;  %v3619_v39 = vsel %vm3584_vm4, %v3554_v23, %v10145_v34  ;;  %v3616_v2 = vsel %vm3584_vm4, %v3551_v59, %v10148_v27  ;;  %v10160_v7 = vld [vmem:[#allocation196_spill] sm:$0xff]  ;;  %v3620_v62 = vsel %vm3584_vm4, %v3555_v1, %v10161_v35  ;;  %v10164_v53 = vld [vmem:[#allocation195_spill] sm:$0xff]  ;;  %v10165_v36 = vld [vmem:[#allocation197_spill] sm:$0xff] }
 0x440   : > { %v9037_v45 = vpop.permute.xlu1 %3054  ;;  %v9039_v51 = vpop.permute.xlu0 %3428  ;;  %v3681_v57 = vsel %vm3649_vm5, %v3616_v2, %v10149_v41  ;;  %v10166_v59 = vld [vmem:[#allocation188_spill] sm:$0xff]  ;;  %v10167_v2 = vld [vmem:[#allocation199_spill] sm:$0xff]  ;;  %v10179_v35 = vld [vmem:[#allocation106_spill] sm:$0xff] }
 0x441   : > { %v3685_v27 = vsel %vm3649_vm5, %v3620_v62, %v10166_v59  ;;  %v10168_v41 = vld [vmem:[#allocation147_spill] sm:$0xff]  ;;  %v10180_v62 = vld [vmem:[#allocation156_spill] sm:$0xff]  ;;  %v10183_v59 = vld [vmem:[#allocation202_spill] sm:$0xff] }
 0x442   : > { %3828 = vrot.lane.b32.xlu1 %v3675_v55, %s6074_s10  ;;  %3826 = vrot.lane.b32.xlu0 %v3674_v11, %s6074_s10  ;;  %v10150_v55 = vld [vmem:[#allocation191_spill] sm:$0xff] }
 0x443   : > { %v3684_v11 = vsel %vm3649_vm5, %v3619_v39, %v10150_v55  ;;  %v10169_v55 = vld [vmem:[#allocation205_spill] sm:$0xff] }
 0x444   : > { %v9054_v58 = vpop.permute.xlu1 %3438  ;;  %v9056_v25 = vpop.permute.xlu0 %3242 }
 0x446   : > { %3830 = vrot.lane.b32.xlu1 %v3676_v56, %s6074_s10  ;;  %3832 = vrot.lane.b32.xlu0 %v3677_v8, %s6074_s10  ;;  %v10155_v8 = vld [vmem:[#allocation192_spill] sm:$0xff] }
 0x447   : > { %v10156_v56 = vld [vmem:[#allocation92_spill] sm:$0xff] }
 0x448   : > { %v9077_v38 = vpop.permute.xlu1 %3244  ;;  %v9079_v14 = vpop.permute.xlu0 %3048  ;;  %v3557_v44 = vsel %vm1663_vm3, %v10156_v56, %v10155_v8  ;;  %v10172_v8 = vld [vmem:[#allocation203_spill] sm:$0xff] }
 0x449   : > { %v3622_v50 = vsel %vm3584_vm4, %v3557_v44, %v10158_v20  ;;  %v10173_v44 = vld [vmem:[#allocation97_spill] sm:$0xff]  ;;  %v10175_v20 = vld [vmem:[#allocation148_spill] sm:$0xff] }
 0x44a   : > { %3838 = vrot.lane.b32.xlu1 %v3680_v10, %s6074_s10  ;;  %3836 = vrot.lane.b32.xlu0 %v3679_v4, %s6074_s10  ;;  %v3683_v4 = vsel %vm3649_vm5, %v3618_v60, %v10159_v21  ;;  %v3687_v12 = vsel %vm3649_vm5, %v3622_v50, %v10160_v7  ;;  %v10174_v60 = vld [vmem:[#allocation96_spill] sm:$0xff]  ;;  %v10176_v21 = vld [vmem:[#allocation101_spill] sm:$0xff] }
 0x44b   : > { %v3560_v50 = vsel %vm1663_vm3, %v10175_v20, %v10174_v60  ;;  %v10178_v7 = vld [vmem:[#allocation145_spill] sm:$0xff]  ;;  %v10190_v60 = vld [vmem:[#allocation100_spill] sm:$0xff] }
 0x44c   : > { %v9094_v52 = vpop.permute.xlu1 %3056  ;;  %v9096_v19 = vpop.permute.xlu0 %3240  ;;  %v10191_v20 = vld [vmem:[#allocation157_spill] sm:$0xff] }
 0x44e   : > { %3842 = vrot.lane.b32.xlu1 %v3682_v33, %s6074_s10  ;;  %3834 = vrot.lane.b32.xlu0 %v3678_v26, %s6074_s10  ;;  %v10162_v33 = vld [vmem:[#allocation193_spill] sm:$0xff] }
 0x44f   : > { %v3556_v23 = vsel %vm1663_vm3, %v10163_v22, %v10162_v33  ;;  %v3562_v33 = vsel %vm1663_vm3, %v10180_v62, %v10179_v35  ;;  %v10181_v22 = vld [vmem:[#allocation200_spill] sm:$0xff] }
 0x450   : > { %v9114_v49 = vpop.permute.xlu1 %3248  ;;  %v9116_v31 = vpop.permute.xlu0 %3246  ;;  %v3621_v26 = vsel %vm3584_vm4, %v3556_v23, %v10164_v53 }
 0x451   : > { %v3686_v16 = vsel %vm3649_vm5, %v3621_v26, %v10165_v36  ;;  %v10182_v36 = vld [vmem:[#allocation99_spill] sm:$0xff] }
 0x452   : > { %3846 = vrot.lane.b32.xlu1 %v3684_v11, %s6074_s10  ;;  %3840 = vrot.lane.b32.xlu0 %v3681_v57, %s6074_s10  ;;  %v3559_v57 = vsel %vm1663_vm3, %v10168_v41, %v10167_v2  ;;  %v10170_v11 = vld [vmem:[#allocation153_spill] sm:$0xff] }
 0x453   : > { %v3558_v3 = vsel %vm1663_vm3, %v10170_v11, %v10169_v55  ;;  %v3624_v13 = vsel %vm3584_vm4, %v3559_v57, %v10171_v54  ;;  %v10184_v2 = vld [vmem:[#allocation69_spill] sm:$0xff]  ;;  %v10185_v57 = vld [vmem:[#allocation204_spill] sm:$0xff] }
 0x454   : > { %v9137_v30 = vpop.permute.xlu1 %3440  ;;  %v9139_v10 = vpop.permute.xlu0 %3052  ;;  %v3623_v48 = vsel %vm3584_vm4, %v3558_v3, %v8748_v17  ;;  %v3689_v56 = vsel %vm3649_vm5, %v3624_v13, %v10172_v8  ;;  %v10177_v17 = vld [vmem:[#allocation198_spill] sm:$0xff]  ;;  %v3627_v41 = vsel %vm3584_vm4, %v3562_v33, %v10184_v2  ;;  %v10186_v55 = vld [vmem:[#allocation149_spill] sm:$0xff] }
 0x455   : > { %v3688_v5 = vsel %vm3649_vm5, %v3623_v48, %v10173_v44  ;;  %v3563_v11 = vsel %vm1663_vm3, %v10186_v55, %v10185_v57  ;;  %v10187_v3 = vld [vmem:[#allocation94_spill] sm:$0xff]  ;;  %v10189_v44 = vld [vmem:[#allocation95_spill] sm:$0xff] }
 0x456   : > { %3852 = vrot.lane.b32.xlu1 %v3687_v12, %s6074_s10  ;;  %3844 = vrot.lane.b32.xlu0 %v3683_v4, %s6074_s10  ;;  %v3625_v4 = vsel %vm3584_vm4, %v3560_v50, %v10176_v21  ;;  %v3561_v12 = vsel %vm1663_vm3, %v10178_v7, %v10177_v17  ;;  %v3628_v54 = vsel %vm3584_vm4, %v3563_v11, %v10187_v3  ;;  %v10188_v8 = vld [vmem:[#allocation66_spill] sm:$0xff]  ;;  %v10192_v21 = vld [vmem:[#allocation80_spill] sm:$0xff]  ;;  %v10194_v7 = vld [vmem:[#allocation73_spill] sm:$0xff] }
 0x457   : > { %v3626_v23 = vsel %vm3584_vm4, %v3561_v12, %v10181_v22  ;;  %v3565_v50 = vsel %vm1663_vm3, %v10191_v20, %v10190_v60  ;;  %v10195_v22 = vld [vmem:[#allocation74_spill] sm:$0xff]  ;;  %v10204_v60 = vld [vmem:[#allocation108_spill] sm:$0xff] }
 0x458   : > { %v9154_v34 = vpop.permute.xlu1 %3062  ;;  %v9156_v39 = vpop.permute.xlu0 %3436  ;;  %v3630_v12 = vsel %vm3584_vm4, %v3565_v50, %v10194_v7  ;;  %v10200_v3 = vld [vmem:[#allocation122_spill] sm:$0xff] }
 0x459   : > { %v10206_v7 = vld [vmem:[#allocation166_spill] sm:$0xff] }
 0x45a   : > { %3850 = vrot.lane.b32.xlu1 %v3686_v16, %s6074_s10  ;;  %3848 = vrot.lane.b32.xlu0 %v3685_v27, %s6074_s10  ;;  %v3691_v16 = vsel %vm3649_vm5, %v3626_v23, %v10182_v36  ;;  %v3690_v27 = vsel %vm3649_vm5, %v3625_v4, %v10183_v59  ;;  %v10193_v4 = vld [vmem:[#allocation160_spill] sm:$0xff]  ;;  %v3695_v23 = vsel %vm3649_vm5, %v3630_v12, %v10195_v22  ;;  %v10197_v59 = vld [vmem:[#allocation158_spill] sm:$0xff] }
 0x45b   : > { %v3566_v17 = vsel %vm1663_vm3, %v10193_v4, %v10192_v21  ;;  %v10205_v4 = vld [vmem:[#allocation111_spill] sm:$0xff]  ;;  %v3573_v12 = vsel %vm1663_vm3, %v10206_v7, %v8974_v61 }
 0x45c   : > { %v9174_v63 = vpop.permute.xlu1 %3254  ;;  %v9176_v1 = vpop.permute.xlu0 %3058  ;;  %v3631_v35 = vsel %vm3584_vm4, %v3566_v17, %v8874_v18  ;;  %v10198_v18 = vld [vmem:[#allocation164_spill] sm:$0xff] }
 0x45d   : > { %v3696_v36 = vsel %vm3649_vm5, %v3631_v35, %v8897_v0  ;;  %v3568_v2 = vsel %vm1663_vm3, %v10198_v18, %v8914_v6  ;;  %v10202_v6 = vld [vmem:[#allocation159_spill] sm:$0xff]  ;;  %v10210_v18 = vld [vmem:[#allocation168_spill] sm:$0xff] }
 0x45e   : > { %3854 = vrot.lane.b32.xlu1 %v3688_v5, %s6074_s10  ;;  %3856 = vrot.lane.b32.xlu0 %v3689_v56, %s6074_s10  ;;  %v3693_v56 = vsel %vm3649_vm5, %v3628_v54, %v10188_v8  ;;  %v3692_v5 = vsel %vm3649_vm5, %v3627_v41, %v10189_v44  ;;  %v10199_v41 = vld [vmem:[#allocation105_spill] sm:$0xff]  ;;  %v3633_v55 = vsel %vm3584_vm4, %v3568_v2, %v8934_v40 }
 0x45f   : > { %v3698_v8 = vsel %vm3649_vm5, %v3633_v55, %v8954_v28  ;;  %v3572_v2 = vsel %vm1663_vm3, %v10210_v18, %v9079_v14 }
 0x460   : > { %v9197_v53 = vpop.permute.xlu1 %3060  ;;  %v9199_v26 = vpop.permute.xlu0 %3250 }
 0x462   : > { %3860 = vrot.lane.b32.xlu1 %v3691_v16, %s6074_s10  ;;  %3858 = vrot.lane.b32.xlu0 %v3690_v27, %s6074_s10  ;;  %v10196_v16 = vld [vmem:[#allocation107_spill] sm:$0xff] }
 0x463   : > { %v3564_v27 = vsel %vm1663_vm3, %v10197_v59, %v10196_v16  ;;  %v10209_v16 = vld [vmem:[#allocation3_spill] sm:$0xff] }
 0x464   : > { %v9214_v13 = vpop.permute.xlu1 %3252  ;;  %v9216_v48 = vpop.permute.xlu0 %3442  ;;  %v3629_v57 = vsel %vm3584_vm4, %v3564_v27, %v10199_v41  ;;  %v3637_v41 = vsel %vm3584_vm4, %v3572_v2, %v9096_v19 }
 0x465   : > { %v3694_v54 = vsel %vm3649_vm5, %v3629_v57, %v10200_v3 }
 0x466   : > { %3862 = vrot.lane.b32.xlu1 %v3692_v5, %s6074_s10  ;;  %3864 = vrot.lane.b32.xlu0 %v3693_v56, %s6074_s10  ;;  %v10201_v56 = vld [vmem:[#allocation102_spill] sm:$0xff]  ;;  %v10203_v5 = vld [vmem:[#allocation167_spill] sm:$0xff] }
 0x467   : > { %v3567_v44 = vsel %vm1663_vm3, %v10202_v6, %v10201_v56  ;;  %v3570_v40 = vsel %vm1663_vm3, %v10203_v5, %v8996_v47  ;;  %v3638_v47 = vsel %vm3584_vm4, %v3573_v12, %v9056_v25 }
 0x468   : > { %v9234_v62 = vpop.permute.xlu1 %3444  ;;  %v9236_v33 = vpop.permute.xlu0 %3446  ;;  %v3632_v20 = vsel %vm3584_vm4, %v3567_v44, %v10204_v60  ;;  %v3635_v50 = vsel %vm3584_vm4, %v3570_v40, %v9016_v42  ;;  %v10207_v42 = vld [vmem:[#allocation163_spill] sm:$0xff]  ;;  %v10214_v40 = vld [vmem:[#allocation4_spill] sm:$0xff] }
 0x469   : > { %v3697_v17 = vsel %vm3649_vm5, %v3632_v20, %v10205_v4  ;;  %v3700_v35 = vsel %vm3649_vm5, %v3635_v50, %v9039_v51  ;;  %v3569_v22 = vsel %vm1663_vm3, %v10207_v42, %v8876_v43  ;;  %v3703_v43 = vsel %vm3649_vm5, %v3638_v47, %v8994_v32  ;;  %v10215_v20 = vld [vmem:[#allocation5_spill] sm:$0xff] }
 0x46a   : > { %3870 = vrot.lane.b32.xlu1 %v3696_v36, %s6074_s10  ;;  %3868 = vrot.lane.b32.xlu0 %v3695_v23, %s6074_s10  ;;  %v10208_v23 = vld [vmem:[#allocation2_spill] sm:$0xff]  ;;  %v3634_v61 = vsel %vm3584_vm4, %v3569_v22, %v8899_v29  ;;  %v10211_v29 = vld [vmem:[#allocation165_spill] sm:$0xff] }
 0x46b   : > { %v3699_v25 = vsel %vm3649_vm5, %v3634_v61, %v8916_v9  ;;  %v3571_v57 = vsel %vm1663_vm3, %v10211_v29, %v8936_v24 }
 0x46c   : > { %v3781_v11 = vpop.permute.xlu1 %3780  ;;  %v3779_v0 = vpop.permute.xlu0 %3778  ;;  %v3636_v14 = vsel %vm3584_vm4, %v3571_v57, %v8956_v15  ;;  %v10213_v15 = vld [vmem:[#allocation172_spill] sm:$0xff] }
 0x46d   : > { %v3971_v36 = vmul.f32 %v3781_v11, %v10208_v23  ;;  %v3970_v59 = vmul.f32 %v3779_v0, %v10209_v16  ;;  %v3701_v19 = vsel %vm3649_vm5, %v3636_v14, %v8976_v46  ;;  %v10212_v0 = vld [vmem:[#allocation170_spill] sm:$0xff]  ;;  %v3576_v56 = vsel %vm1663_vm3, %v10213_v15, %v9094_v52 }
 0x46e   : > { %3874 = vrot.lane.b32.xlu1 %v3698_v8, %s6074_s10  ;;  %3866 = vrot.lane.b32.xlu0 %v3694_v54, %s6074_s10  ;;  %v3574_v3 = vsel %vm1663_vm3, %v10212_v0, %v9139_v10  ;;  %v3702_v54 = vsel %vm3649_vm5, %v3637_v41, %v9014_v37  ;;  %v3641_v46 = vsel %vm3584_vm4, %v3576_v56, %v9114_v49 }
 0x46f   : > { %v4042_v9 = vsel %vm4034_vm6, %v3971_v36, 0.0  ;;  %v4035_v55 = vsel %vm4034_vm6, %v3970_v59, 0.0  ;;  %v3639_v6 = vsel %vm3584_vm4, %v3574_v3, %v9077_v38  ;;  %v3706_v37 = vsel %vm3649_vm5, %v3641_v46, %v9137_v30  ;;  %v10216_v38 = vld [vmem:[#allocation173_spill] sm:$0xff]  ;;  %v10218_v36 = vld [vmem:[#allocation176_spill] sm:$0xff] }
 0x470   : > { %v3067_v21 = vpop.permute.xlu1 %3066  ;;  %v9270_v28 = vpop.permute.xlu0 %3258  ;;  %v4043_v24 = vrot.slane %v4042_v9, 4  ;;  %v4036_v8 = vrot.slane %v4035_v55, 4  ;;  %v3704_v5 = vsel %vm3649_vm5, %v3639_v6, %v9156_v39  ;;  %v3579_v49 = vsel %vm1663_vm3, %v10216_v38, %v9154_v34 }
 0x471   : > { %v3644_v12 = vsel %vm3584_vm4, %v3579_v49, %v9174_v63  ;;  %v3581_v16 = vsel %vm1663_vm3, %v10218_v36, %v3067_v21  ;;  %v10219_v63 = vld [vmem:[#allocation174_spill] sm:$0xff] }
 0x472   : > { %3872 = vrot.lane.b32.xlu0 %v3697_v17, %s6074_s10  ;;  %3878 = vrot.lane.b32.xlu1 %v3700_v35, %s6074_s10  ;;  %v4044_v4 = vadd.f32 %v4043_v24, %v4042_v9  ;;  %v4037_v52 = vadd.f32 %v4036_v8, %v4035_v55  ;;  %v10217_v17 = vld [vmem:[#allocation171_spill] sm:$0xff]  ;;  %v3646_v21 = vsel %vm3584_vm4, %v3581_v16, %v9270_v28 }
 0x473   : > { %v3577_v30 = vsel %vm1663_vm3, %v10217_v17, %v9176_v1  ;;  %v3709_v1 = vsel %vm3649_vm5, %v3644_v12, %v9236_v33  ;;  %v10223_v24 = vld [vmem:[#allocation183_spill] sm:$0xff] }
 0x474   : > { %v9290_v51 = vpop.permute.xlu1 %3450  ;;  %v9292_v27 = vpop.permute.xlu0 %3064  ;;  %v3642_v35 = vsel %vm3584_vm4, %v3577_v30, %v9199_v26  ;;  %v4045_v59 = vrot.slane %v4044_v4, 2  ;;  %v4038_v61 = vrot.slane %v4037_v52, 2  ;;  %v3578_v26 = vsel %vm1663_vm3, %v10219_v63, %v9197_v53  ;;  %v305_v30 = vld [vmem:[%s9681_s1 + $0x68] sm:$0xff] }
 0x475   : > { %v3707_v34 = vsel %vm3649_vm5, %v3642_v35, %v9216_v48  ;;  %v10220_v48 = vld [vmem:[#allocation169_spill] sm:$0xff]  ;;  %v3643_v33 = vsel %vm3584_vm4, %v3578_v26, %v9214_v13  ;;  %v3711_v9 = vsel %vm3649_vm5, %v3646_v21, %v9290_v51 }
 0x476   : > { %3876 = vrot.lane.b32.xlu0 %v3699_v25, %s6074_s10  ;;  %3884 = vrot.lane.b32.xlu1 %v3703_v43, %s6074_s10  ;;  %v3575_v2 = vsel %vm1663_vm3, %v10220_v48, %v9037_v45  ;;  %v3708_v53 = vsel %vm3649_vm5, %v3643_v33, %v9234_v62  ;;  %v10221_v45 = vld [vmem:[#allocation178_spill] sm:$0xff]  ;;  %v4046_v13 = vadd.f32 %v4045_v59, %v4044_v4 }
 0x477   : > { %v3640_v57 = vsel %vm3584_vm4, %v3575_v2, %v9116_v31  ;;  %v3580_v55 = vsel %vm1663_vm3, %v10221_v45, %v9292_v27  ;;  %v4039_v14 = vadd.f32 %v4038_v61, %v4037_v52 }
 0x478   : > { %v3257_v11 = vpop.permute.xlu1 %3256  ;;  %v3449_v32 = vpop.permute.xlu0 %3448  ;;  %v3705_v8 = vsel %vm3649_vm5, %v3640_v57, %v9054_v58  ;;  %v10229_v57 = vld [vmem:[#allocation12_spill] sm:$0xff] }
 0x479   : > { %v3645_v28 = vsel %vm3584_vm4, %v3580_v55, %v3257_v11  ;;  %v4047_v11 = vrot.slane %v4046_v13, 1  ;;  %v4040_v15 = vrot.slane %v4039_v14, 1 }
 0x47a   : > { %3880 = vrot.lane.b32.xlu0 %v3701_v19, %s6074_s10  ;;  %3882 = vrot.lane.b32.xlu1 %v3702_v54, %s6074_s10  ;;  %v3710_v62 = vsel %vm3649_vm5, %v3645_v28, %v3449_v32  ;;  %v10222_v54 = vld [vmem:[#allocation181_spill] sm:$0xff] }
 0x47b   : > { %v4041_v4 = vadd.f32 %v4040_v15, %v4039_v14  ;;  %v10231_v15 = vld [vmem:[#allocation13_spill] sm:$0xff] }
 0x47c   : > { %v3785_v10 = vpop.permute.xlu1 %3784  ;;  %v3783_v44 = vpop.permute.xlu0 %3782 }
 0x47d   : > { %v3973_v60 = vmul.f32 %v3785_v10, %v10214_v40  ;;  %v3972_v50 = vmul.f32 %v3783_v44, %v10215_v20  ;;  %v10224_v40 = vld [vmem:[#allocation6_spill] sm:$0xff] }
 0x47e   : > { %3890 = vrot.lane.b32.xlu0 %v3706_v37, %s6074_s10  ;;  %3886 = vrot.lane.b32.xlu1 %v3704_v5, %s6074_s10 }
 0x47f   : > { %v4056_v39 = vsel %vm4034_vm6, %v3973_v60, 0.0  ;;  %v4049_v7 = vsel %vm4034_vm6, %v3972_v50, 0.0  ;;  %v10225_v60 = vld [vmem:[#allocation8_spill] sm:$0xff]  ;;  %v4048_v50 = vadd.f32 %v4047_v11, %v4046_v13 }
 0x480   : > { %v4057_v47 = vrot.slane %v4056_v39, 4  ;;  %v4050_v42 = vrot.slane %v4049_v7, 4  ;;  %v3071_v22 = vpop.permute.xlu1 %3070  ;;  %v3263_v23 = vpop.permute.xlu0 %3262 }
 0x481   : > { %v3583_v51 = vsel %vm1663_vm3, %v10222_v54, %v3071_v22  ;;  %v10226_v22 = vld [vmem:[#allocation7_spill] sm:$0xff]  ;;  %v4552_v36 = vsel %vm4551_vm7, %v4048_v50, %v4041_v4 }
 0x482   : > { %v4051_v25 = vadd.f32 %v4050_v42, %v4049_v7  ;;  %3892 = vrot.lane.b32.xlu1 %v3707_v34, %s6074_s10  ;;  %3896 = vrot.lane.b32.xlu0 %v3709_v1, %s6074_s10  ;;  %v4058_v18 = vadd.f32 %v4057_v47, %v4056_v39  ;;  %v3648_v32 = vsel %vm3584_vm4, %v3583_v51, %v3263_v23  ;;  %v306_v39 = vld [vmem:[%s9681_s1 + $0x70] sm:$0xff]  ;;  %v10227_v34 = vld [vmem:[#allocation10_spill] sm:$0xff] }
 0x483   : > { %v5626_v42 = vpack.c.bf16 %v306_v39, %v305_v30  ;;  %v10233_v39 = vld [vmem:[#allocation14_spill] sm:$0xff] }
 0x484   : > { %v4052_v43 = vrot.slane %v4051_v25, 2  ;;  %v3455_v41 = vpop.permute.xlu1 %3454  ;;  %v3069_v29 = vpop.permute.xlu0 %3068  ;;  %v4059_v19 = vrot.slane %v4058_v18, 2 }
 0x485   : > { %v3582_v27 = vsel %vm1663_vm3, %v10223_v24, %v3069_v29  ;;  %v3713_v37 = vsel %vm3649_vm5, %v3648_v32, %v3455_v41  ;;  %5627 = vmatprep.subr.bf16.mxu1 %v5626_v42  ;;  %v10228_v41 = vld [vmem:[#allocation9_spill] sm:$0xff] }
 0x486   : > { %3894 = vrot.lane.b32.xlu1 %v3708_v53, %s6074_s10  ;;  %3900 = vrot.lane.b32.xlu0 %v3711_v9, %s6074_s10  ;;  %v4053_v31 = vadd.f32 %v4052_v43, %v4051_v25  ;;  %v4060_v46 = vadd.f32 %v4059_v19, %v4058_v18 }
 0x487   : > { %5629 = vmatpush3.bf16.msra.mxu1 %v5626_v42 }
 0x488   : > { %v3261_v0 = vpop.permute.xlu1 %3260  ;;  %v3453_v3 = vpop.permute.xlu0 %3452  ;;  %v4054_v6 = vrot.slane %v4053_v31, 1  ;;  %v4061_v52 = vrot.slane %v4060_v46, 1 }
 0x489   : > { %v3647_v56 = vsel %vm3584_vm4, %v3582_v27, %v3261_v0 }
 0x48a   : > { %3888 = vrot.lane.b32.xlu1 %v3705_v8, %s6074_s10  ;;  %3898 = vrot.lane.b32.xlu0 %v3710_v62, %s6074_s10  ;;  %v3712_v5 = vsel %vm3649_vm5, %v3647_v56, %v3453_v3  ;;  %v4055_v38 = vadd.f32 %v4054_v6, %v4053_v31  ;;  %v4062_v61 = vadd.f32 %v4061_v52, %v4060_v46  ;;  %v10230_v8 = vld [vmem:[#allocation11_spill] sm:$0xff] }
 0x48c   : > { %v3789_v10 = vpop.permute.xlu1 %3788  ;;  %v3793_v44 = vpop.permute.xlu0 %3792  ;;  %v4554_v25 = vsel %vm4553_vm8, %v4055_v38, %v4552_v36 }
 0x48d   : > { %v3975_v58 = vmul.f32 %v3789_v10, %v10224_v40  ;;  %v3977_v20 = vmul.f32 %v3793_v44, %v10225_v60  ;;  %v9414_v19 = vsel %vm4555_vm9, %v4062_v61, %v4554_v25 }
 0x48e   : > { %3904 = vrot.lane.b32.xlu1 %v3713_v37, %s6074_s10  ;;  %3902 = vrot.lane.b32.xlu0 %v3712_v5, %s6074_s10 }
 0x48f   : > { %v4070_v49 = vsel %vm4034_vm6, %v3975_v58, 0.0  ;;  %v4084_v17 = vsel %vm4034_vm6, %v3977_v20, 0.0 }
 0x490   : > { %v4071_v7 = vrot.slane %v4070_v49, 4  ;;  %v4085_v12 = vrot.slane %v4084_v17, 4  ;;  %v3787_v35 = vpop.permute.xlu1 %3786  ;;  %v3797_v47 = vpop.permute.xlu0 %3796 }
 0x491   : > { %v3974_v23 = vmul.f32 %v3787_v35, %v10226_v22  ;;  %v3979_v1 = vmul.f32 %v3797_v47, %v10227_v34 }
 0x492   : > { %v4072_v16 = vadd.f32 %v4071_v7, %v4070_v49  ;;  %v4086_v59 = vadd.f32 %v4085_v12, %v4084_v17  ;;  %v10232_v17 = vld [vmem:[#allocation17_spill] sm:$0xff] }
 0x493   : > { %v4063_v63 = vsel %vm4034_vm6, %v3974_v23, 0.0  ;;  %v4098_v26 = vsel %vm4034_vm6, %v3979_v1, 0.0 }
 0x494   : > { %v4073_v18 = vrot.slane %v4072_v16, 2  ;;  %v4087_v48 = vrot.slane %v4086_v59, 2  ;;  %v4064_v2 = vrot.slane %v4063_v63, 4  ;;  %v4099_v33 = vrot.slane %v4098_v26, 4  ;;  %v3791_v21 = vpop.permute.xlu1 %3790  ;;  %v3801_v43 = vpop.permute.xlu0 %3800 }
 0x495   : > { %v3976_v29 = vmul.f32 %v3791_v21, %v10228_v41  ;;  %v3981_v53 = vmul.f32 %v3801_v43, %v10229_v57 }
 0x496   : > { %v4074_v9 = vadd.f32 %v4073_v18, %v4072_v16  ;;  %v4088_v45 = vadd.f32 %v4087_v48, %v4086_v59  ;;  %v4065_v55 = vadd.f32 %v4064_v2, %v4063_v63  ;;  %v4100_v13 = vadd.f32 %v4099_v33, %v4098_v26  ;;  %v10234_v48 = vld [vmem:[#allocation19_spill] sm:$0xff] }
 0x497   : > { %v4077_v14 = vsel %vm4034_vm6, %v3976_v29, 0.0  ;;  %v4112_v28 = vsel %vm4034_vm6, %v3981_v53, 0.0  ;;  %v10235_v33 = vld [vmem:[#allocation15_spill] sm:$0xff] }
 0x498   : > { %v4075_v31 = vrot.slane %v4074_v9, 1  ;;  %v4089_v0 = vrot.slane %v4088_v45, 1  ;;  %v4066_v3 = vrot.slane %v4065_v55, 2  ;;  %v4101_v62 = vrot.slane %v4100_v13, 2  ;;  %v3795_v54 = vpop.permute.xlu1 %3794  ;;  %v3799_v51 = vpop.permute.xlu0 %3798 }
 0x499   : > { %v4078_v24 = vrot.slane %v4077_v14, 4  ;;  %v4113_v27 = vrot.slane %v4112_v28, 4  ;;  %v3978_v11 = vmul.f32 %v3795_v54, %v10230_v8  ;;  %v3980_v56 = vmul.f32 %v3799_v51, %v10231_v15  ;;  %v10236_v51 = vld [vmem:[#allocation21_spill] sm:$0xff] }
 0x49a   : > { %v9418_v46 = vadd.f32 %v4075_v31, %v4074_v9  ;;  %v9420_v6 = vadd.f32 %v4089_v0, %v4088_v45  ;;  %v4067_v32 = vadd.f32 %v4066_v3, %v4065_v55  ;;  %v4102_v10 = vadd.f32 %v4101_v62, %v4100_v13 }
 0x49b   : > { %v4079_v44 = vadd.f32 %v4078_v24, %v4077_v14  ;;  %v4114_v37 = vadd.f32 %v4113_v27, %v4112_v28  ;;  %v4091_v5 = vsel %vm4034_vm6, %v3978_v11, 0.0  ;;  %v4105_v40 = vsel %vm4034_vm6, %v3980_v56, 0.0  ;;  %v10237_v27 = vld [vmem:[#allocation16_spill] sm:$0xff] }
 0x49c   : > { %v4068_v58 = vrot.slane %v4067_v32, 1  ;;  %v4103_v60 = vrot.slane %v4102_v10, 1  ;;  %v4092_v20 = vrot.slane %v4091_v5, 4  ;;  %v4106_v50 = vrot.slane %v4105_v40, 4  ;;  %v3807_v4 = vpop.permute.xlu1 %3806  ;;  %v3805_v52 = vpop.permute.xlu0 %3804 }
 0x49d   : > { %v4080_v38 = vrot.slane %v4079_v44, 2  ;;  %v4115_v49 = vrot.slane %v4114_v37, 2  ;;  %v3984_v30 = vmul.f32 %v3807_v4, %v10232_v17  ;;  %v3983_v7 = vmul.f32 %v3805_v52, %v10233_v39 }
 0x49e   : > { %v4069_v12 = vadd.f32 %v4068_v58, %v4067_v32  ;;  %v4104_v35 = vadd.f32 %v4103_v60, %v4102_v10  ;;  %v4093_v47 = vadd.f32 %v4092_v20, %v4091_v5  ;;  %v4107_v42 = vadd.f32 %v4106_v50, %v4105_v40 }
 0x49f   : > { %v4081_v22 = vadd.f32 %v4080_v38, %v4079_v44  ;;  %v4116_v23 = vadd.f32 %v4115_v49, %v4114_v37  ;;  %v4133_v34 = vsel %vm4034_vm6, %v3984_v30, 0.0  ;;  %v4126_v1 = vsel %vm4034_vm6, %v3983_v7, 0.0 }
 0x4a0   : > { %v4094_v36 = vrot.slane %v4093_v47, 2  ;;  %v4108_v16 = vrot.slane %v4107_v42, 2  ;;  %v4134_v59 = vrot.slane %v4133_v34, 4  ;;  %v4127_v61 = vrot.slane %v4126_v1, 4  ;;  %v3811_v25 = vpop.permute.xlu1 %3810  ;;  %v3803_v63 = vpop.permute.xlu0 %3802 }
 0x4a1   : > { %v4082_v26 = vrot.slane %v4081_v22, 1  ;;  %v4117_v18 = vrot.slane %v4116_v23, 1  ;;  %v3986_v2 = vmul.f32 %v3811_v25, %v10234_v48  ;;  %v3982_v21 = vmul.f32 %v3803_v63, %v10235_v33  ;;  %v10240_v33 = vld [vmem:[#allocation23_spill] sm:$0xff] }
 0x4a2   : > { %v4095_v43 = vadd.f32 %v4094_v36, %v4093_v47  ;;  %v4109_v41 = vadd.f32 %v4108_v16, %v4107_v42  ;;  %v4135_v29 = vadd.f32 %v4134_v59, %v4133_v34  ;;  %v4128_v57 = vadd.f32 %v4127_v61, %v4126_v1  ;;  %v10238_v36 = vld [vmem:[#allocation22_spill] sm:$0xff] }
 0x4a3   : > { %v4083_v53 = vadd.f32 %v4082_v26, %v4081_v22  ;;  %v9430_v9 = vadd.f32 %v4117_v18, %v4116_v23  ;;  %v4147_v45 = vsel %vm4034_vm6, %v3986_v2, 0.0  ;;  %v4119_v55 = vsel %vm4034_vm6, %v3982_v21, 0.0  ;;  %v10239_v59 = vld [vmem:[#allocation18_spill] sm:$0xff] }
 0x4a4   : > { %v4096_v13 = vrot.slane %v4095_v43, 1  ;;  %v4110_v14 = vrot.slane %v4109_v41, 1  ;;  %v4136_v28 = vrot.slane %v4135_v29, 2  ;;  %v4129_v31 = vrot.slane %v4128_v57, 2  ;;  %v3815_v0 = vpop.permute.xlu1 %3814  ;;  %v3809_v3 = vpop.permute.xlu0 %3808 }
 0x4a5   : > { %v4148_v62 = vrot.slane %v4147_v45, 4  ;;  %v4120_v54 = vrot.slane %v4119_v55, 4  ;;  %v3988_v24 = vmul.f32 %v3815_v0, %v10236_v51  ;;  %v3985_v8 = vmul.f32 %v3809_v3, %v10237_v27 }
 0x4a6   : > { %v4097_v11 = vadd.f32 %v4096_v13, %v4095_v43  ;;  %v4111_v15 = vadd.f32 %v4110_v14, %v4109_v41  ;;  %v4137_v56 = vadd.f32 %v4136_v28, %v4135_v29  ;;  %v4130_v32 = vadd.f32 %v4129_v31, %v4128_v57  ;;  %v10241_v13 = vld [vmem:[#allocation20_spill] sm:$0xff] }
 0x4a7   : > { %v4149_v10 = vadd.f32 %v4148_v62, %v4147_v45  ;;  %v4121_v44 = vadd.f32 %v4120_v54, %v4119_v55  ;;  %v4161_v37 = vsel %vm4034_vm6, %v3988_v24, 0.0  ;;  %v4140_v5 = vsel %vm4034_vm6, %v3985_v8, 0.0  ;;  %v10242_v62 = vld [vmem:[#allocation25_spill] sm:$0xff]  ;;  %v10243_v8 = vld [vmem:[#allocation24_spill] sm:$0xff] }
 0x4a8   : > { %v4565_v40 = vsel %vm4551_vm7, %v4104_v35, %v4097_v11  ;;  %v4138_v58 = vrot.slane %v4137_v56, 1  ;;  %v4131_v60 = vrot.slane %v4130_v32, 1  ;;  %v4162_v20 = vrot.slane %v4161_v37, 4  ;;  %v3821_v50 = vpop.permute.xlu1 %3820  ;;  %v3813_v4 = vpop.permute.xlu0 %3812 }
 0x4a9   : > { %v4566_v52 = vsel %vm4553_vm8, %v4111_v15, %v4565_v40  ;;  %v4150_v38 = vrot.slane %v4149_v10, 2  ;;  %v4122_v49 = vrot.slane %v4121_v44, 2  ;;  %v4141_v17 = vrot.slane %v4140_v5, 4 }
 0x4aa   : > { %v9440_v30 = vadd.f32 %v4138_v58, %v4137_v56  ;;  %v9442_v39 = vadd.f32 %v4131_v60, %v4130_v32  ;;  %v4163_v7 = vadd.f32 %v4162_v20, %v4161_v37  ;;  %v4558_v47 = vsel %vm4557_vm10, %v4069_v12, %v9414_v19 }
 0x4ab   : > { %v4151_v42 = vadd.f32 %v4150_v38, %v4149_v10  ;;  %v4123_v35 = vadd.f32 %v4122_v49, %v4121_v44  ;;  %v4142_v22 = vadd.f32 %v4141_v17, %v4140_v5  ;;  %v4560_v23 = vsel %vm4559_vm11, %v9418_v46, %v4558_v47 }
 0x4ac   : > { %v4164_v34 = vrot.slane %v4163_v7, 2  ;;  %v4562_v1 = vsel %vm4561_vm12, %v4083_v53, %v4560_v23  ;;  %v3991_v16 = vmul.f32 %v3821_v50, %v10238_v36  ;;  %v3987_v61 = vmul.f32 %v3813_v4, %v10239_v59  ;;  %v3819_v25 = vpop.permute.xlu1 %3818  ;;  %v3817_v63 = vpop.permute.xlu0 %3816 }
 0x4ad   : > { %v4152_v26 = vrot.slane %v4151_v42, 1  ;;  %v4124_v18 = vrot.slane %v4123_v35, 1  ;;  %v4143_v48 = vrot.slane %v4142_v22, 2  ;;  %v4564_v19 = vsel %vm4563_vm13, %v9420_v6, %v4562_v1 }
 0x4ae   : > { %v4165_v12 = vadd.f32 %v4164_v34, %v4163_v7  ;;  %4614 = vrot.lane.b32.xlu0 %v4564_v19, %s6075_s17  ;;  %v4182_v46 = vsel %vm4034_vm6, %v3991_v16, 0.0  ;;  %v4154_v2 = vsel %vm4034_vm6, %v3987_v61, 0.0  ;;  %v3990_v21 = vmul.f32 %v3819_v25, %v10240_v33  ;;  %v10244_v7 = vld [vmem:[#allocation26_spill] sm:$0xff] }
 0x4af   : > { %v4153_v43 = vadd.f32 %v4152_v26, %v4151_v42  ;;  %v4125_v41 = vadd.f32 %v4124_v18, %v4123_v35  ;;  %v4144_v29 = vadd.f32 %v4143_v48, %v4142_v22  ;;  %v4183_v57 = vrot.slane %v4182_v46, 4  ;;  %v10245_v42 = vld [vmem:[#allocation27_spill] sm:$0xff] }
 0x4b0   : > { %v4166_v53 = vrot.slane %v4165_v12, 1  ;;  %v4155_v45 = vrot.slane %v4154_v2, 4  ;;  %v4175_v55 = vsel %vm4034_vm6, %v3990_v21, 0.0  ;;  %v3989_v6 = vmul.f32 %v3817_v63, %v10241_v13  ;;  %v3823_v14 = vpop.permute.xlu1 %3822  ;;  %v3825_v28 = vpop.permute.xlu0 %3824 }
 0x4b1   : > { %v4145_v31 = vrot.slane %v4144_v29, 1  ;;  %v4184_v0 = vadd.f32 %v4183_v57, %v4182_v46  ;;  %v4176_v3 = vrot.slane %v4175_v55, 4  ;;  %v3992_v54 = vmul.f32 %v3823_v14, %v10242_v62 }
 0x4b2   : > { %v4167_v51 = vadd.f32 %v4166_v53, %v4165_v12  ;;  %v4156_v24 = vadd.f32 %v4155_v45, %v4154_v2  ;;  %v4168_v27 = vsel %vm4034_vm6, %v3989_v6, 0.0  ;;  %v3993_v11 = vmul.f32 %v3825_v28, %v10243_v8  ;;  %v10246_v8 = vld [vmem:[#allocation29_spill] sm:$0xff] }
 0x4b3   : > { %v4146_v15 = vadd.f32 %v4145_v31, %v4144_v29  ;;  %v4185_v56 = vrot.slane %v4184_v0, 2  ;;  %v4177_v32 = vadd.f32 %v4176_v3, %v4175_v55  ;;  %v4169_v10 = vrot.slane %v4168_v27, 4 }
 0x4b4   : > { %v4157_v44 = vrot.slane %v4156_v24, 2  ;;  %v4189_v37 = vsel %vm4034_vm6, %v3992_v54, 0.0  ;;  %v4196_v5 = vsel %vm4034_vm6, %v3993_v11, 0.0  ;;  %v3829_v40 = vpop.permute.xlu1 %3828  ;;  %v3827_v58 = vpop.permute.xlu0 %3826  ;;  %v4567_v60 = vsel %vm4555_vm9, %v9430_v9, %v4566_v52 }
 0x4b5   : > { %v4186_v20 = vadd.f32 %v4185_v56, %v4184_v0  ;;  %v4178_v50 = vrot.slane %v4177_v32, 2  ;;  %v4170_v4 = vadd.f32 %v4169_v10, %v4168_v27  ;;  %v4190_v38 = vrot.slane %v4189_v37, 4  ;;  %v10247_v10 = vld [vmem:[#allocation28_spill] sm:$0xff] }
 0x4b6   : > { %v4158_v49 = vadd.f32 %v4157_v44, %v4156_v24  ;;  %v4197_v17 = vrot.slane %v4196_v5, 4  ;;  %v3995_v47 = vmul.f32 %v3829_v40, %v10244_v7  ;;  %v3994_v35 = vmul.f32 %v3827_v58, %v10245_v42  ;;  %v10248_v40 = vld [vmem:[#allocation33_spill] sm:$0xff]  ;;  %v10249_v58 = vld [vmem:[#allocation30_spill] sm:$0xff] }
 0x4b7   : > { %v4187_v22 = vrot.slane %v4186_v20, 1  ;;  %v4179_v23 = vadd.f32 %v4178_v50, %v4177_v32  ;;  %v4171_v34 = vrot.slane %v4170_v4, 2  ;;  %v4191_v1 = vadd.f32 %v4190_v38, %v4189_v37 }
 0x4b8   : > { %v4159_v36 = vrot.slane %v4158_v49, 1  ;;  %v4198_v16 = vadd.f32 %v4197_v17, %v4196_v5  ;;  %v4210_v59 = vsel %vm4034_vm6, %v3995_v47, 0.0  ;;  %v4203_v9 = vsel %vm4034_vm6, %v3994_v35, 0.0  ;;  %v3831_v52 = vpop.permute.xlu1 %3830  ;;  %v3833_v61 = vpop.permute.xlu0 %3832 }
 0x4b9   : > { %v9470_v25 = vadd.f32 %v4187_v22, %v4186_v20  ;;  %v4180_v63 = vrot.slane %v4179_v23, 1  ;;  %v4172_v26 = vadd.f32 %v4171_v34, %v4170_v4  ;;  %v4192_v18 = vrot.slane %v4191_v1, 2  ;;  %v10250_v20 = vld [vmem:[#allocation35_spill] sm:$0xff] }
 0x4ba   : > { %v4160_v48 = vadd.f32 %v4159_v36, %v4158_v49  ;;  %v4199_v19 = vrot.slane %v4198_v16, 2  ;;  %v4211_v12 = vrot.slane %v4210_v59, 4  ;;  %v4204_v46 = vrot.slane %v4203_v9, 4 }
 0x4bb   : > { %v4181_v2 = vadd.f32 %v4180_v63, %v4179_v23  ;;  %v4173_v33 = vrot.slane %v4172_v26, 1  ;;  %v4193_v21 = vadd.f32 %v4192_v18, %v4191_v1  ;;  %v4568_v29 = vsel %vm4557_vm10, %v4125_v41, %v4567_v60 }
 0x4bc   : > { %v4572_v57 = vsel %vm4551_vm7, %v4160_v48, %v4153_v43  ;;  %v4200_v53 = vadd.f32 %v4199_v19, %v4198_v16  ;;  %v4212_v45 = vadd.f32 %v4211_v12, %v4210_v59  ;;  %v4205_v55 = vadd.f32 %v4204_v46, %v4203_v9  ;;  %v3839_v13 = vpop.permute.xlu1 %3838  ;;  %v3837_v6 = vpop.permute.xlu0 %3836 }
 0x4bd   : > { %v4573_v14 = vsel %vm4553_vm8, %v4167_v51, %v4572_v57  ;;  %v4174_v28 = vadd.f32 %v4173_v33, %v4172_v26  ;;  %v4194_v31 = vrot.slane %v4193_v21, 1  ;;  %v4569_v0 = vsel %vm4559_vm11, %v9442_v39, %v4568_v29 }
 0x4be   : > { %v4201_v3 = vrot.slane %v4200_v53, 1  ;;  %v4213_v62 = vrot.slane %v4212_v45, 2  ;;  %v4206_v54 = vrot.slane %v4205_v55, 2  ;;  %v4570_v41 = vsel %vm4561_vm12, %v9440_v30, %v4569_v0 }
 0x4bf   : > { %v4574_v43 = vsel %vm4555_vm9, %v4174_v28, %v4573_v14  ;;  %v4195_v24 = vadd.f32 %v4194_v31, %v4193_v21  ;;  %v4571_v27 = vsel %vm4563_vm13, %v4146_v15, %v4570_v41  ;;  %v3996_v11 = vmul.f32 %v3831_v52, %v10246_v8  ;;  %v10251_v52 = vld [vmem:[#allocation31_spill] sm:$0xff] }
 0x4c0   : > { %v4202_v56 = vadd.f32 %v4201_v3, %v4200_v53  ;;  %v4214_v51 = vadd.f32 %v4213_v62, %v4212_v45  ;;  %v4207_v32 = vadd.f32 %v4206_v54, %v4205_v55  ;;  %4616 = vrot.lane.b32.xlu1 %v4571_v27, %s6075_s17  ;;  %v3997_v39 = vmul.f32 %v3833_v61, %v10247_v10  ;;  %v3843_v44 = vpop.permute.xlu1 %3842  ;;  %v3835_v37 = vpop.permute.xlu0 %3834 }
 0x4c1   : > { %v4217_v5 = vsel %vm4034_vm6, %v3996_v11, 0.0  ;;  %v4000_v30 = vmul.f32 %v3839_v13, %v10248_v40  ;;  %v3999_v60 = vmul.f32 %v3837_v6, %v10249_v58  ;;  %v4002_v50 = vmul.f32 %v3843_v44, %v10250_v20 }
 0x4c2   : > { %v4215_v15 = vrot.slane %v4214_v51, 1  ;;  %v4208_v4 = vrot.slane %v4207_v32, 1  ;;  %v4218_v38 = vrot.slane %v4217_v5, 4  ;;  %v4224_v49 = vsel %vm4034_vm6, %v3997_v39, 0.0 }
 0x4c3   : > { %v4225_v17 = vrot.slane %v4224_v49, 4  ;;  %v4245_v7 = vsel %vm4034_vm6, %v4000_v30, 0.0  ;;  %v4238_v47 = vsel %vm4034_vm6, %v3999_v60, 0.0  ;;  %v4259_v42 = vsel %vm4034_vm6, %v4002_v50, 0.0 }
 0x4c4   : > { %v4216_v35 = vadd.f32 %v4215_v15, %v4214_v51  ;;  %v4209_v22 = vadd.f32 %v4208_v4, %v4207_v32  ;;  %v4219_v23 = vadd.f32 %v4218_v38, %v4217_v5  ;;  %v4246_v34 = vrot.slane %v4245_v7, 4  ;;  %v3847_v1 = vpop.permute.xlu1 %3846  ;;  %v3841_v36 = vpop.permute.xlu0 %3840  ;;  %v10253_v51 = vld [vmem:[#allocation32_spill] sm:$0xff] }
 0x4c5   : > { %v4226_v16 = vadd.f32 %v4225_v17, %v4224_v49  ;;  %v4239_v59 = vrot.slane %v4238_v47, 4  ;;  %v4260_v9 = vrot.slane %v4259_v42, 4  ;;  %v3998_v61 = vmul.f32 %v3835_v37, %v10251_v52  ;;  %v10254_v49 = vld [vmem:[#allocation38_spill] sm:$0xff] }
 0x4c6   : > { %v4579_v63 = vsel %vm4551_vm7, %v4216_v35, %v4209_v22  ;;  %v4220_v26 = vrot.slane %v4219_v23, 2  ;;  %v4247_v18 = vadd.f32 %v4246_v34, %v4245_v7  ;;  %v4575_v48 = vsel %vm4557_vm10, %v4181_v2, %v4574_v43  ;;  %v10252_v43 = vld [vmem:[#allocation37_spill] sm:$0xff]  ;;  %v10256_v22 = vld [vmem:[#allocation39_spill] sm:$0xff]  ;;  %v10257_v34 = vld [vmem:[#allocation36_spill] sm:$0xff] }
 0x4c7   : > { %v4227_v19 = vrot.slane %v4226_v16, 2  ;;  %v4240_v12 = vadd.f32 %v4239_v59, %v4238_v47  ;;  %v4261_v46 = vadd.f32 %v4260_v9, %v4259_v42  ;;  %v4231_v33 = vsel %vm4034_vm6, %v3998_v61, 0.0  ;;  %v10255_v42 = vld [vmem:[#allocation34_spill] sm:$0xff] }
 0x4c8   : > { %v4221_v21 = vadd.f32 %v4220_v26, %v4219_v23  ;;  %v4248_v29 = vrot.slane %v4247_v18, 2  ;;  %v4232_v57 = vrot.slane %v4231_v33, 4  ;;  %v4576_v53 = vsel %vm4559_vm11, %v9470_v25, %v4575_v48  ;;  %v3853_v45 = vpop.permute.xlu1 %3852  ;;  %v3845_v55 = vpop.permute.xlu0 %3844 }
 0x4c9   : > { %v4228_v13 = vadd.f32 %v4227_v19, %v4226_v16  ;;  %v4241_v6 = vrot.slane %v4240_v12, 2  ;;  %v4262_v14 = vrot.slane %v4261_v46, 2  ;;  %v4577_v28 = vsel %vm4561_vm12, %v4195_v24, %v4576_v53 }
 0x4ca   : > { %v4222_v31 = vrot.slane %v4221_v21, 1  ;;  %v4249_v2 = vadd.f32 %v4248_v29, %v4247_v18  ;;  %v4233_v0 = vadd.f32 %v4232_v57, %v4231_v33  ;;  %v4578_v3 = vsel %vm4563_vm13, %v4202_v56, %v4577_v28 }
 0x4cb   : > { %v4229_v62 = vrot.slane %v4228_v13, 1  ;;  %v4242_v54 = vadd.f32 %v4241_v6, %v4240_v12  ;;  %v4263_v41 = vadd.f32 %v4262_v14, %v4261_v46  ;;  %4618 = vrot.lane.b32.xlu0 %v4578_v3, %s6075_s17  ;;  %v4004_v27 = vmul.f32 %v3847_v1, %v10252_v43 }
 0x4cc   : > { %v4223_v25 = vadd.f32 %v4222_v31, %v4221_v21  ;;  %v4250_v8 = vrot.slane %v4249_v2, 1  ;;  %v4234_v11 = vrot.slane %v4233_v0, 2  ;;  %v4001_v32 = vmul.f32 %v3841_v36, %v10253_v51  ;;  %v3851_v10 = vpop.permute.xlu1 %3850  ;;  %v3849_v39 = vpop.permute.xlu0 %3848  ;;  %v10258_v36 = vld [vmem:[#allocation41_spill] sm:$0xff] }
 0x4cd   : > { %v4230_v24 = vadd.f32 %v4229_v62, %v4228_v13  ;;  %v4243_v44 = vrot.slane %v4242_v54, 1  ;;  %v4264_v37 = vrot.slane %v4263_v41, 1  ;;  %v4273_v5 = vsel %vm4034_vm6, %v4004_v27, 0.0 }
 0x4ce   : > { %v4580_v56 = vsel %vm4553_vm8, %v4223_v25, %v4579_v63  ;;  %v4235_v40 = vadd.f32 %v4234_v11, %v4233_v0  ;;  %v4274_v30 = vrot.slane %v4273_v5, 4  ;;  %v9508_v60 = vadd.f32 %v4250_v8, %v4249_v2 }
 0x4cf   : > { %v9506_v58 = vsel %vm4555_vm9, %v4230_v24, %v4580_v56  ;;  %v9510_v20 = vadd.f32 %v4243_v44, %v4242_v54  ;;  %v4252_v50 = vsel %vm4034_vm6, %v4001_v32, 0.0  ;;  %v9513_v15 = vadd.f32 %v4264_v37, %v4263_v41  ;;  %v10260_v37 = vld [vmem:[#allocation42_spill] sm:$0xff] }
 0x4d0   : > { %v4275_v4 = vadd.f32 %v4274_v30, %v4273_v5  ;;  %v4253_v38 = vrot.slane %v4252_v50, 4  ;;  %v4007_v17 = vmul.f32 %v3853_v45, %v10254_v49  ;;  %v3855_v7 = vpop.permute.xlu1 %3854  ;;  %v3857_v47 = vpop.permute.xlu0 %3856  ;;  %v4003_v35 = vmul.f32 %v3845_v55, %v10255_v42  ;;  %v10259_v55 = vld [vmem:[#allocation40_spill] sm:$0xff] }
 0x4d1   : > { %v4006_v23 = vmul.f32 %v3851_v10, %v10256_v22  ;;  %v4005_v1 = vmul.f32 %v3849_v39, %v10257_v34  ;;  %v4008_v16 = vmul.f32 %v3855_v7, %v10258_v36  ;;  %v4236_v59 = vrot.slane %v4235_v40, 1 }
 0x4d2   : > { %v4276_v9 = vrot.slane %v4275_v4, 2  ;;  %v4254_v52 = vadd.f32 %v4253_v38, %v4252_v50  ;;  %v4294_v61 = vsel %vm4034_vm6, %v4007_v17, 0.0  ;;  %v4266_v26 = vsel %vm4034_vm6, %v4003_v35, 0.0  ;;  %v10261_v17 = vld [vmem:[#allocation43_spill] sm:$0xff] }
 0x4d3   : > { %v4295_v63 = vrot.slane %v4294_v61, 4  ;;  %v4287_v18 = vsel %vm4034_vm6, %v4006_v23, 0.0  ;;  %v4280_v48 = vsel %vm4034_vm6, %v4005_v1, 0.0  ;;  %v4267_v46 = vrot.slane %v4266_v26, 4 }
 0x4d4   : > { %v4277_v19 = vadd.f32 %v4276_v9, %v4275_v4  ;;  %v4255_v12 = vrot.slane %v4254_v52, 2  ;;  %v4288_v33 = vrot.slane %v4287_v18, 4  ;;  %v3861_v21 = vpop.permute.xlu1 %3860  ;;  %v3859_v29 = vpop.permute.xlu0 %3858  ;;  %v4281_v53 = vrot.slane %v4280_v48, 4 }
 0x4d5   : > { %v4296_v57 = vadd.f32 %v4295_v63, %v4294_v61  ;;  %v4301_v45 = vsel %vm4034_vm6, %v4008_v16, 0.0  ;;  %v4009_v13 = vmul.f32 %v3857_v47, %v10259_v55  ;;  %v4268_v28 = vadd.f32 %v4267_v46, %v4266_v26 }
 0x4d6   : > { %v4278_v6 = vrot.slane %v4277_v19, 1  ;;  %v4256_v14 = vadd.f32 %v4255_v12, %v4254_v52  ;;  %v4289_v31 = vadd.f32 %v4288_v33, %v4287_v18  ;;  %v4282_v0 = vadd.f32 %v4281_v53, %v4280_v48 }
 0x4d7   : > { %v4297_v2 = vrot.slane %v4296_v57, 2  ;;  %v4302_v3 = vrot.slane %v4301_v45, 4  ;;  %v4308_v62 = vsel %vm4034_vm6, %v4009_v13, 0.0  ;;  %v4237_v54 = vadd.f32 %v4236_v59, %v4235_v40 }
 0x4d8   : > { %v4257_v41 = vrot.slane %v4256_v14, 1  ;;  %v4269_v43 = vrot.slane %v4268_v28, 2  ;;  %v4290_v27 = vrot.slane %v4289_v31, 2  ;;  %v3863_v25 = vpop.permute.xlu1 %3862  ;;  %v3865_v8 = vpop.permute.xlu0 %3864  ;;  %v4283_v51 = vrot.slane %v4282_v0, 2 }
 0x4d9   : > { %v4298_v11 = vadd.f32 %v4297_v2, %v4296_v57  ;;  %v4303_v32 = vadd.f32 %v4302_v3, %v4301_v45  ;;  %v4309_v10 = vrot.slane %v4308_v62, 4  ;;  %v4279_v39 = vadd.f32 %v4278_v6, %v4277_v19  ;;  %v10262_v19 = vld [vmem:[#allocation45_spill] sm:$0xff] }
 0x4da   : > { %v4270_v24 = vadd.f32 %v4269_v43, %v4268_v28  ;;  %v4291_v44 = vadd.f32 %v4290_v27, %v4289_v31  ;;  %v4011_v5 = vmul.f32 %v3861_v21, %v10260_v37  ;;  %v4284_v30 = vadd.f32 %v4283_v51, %v4282_v0  ;;  %v10263_v0 = vld [vmem:[#allocation44_spill] sm:$0xff]  ;;  %v10266_v51 = vld [vmem:[#allocation51_spill] sm:$0xff] }
 0x4db   : > { %v4299_v56 = vrot.slane %v4298_v11, 1  ;;  %v4304_v50 = vrot.slane %v4303_v32, 2  ;;  %v4310_v4 = vadd.f32 %v4309_v10, %v4308_v62  ;;  %v4258_v38 = vadd.f32 %v4257_v41, %v4256_v14  ;;  %v10264_v62 = vld [vmem:[#allocation49_spill] sm:$0xff] }
 0x4dc   : > { %v4271_v40 = vrot.slane %v4270_v24, 1  ;;  %v4322_v49 = vsel %vm4034_vm6, %v4011_v5, 0.0  ;;  %v4010_v7 = vmul.f32 %v3859_v29, %v10261_v17  ;;  %v3871_v47 = vpop.permute.xlu1 %3870  ;;  %v3869_v42 = vpop.permute.xlu0 %3868  ;;  %v4292_v35 = vrot.slane %v4291_v44, 1 }
 0x4dd   : > { %v4285_v22 = vrot.slane %v4284_v30, 1  ;;  %v4305_v23 = vadd.f32 %v4304_v50, %v4303_v32  ;;  %v4311_v34 = vrot.slane %v4310_v4, 2  ;;  %v9530_v1 = vadd.f32 %v4299_v56, %v4298_v11 }
 0x4de   : > { %v4272_v36 = vadd.f32 %v4271_v40, %v4270_v24  ;;  %v4323_v16 = vrot.slane %v4322_v49, 4  ;;  %v4315_v59 = vsel %vm4034_vm6, %v4010_v7, 0.0  ;;  %v4582_v48 = vsel %vm4557_vm10, %v4237_v54, %v9506_v58  ;;  %v10267_v24 = vld [vmem:[#allocation47_spill] sm:$0xff] }
 0x4df   : > { %v4286_v9 = vadd.f32 %v4285_v22, %v4284_v30  ;;  %v4306_v52 = vrot.slane %v4305_v23, 1  ;;  %v4312_v61 = vadd.f32 %v4311_v34, %v4310_v4  ;;  %v4316_v63 = vrot.slane %v4315_v59, 4 }
 0x4e0   : > { %v4586_v26 = vsel %vm4551_vm7, %v4272_v36, %v9513_v15  ;;  %v4324_v18 = vadd.f32 %v4323_v16, %v4322_v49  ;;  %v4012_v12 = vmul.f32 %v3863_v25, %v10262_v19  ;;  %v3875_v46 = vpop.permute.xlu1 %3874  ;;  %v3867_v33 = vpop.permute.xlu0 %3866  ;;  %v4293_v21 = vadd.f32 %v4292_v35, %v4291_v44  ;;  %v10265_v25 = vld [vmem:[#allocation46_spill] sm:$0xff] }
 0x4e1   : > { %v4587_v29 = vsel %vm4553_vm8, %v4279_v39, %v4586_v26  ;;  %v4307_v57 = vadd.f32 %v4306_v52, %v4305_v23  ;;  %v4317_v53 = vadd.f32 %v4316_v63, %v4315_v59  ;;  %v4313_v45 = vrot.slane %v4312_v61, 1 }
 0x4e2   : > { %v4325_v55 = vrot.slane %v4324_v18, 2  ;;  %v4583_v13 = vsel %vm4559_vm11, %v9510_v20, %v4582_v48  ;;  %v4329_v15 = vsel %vm4034_vm6, %v4012_v12, 0.0  ;;  %v4588_v6 = vsel %vm4555_vm9, %v4286_v9, %v4587_v29 }
 0x4e3   : > { %v4318_v14 = vrot.slane %v4317_v53, 2  ;;  %v4584_v58 = vsel %vm4561_vm12, %v9508_v60, %v4583_v13  ;;  %v4330_v28 = vrot.slane %v4329_v15, 4  ;;  %v4013_v3 = vmul.f32 %v3865_v8, %v10263_v0 }
 0x4e4   : > { %v4326_v31 = vadd.f32 %v4325_v55, %v4324_v18  ;;  %v4585_v2 = vsel %vm4563_vm13, %v4258_v38, %v4584_v58  ;;  %v4016_v54 = vmul.f32 %v3871_v47, %v10264_v62  ;;  %v3879_v41 = vpop.permute.xlu1 %3878  ;;  %v3873_v43 = vpop.permute.xlu0 %3872  ;;  %v4015_v11 = vmul.f32 %v3869_v42, %v10265_v25  ;;  %v10270_v62 = vld [vmem:[#allocation54_spill] sm:$0xff] }
 0x4e5   : > { %v4319_v27 = vadd.f32 %v4318_v14, %v4317_v53  ;;  %4620 = vrot.lane.b32.xlu1 %v4585_v2, %s6075_s17  ;;  %v4331_v20 = vadd.f32 %v4330_v28, %v4329_v15  ;;  %v4018_v32 = vmul.f32 %v3875_v46, %v10266_v51  ;;  %v4336_v60 = vsel %vm4034_vm6, %v4013_v3, 0.0  ;;  %v10268_v15 = vld [vmem:[#allocation53_spill] sm:$0xff]  ;;  %v10269_v28 = vld [vmem:[#allocation48_spill] sm:$0xff] }
 0x4e6   : > { %v4327_v10 = vrot.slane %v4326_v31, 1  ;;  %v4357_v39 = vsel %vm4034_vm6, %v4016_v54, 0.0  ;;  %v4014_v44 = vmul.f32 %v3867_v33, %v10267_v24  ;;  %v4337_v5 = vrot.slane %v4336_v60, 4 }
 0x4e7   : > { %v4320_v8 = vrot.slane %v4319_v27, 1  ;;  %v4332_v37 = vrot.slane %v4331_v20, 2  ;;  %v4358_v56 = vrot.slane %v4357_v39, 4  ;;  %v4314_v30 = vadd.f32 %v4313_v45, %v4312_v61 }
 0x4e8   : > { %v4350_v50 = vsel %vm4034_vm6, %v4015_v11, 0.0  ;;  %v4371_v4 = vsel %vm4034_vm6, %v4018_v32, 0.0  ;;  %v4343_v38 = vsel %vm4034_vm6, %v4014_v44, 0.0  ;;  %v3885_v40 = vpop.permute.xlu1 %3884  ;;  %v3877_v49 = vpop.permute.xlu0 %3876  ;;  %v4328_v17 = vadd.f32 %v4327_v10, %v4326_v31  ;;  %v10271_v32 = vld [vmem:[#allocation50_spill] sm:$0xff] }
 0x4e9   : > { %v4333_v7 = vadd.f32 %v4332_v37, %v4331_v20  ;;  %v4338_v47 = vadd.f32 %v4337_v5, %v4336_v60  ;;  %v4359_v42 = vadd.f32 %v4358_v56, %v4357_v39  ;;  %v4351_v35 = vrot.slane %v4350_v50, 4  ;;  %v10272_v5 = vld [vmem:[#allocation55_spill] sm:$0xff] }
 0x4ea   : > { %v4372_v22 = vrot.slane %v4371_v4, 4  ;;  %v4344_v23 = vrot.slane %v4343_v38, 4  ;;  %v4589_v34 = vsel %vm4557_vm10, %v4293_v21, %v4588_v6  ;;  %v4321_v36 = vadd.f32 %v4320_v8, %v4319_v27 }
 0x4eb   : > { %v4334_v16 = vrot.slane %v4333_v7, 1  ;;  %v4339_v59 = vrot.slane %v4338_v47, 2  ;;  %v4360_v9 = vrot.slane %v4359_v42, 2  ;;  %v4352_v52 = vadd.f32 %v4351_v35, %v4350_v50 }
 0x4ec   : > { %v4373_v61 = vadd.f32 %v4372_v22, %v4371_v4  ;;  %v4345_v63 = vadd.f32 %v4344_v23, %v4343_v38  ;;  %v4590_v26 = vsel %vm4559_vm11, %v9530_v1, %v4589_v34  ;;  %v3883_v18 = vpop.permute.xlu1 %3882  ;;  %v3881_v48 = vpop.permute.xlu0 %3880  ;;  %v4020_v6 = vmul.f32 %v3879_v41, %v10268_v15  ;;  %v10275_v22 = vld [vmem:[#allocation59_spill] sm:$0xff] }
 0x4ed   : > { %v4335_v19 = vadd.f32 %v4334_v16, %v4333_v7  ;;  %v4340_v12 = vadd.f32 %v4339_v59, %v4338_v47  ;;  %v4361_v46 = vadd.f32 %v4360_v9, %v4359_v42  ;;  %v4591_v33 = vsel %vm4561_vm12, %v4307_v57, %v4590_v26  ;;  %v10274_v7 = vld [vmem:[#allocation57_spill] sm:$0xff] }
 0x4ee   : > { %v4353_v29 = vrot.slane %v4352_v52, 2  ;;  %v4374_v53 = vrot.slane %v4373_v61, 2  ;;  %v4346_v21 = vrot.slane %v4345_v63, 2  ;;  %v4592_v45 = vsel %vm4563_vm13, %v4314_v30, %v4591_v33 }
 0x4ef   : > { %v4341_v55 = vrot.slane %v4340_v12, 1  ;;  %v4362_v13 = vrot.slane %v4361_v46, 1  ;;  %4622 = vrot.lane.b32.xlu0 %v4592_v45, %s6075_s17  ;;  %v4017_v31 = vmul.f32 %v3873_v43, %v10269_v28  ;;  %v4593_v0 = vsel %vm4551_vm7, %v4328_v17, %v4321_v36 }
 0x4f0   : > { %v9564_v14 = vadd.f32 %v4353_v29, %v4352_v52  ;;  %v9566_v1 = vadd.f32 %v4374_v53, %v4373_v61  ;;  %v4347_v58 = vadd.f32 %v4346_v21, %v4345_v63  ;;  %v3887_v2 = vpop.permute.xlu1 %3886  ;;  %v3891_v57 = vpop.permute.xlu0 %3890  ;;  %v4385_v3 = vsel %vm4034_vm6, %v4020_v6, 0.0 }
 0x4f1   : > { %v4023_v54 = vmul.f32 %v3885_v40, %v10270_v62  ;;  %v4594_v27 = vsel %vm4553_vm8, %v4335_v19, %v4593_v0  ;;  %v4342_v20 = vadd.f32 %v4341_v55, %v4340_v12  ;;  %v4386_v25 = vrot.slane %v4385_v3, 4  ;;  %v10273_v40 = vld [vmem:[#allocation52_spill] sm:$0xff]  ;;  %v10276_v62 = vld [vmem:[#allocation58_spill] sm:$0xff] }
 0x4f2   : > { %v9573_v41 = vadd.f32 %v4362_v13, %v4361_v46  ;;  %v4364_v11 = vsel %vm4034_vm6, %v4017_v31, 0.0  ;;  %v4019_v43 = vmul.f32 %v3877_v49, %v10271_v32  ;;  %v4355_v10 = vrot.slane %v9564_v14, 1 }
 0x4f3   : > { %v4406_v51 = vsel %vm4034_vm6, %v4023_v54, 0.0  ;;  %v4376_v60 = vrot.slane %v9566_v1, 1  ;;  %v4348_v39 = vrot.slane %v4347_v58, 1  ;;  %v4387_v24 = vadd.f32 %v4386_v25, %v4385_v3 }
 0x4f4   : > { %v4365_v44 = vrot.slane %v4364_v11, 4  ;;  %v4407_v8 = vrot.slane %v4406_v51, 4  ;;  %v4378_v37 = vsel %vm4034_vm6, %v4019_v43, 0.0  ;;  %v4022_v56 = vmul.f32 %v3883_v18, %v10272_v5  ;;  %v3893_v30 = vpop.permute.xlu1 %3892  ;;  %v3897_v50 = vpop.permute.xlu0 %3896 }
 0x4f5   : > { %v4388_v4 = vrot.slane %v4387_v24, 2  ;;  %v4379_v38 = vrot.slane %v4378_v37, 4  ;;  %v4021_v17 = vmul.f32 %v3881_v48, %v10273_v40  ;;  %v4024_v49 = vmul.f32 %v3887_v2, %v10274_v7 }
 0x4f6   : > { %v4366_v47 = vadd.f32 %v4365_v44, %v4364_v11  ;;  %v4408_v42 = vadd.f32 %v4407_v8, %v4406_v51  ;;  %v4399_v35 = vsel %vm4034_vm6, %v4022_v56, 0.0  ;;  %v4026_v23 = vmul.f32 %v3891_v57, %v10275_v22  ;;  %v10277_v8 = vld [vmem:[#allocation60_spill] sm:$0xff] }
 0x4f7   : > { %v4389_v34 = vadd.f32 %v4388_v4, %v4387_v24  ;;  %v4380_v36 = vadd.f32 %v4379_v38, %v4378_v37  ;;  %v4400_v16 = vrot.slane %v4399_v35, 4  ;;  %v4392_v59 = vsel %vm4034_vm6, %v4021_v17, 0.0 }
 0x4f8   : > { %v4367_v9 = vrot.slane %v4366_v47, 2  ;;  %v4409_v52 = vrot.slane %v4408_v42, 2  ;;  %v4393_v61 = vrot.slane %v4392_v59, 4  ;;  %v4413_v63 = vsel %vm4034_vm6, %v4024_v49, 0.0  ;;  %v3895_v53 = vpop.permute.xlu1 %3894  ;;  %v3901_v21 = vpop.permute.xlu0 %3900 }
 0x4f9   : > { %v4595_v26 = vsel %vm4555_vm9, %v4342_v20, %v4594_v27  ;;  %v4381_v18 = vrot.slane %v4380_v36, 2  ;;  %v4401_v48 = vadd.f32 %v4400_v16, %v4399_v35  ;;  %v4414_v19 = vrot.slane %v4413_v63, 4  ;;  %v10279_v16 = vld [vmem:[#allocation62_spill] sm:$0xff] }
 0x4fa   : > { %v4368_v12 = vadd.f32 %v4367_v9, %v4366_v47  ;;  %v4410_v46 = vadd.f32 %v4409_v52, %v4408_v42  ;;  %v4394_v33 = vadd.f32 %v4393_v61, %v4392_v59  ;;  %v4427_v29 = vsel %vm4034_vm6, %v4026_v23, 0.0  ;;  %v10278_v47 = vld [vmem:[#allocation61_spill] sm:$0xff]  ;;  %v10280_v9 = vld [vmem:[#allocation56_spill] sm:$0xff] }
 0x4fb   : > { %v4349_v45 = vadd.f32 %v4348_v39, %v4347_v58  ;;  %v4382_v55 = vadd.f32 %v4381_v18, %v4380_v36  ;;  %v4402_v13 = vrot.slane %v4401_v48, 2  ;;  %v4415_v15 = vadd.f32 %v4414_v19, %v4413_v63 }
 0x4fc   : > { %v4390_v6 = vrot.slane %v4389_v34, 1  ;;  %v4369_v28 = vrot.slane %v4368_v12, 1  ;;  %v4395_v31 = vrot.slane %v4394_v33, 2  ;;  %v4428_v2 = vrot.slane %v4427_v29, 4  ;;  %v3889_v5 = vpop.permute.xlu1 %3888  ;;  %v3899_v56 = vpop.permute.xlu0 %3898 }
 0x4fd   : > { %v4383_v57 = vrot.slane %v4382_v55, 1  ;;  %v4403_v0 = vadd.f32 %v4402_v13, %v4401_v48  ;;  %v4416_v3 = vrot.slane %v4415_v15, 2  ;;  %v4027_v54 = vmul.f32 %v3893_v30, %v10276_v62 }
 0x4fe   : > { %v4377_v27 = vadd.f32 %v4376_v60, %v9566_v1  ;;  %v4411_v20 = vrot.slane %v4410_v46, 1  ;;  %v4396_v25 = vadd.f32 %v4395_v31, %v4394_v33  ;;  %v4429_v11 = vadd.f32 %v4428_v2, %v4427_v29  ;;  %v10281_v33 = vld [vmem:[#allocation63_spill] sm:$0xff]  ;;  %v10283_v31 = vld [vmem:[#allocation65_spill] sm:$0xff] }
 0x4ff   : > { %v4384_v51 = vadd.f32 %v4383_v57, %v4382_v55  ;;  %v4404_v32 = vrot.slane %v4403_v0, 1  ;;  %v4417_v58 = vadd.f32 %v4416_v3, %v4415_v15  ;;  %v4434_v43 = vsel %vm4034_vm6, %v4027_v54, 0.0 }
 0x500   : > { %v4356_v39 = vadd.f32 %v4355_v10, %v9564_v14  ;;  %v4397_v24 = vrot.slane %v4396_v25, 1  ;;  %v4435_v44 = vrot.slane %v4434_v43, 4  ;;  %v4029_v37 = vmul.f32 %v3897_v50, %v10277_v8  ;;  %v3905_v48 = vpop.permute.xlu1 %3904  ;;  %v3903_v19 = vpop.permute.xlu0 %3902 }
 0x501   : > { %v4391_v4 = vadd.f32 %v4390_v6, %v4389_v34  ;;  %v4370_v30 = vadd.f32 %v4369_v28, %v4368_v12  ;;  %v4600_v1 = vsel %vm4551_vm7, %v4384_v51, %v4377_v27  ;;  %v4596_v60 = vsel %vm4557_vm10, %v4349_v45, %v4595_v26  ;;  %v10282_v6 = vld [vmem:[#allocation64_spill] sm:$0xff] }
 0x502   : > { %v9597_v38 = vadd.f32 %v4411_v20, %v4410_v46  ;;  %v4405_v40 = vadd.f32 %v4404_v32, %v4403_v0  ;;  %v4430_v17 = vrot.slane %v4429_v11, 2  ;;  %v4436_v7 = vadd.f32 %v4435_v44, %v4434_v43 }
 0x503   : > { %v4418_v49 = vrot.slane %v4417_v58, 1  ;;  %v4448_v14 = vsel %vm4034_vm6, %v4029_v37, 0.0  ;;  %v4597_v10 = vsel %vm4559_vm11, %v4356_v39, %v4596_v60  ;;  %v4028_v50 = vmul.f32 %v3895_v53, %v10278_v47 }
 0x504   : > { %v4601_v42 = vsel %vm4553_vm8, %v4391_v4, %v4600_v1  ;;  %v4398_v35 = vadd.f32 %v4397_v24, %v4396_v25  ;;  %v4437_v22 = vrot.slane %v4436_v7, 2  ;;  %v4449_v23 = vrot.slane %v4448_v14, 4 }
 0x505   : > { %v4598_v34 = vsel %vm4561_vm12, %v9573_v41, %v4597_v10  ;;  %v4441_v36 = vsel %vm4034_vm6, %v4028_v50, 0.0  ;;  %v4031_v59 = vmul.f32 %v3901_v21, %v10279_v16  ;;  %v4025_v52 = vmul.f32 %v3889_v5, %v10280_v9 }
 0x506   : > { %v4431_v61 = vadd.f32 %v4430_v17, %v4429_v11  ;;  %v4438_v63 = vadd.f32 %v4437_v22, %v4436_v7  ;;  %v4450_v26 = vadd.f32 %v4449_v23, %v4448_v14  ;;  %v4599_v18 = vsel %vm4563_vm13, %v4370_v30, %v4598_v34 }
 0x507   : > { %4624 = vrot.lane.b32.xlu1 %v4599_v18, %s6075_s17  ;;  %v4442_v12 = vrot.slane %v4441_v36, 4  ;;  %v4462_v46 = vsel %vm4034_vm6, %v4031_v59, 0.0  ;;  %v4420_v41 = vsel %vm4034_vm6, %v4025_v52, 0.0  ;;  %v4030_v29 = vmul.f32 %v3899_v56, %v10281_v33 }
 0x508   : > { %v4419_v53 = vadd.f32 %v4418_v49, %v4417_v58  ;;  %v4451_v21 = vrot.slane %v4450_v26, 2  ;;  %v4463_v45 = vrot.slane %v4462_v46, 4  ;;  %v4421_v55 = vrot.slane %v4420_v41, 4 }
 0x509   : > { %v4443_v13 = vadd.f32 %v4442_v12, %v4441_v36  ;;  %v4455_v15 = vsel %vm4034_vm6, %v4030_v29, 0.0  ;;  %v4033_v28 = vmul.f32 %v3905_v48, %v10282_v6  ;;  %v4032_v2 = vmul.f32 %v3903_v19, %v10283_v31 }
 0x50a   : > { %v4602_v57 = vsel %vm4555_vm9, %v4398_v35, %v4601_v42  ;;  %v4439_v0 = vrot.slane %v4438_v63, 1  ;;  %v4464_v3 = vadd.f32 %v4463_v45, %v4462_v46  ;;  %v4422_v62 = vadd.f32 %v4421_v55, %v4420_v41 }
 0x50b   : > { %v4444_v54 = vrot.slane %v4443_v13, 2  ;;  %v4456_v27 = vrot.slane %v4455_v15, 4  ;;  %v4476_v20 = vsel %vm4034_vm6, %v4033_v28, 0.0  ;;  %v4469_v25 = vsel %vm4034_vm6, %v4032_v2, 0.0  ;;  %v9644_v28 = vld [vmem:[%s9681_s1 + $0x60] ss:$0 sm:$0xff] }
 0x50c   : > { %v4432_v11 = vrot.slane %v4431_v61, 1  ;;  %v4452_v51 = vadd.f32 %v4451_v21, %v4450_v26  ;;  %v4465_v32 = vrot.slane %v4464_v3, 2  ;;  %v4423_v58 = vrot.slane %v4422_v62, 2 }
 0x50d   : > { %v4445_v43 = vadd.f32 %v4444_v54, %v4443_v13  ;;  %v4457_v39 = vadd.f32 %v4456_v27, %v4455_v15  ;;  %v4477_v24 = vrot.slane %v4476_v20, 4  ;;  %v4470_v44 = vrot.slane %v4469_v25, 4 }
 0x50e   : > { %v4440_v8 = vadd.f32 %v4439_v0, %v4438_v63  ;;  %v4466_v37 = vadd.f32 %v4465_v32, %v4464_v3  ;;  %v4424_v5 = vadd.f32 %v4423_v58, %v4422_v62  ;;  %v4603_v56 = vsel %vm4557_vm10, %v4405_v40, %v4602_v57 }
 0x50f   : > { %v4446_v4 = vrot.slane %v4445_v43, 1  ;;  %v4458_v30 = vrot.slane %v4457_v39, 2  ;;  %v4478_v1 = vadd.f32 %v4477_v24, %v4476_v20  ;;  %v4471_v60 = vadd.f32 %v4470_v44, %v4469_v25 }
 0x510   : > { %v4433_v17 = vadd.f32 %v4432_v11, %v4431_v61  ;;  %v4453_v7 = vrot.slane %v4452_v51, 1  ;;  %v4425_v49 = vrot.slane %v4424_v5, 1  ;;  %v4604_v14 = vsel %vm4559_vm11, %v9597_v38, %v4603_v56 }
 0x511   : > { %v4447_v10 = vadd.f32 %v4446_v4, %v4445_v43  ;;  %v4459_v47 = vadd.f32 %v4458_v30, %v4457_v39  ;;  %v4479_v50 = vrot.slane %v4478_v1, 2  ;;  %v4472_v42 = vrot.slane %v4471_v60, 2 }
 0x512   : > { %v4607_v35 = vsel %vm4551_vm7, %v4440_v8, %v4433_v17  ;;  %v4467_v22 = vrot.slane %v4466_v37, 1  ;;  %v4426_v23 = vadd.f32 %v4425_v49, %v4424_v5  ;;  %v4605_v40 = vsel %vm4561_vm12, %v4419_v53, %v4604_v14 }
 0x513   : > { %v4608_v34 = vsel %vm4553_vm8, %v4447_v10, %v4607_v35  ;;  %v4460_v36 = vrot.slane %v4459_v47, 1  ;;  %v4480_v16 = vadd.f32 %v4479_v50, %v4478_v1  ;;  %v4473_v59 = vadd.f32 %v4472_v42, %v4471_v60 }
 0x514   : > { %v4454_v9 = vadd.f32 %v4453_v7, %v4452_v51  ;;  %v4606_v52 = vsel %vm4563_vm13, %v4426_v23, %v4605_v40  ;;  %v4468_v26 = vadd.f32 %v4467_v22, %v4466_v37 }
 0x515   : > { %v4461_v61 = vadd.f32 %v4460_v36, %v4459_v47  ;;  %v4481_v38 = vrot.slane %v4480_v16, 1  ;;  %v4474_v63 = vrot.slane %v4473_v59, 1  ;;  %4626 = vrot.lane.b32.xlu0 %v4606_v52, %s6075_s17 }
 0x516   : > { %v4609_v18 = vsel %vm4555_vm9, %v4454_v9, %v4608_v34 }
 0x517   : > { %v4482_v48 = vadd.f32 %v4481_v38, %v4480_v16  ;;  %v4475_v19 = vadd.f32 %v4474_v63, %v4473_v59  ;;  %v4610_v12 = vsel %vm4557_vm10, %v4461_v61, %v4609_v18 }
 0x518   : > { %v4611_v46 = vsel %vm4559_vm11, %v4468_v26, %v4610_v12 }
 0x519   : > { %v4612_v41 = vsel %vm4561_vm12, %v4475_v19, %v4611_v46 }
 0x51a   : > { %v4613_v33 = vsel %vm4563_vm13, %v4482_v48, %v4612_v41 }
 0x51b   : > { %4628 = vrot.lane.b32.xlu1 %v4613_v33, %s6075_s17 }
 0x520   : > { %v4615_v29 = vpop.permute.xlu0 %4614 }
 0x521   : > { %5594 = vmatprep.mubr.msk.f32.mxu1 %vm1149_vm2, %v4615_v29 }
 0x532   : > { %v4617_v53 = vpop.permute.xlu1 %4616 }
 0x533   : > { %5595 = vmatmul.mubr.msk.f32.vlgmr.msra.gmra.mrb[64].mxu1 %vm1149_vm2, %v4617_v53 }
 0x53d   : > { %v4619_v21 = vpop.permute.xlu0 %4618 }
 0x53e   : > { %5597 = vmatprep.mubr.msk.f32.mxu1 %vm1149_vm2, %v4619_v21 }
 0x557   : > { %v4621_v45 = vpop.permute.xlu1 %4620 }
 0x558   : > { %5598 = vmatmul.mubr.msk.f32.gmra.mrb[66].mxu1 %vm1149_vm2, %v4621_v45 }
 0x561   : > { %v4623_v55 = vpop.permute.xlu0 %4622 }
 0x562   : > { %5600 = vmatprep.mubr.msk.f32.mxu1 %vm1149_vm2, %v4623_v55 }
 0x579   : > { %v4625_v13 = vpop.permute.xlu1 %4624 }
 0x57a   : > { %5601 = vmatmul.mubr.msk.f32.gmra.mrb[68].mxu1 %vm1149_vm2, %v4625_v13 }
 0x587   : > { %v4627_v15 = vpop.permute.xlu0 %4626 }
 0x588   : > { %5603 = vmatprep.mubr.msk.f32.mxu1 %vm1149_vm2, %v4627_v15 }
 0x58d   : > { %v4629_v6 = vpop.permute.xlu1 %4628 }
 0x58e   : > { %5604 = vmatmul.mubr.msk.f32.gmra.mrb[70].mxu1 %vm1149_vm2, %v4629_v6 }
 0x606   : > { %v5596_v31 = vpop.f32.mrb[64].mxu1 }
 0x607   : > { %v4718_v2 = vadd.f32 %v5596_v31, %v9644_v28  ;;  %v4712_v57 = vpop.f32.mrb[65].mxu1 }
 0x608   : > { %v4713_v0 = vadd.f32 %v9644_v28, %v4712_v57 }
 0x609   : > { %v4752_v3 = vsub.f32 0.0, %v4718_v2 }
 0x60a   : > { %v4751_v62 = vsub.f32 0.0, %v4713_v0 }
 0x60b   : > { %v4761_v54 = vmul.f32 1.442695, %v4752_v3 }
 0x60c   : > { %v4759_v27 = vmul.f32 1.442695, %v4751_v62 }
 0x60d   : > { %6028 = vpow2.f32 %v4761_v54 }
 0x60e   : > { %6030 = vpow2.f32 %v4759_v27 }
 0x617   : > { %v6029_v20 = vpop.eup %6028 }
 0x618   : > { %v6031_v25 = vpop.eup %6030  ;;  %v4776_v11 = vadd.f32 1.0, %v6029_v20 }
 0x619   : > { %v4775_v51 = vadd.f32 1.0, %v6031_v25 }
 0x61a   : > { %6032 = vrcp.f32 %v4776_v11 }
 0x61b   : > { %6034 = vrcp.f32 %v4775_v51 }
 0x624   : > { %v6033_v32 = vpop.eup %6032 }
 0x625   : > { %v6035_v58 = vpop.eup %6034  ;;  %v4800_v43 = vmax.f32 %v6033_v32, 1e-07 }
 0x626   : > { %v4799_v39 = vmax.f32 %v6035_v58, 1e-07 }
 0x627   : > { %v4808_v24 = vmin.f32 %v4800_v43, 0.9999999 }
 0x628   : > { %v4807_v44 = vmin.f32 %v4799_v39, 0.9999999 }
 0x629   : > { %4945 = vst.msk [vmem:[%s9653_s24 + $0x8] sm:$0xff] %vm1663_vm3, %v4808_v24 }
 0x62a   : > { %4944 = vst.msk [vmem:[%s9653_s24] sm:$0xff] %vm1663_vm3, %v4807_v44 }
 0x62b   : > { %v5599_v8 = vpop.f32.mrb[66].mxu1 }
 0x62c   : > { %v4728_v37 = vadd.f32 %v5599_v8, %v9644_v28  ;;  %v4722_v5 = vpop.f32.mrb[67].mxu1 }
 0x62d   : > { %v4723_v56 = vadd.f32 %v9644_v28, %v4722_v5 }
 0x62e   : > { %v4754_v4 = vsub.f32 0.0, %v4728_v37 }
 0x62f   : > { %v4753_v30 = vsub.f32 0.0, %v4723_v56 }
 0x630   : > { %v4765_v1 = vmul.f32 1.442695, %v4754_v4 }
 0x631   : > { %v4763_v60 = vmul.f32 1.442695, %v4753_v30 }
 0x632   : > { %6036 = vpow2.f32 %v4765_v1 }
 0x633   : > { %6038 = vpow2.f32 %v4763_v60 }
 0x63c   : > { %v6037_v17 = vpop.eup %6036 }
 0x63d   : > { %v6039_v7 = vpop.eup %6038  ;;  %v4778_v49 = vadd.f32 1.0, %v6037_v17 }
 0x63e   : > { %v4777_v14 = vadd.f32 1.0, %v6039_v7 }
 0x63f   : > { %6040 = vrcp.f32 %v4778_v49 }
 0x640   : > { %6042 = vrcp.f32 %v4777_v14 }
 0x649   : > { %v6041_v10 = vpop.eup %6040 }
 0x64a   : > { %v6043_v47 = vpop.eup %6042  ;;  %v4802_v50 = vmax.f32 %v6041_v10, 1e-07 }
 0x64b   : > { %v4801_v42 = vmax.f32 %v6043_v47, 1e-07 }
 0x64c   : > { %v4810_v35 = vmin.f32 %v4802_v50, 0.9999999 }
 0x64d   : > { %v4809_v22 = vmin.f32 %v4801_v42, 0.9999999  ;;  %v5602_v23 = vpop.f32.mrb[68].mxu1 }
 0x64e   : > { %4947 = vst.msk [vmem:[%s9653_s24 + $0x18] sm:$0xff] %vm1663_vm3, %v4810_v35  ;;  %v4738_v40 = vadd.f32 %v5602_v23, %v9644_v28  ;;  %v4732_v34 = vpop.f32.mrb[69].mxu1 }
 0x64f   : > { %4946 = vst.msk [vmem:[%s9653_s24 + $0x10] sm:$0xff] %vm1663_vm3, %v4809_v22  ;;  %v4733_v36 = vadd.f32 %v9644_v28, %v4732_v34 }
 0x650   : > { %v4756_v16 = vsub.f32 0.0, %v4738_v40 }
 0x651   : > { %v4755_v59 = vsub.f32 0.0, %v4733_v36 }
 0x652   : > { %v4769_v9 = vmul.f32 1.442695, %v4756_v16 }
 0x653   : > { %v4767_v52 = vmul.f32 1.442695, %v4755_v59 }
 0x654   : > { %6044 = vpow2.f32 %v4769_v9 }
 0x655   : > { %6046 = vpow2.f32 %v4767_v52 }
 0x65e   : > { %v6045_v61 = vpop.eup %6044 }
 0x65f   : > { %v6047_v38 = vpop.eup %6046  ;;  %v4780_v63 = vadd.f32 1.0, %v6045_v61 }
 0x660   : > { %v4779_v26 = vadd.f32 1.0, %v6047_v38 }
 0x661   : > { %6048 = vrcp.f32 %v4780_v63  ;;  %v5605_v18 = vpop.f32.mrb[70].mxu1 }
 0x662   : > { %6050 = vrcp.f32 %v4779_v26  ;;  %v4748_v48 = vadd.f32 %v5605_v18, %v9644_v28  ;;  %v4742_v19 = vpop.f32.mrb[71].mxu1 }
 0x663   : > { %v4743_v12 = vadd.f32 %v9644_v28, %v4742_v19 }
 0x664   : > { %v4758_v46 = vsub.f32 0.0, %v4748_v48 }
 0x665   : > { %v4757_v41 = vsub.f32 0.0, %v4743_v12 }
 0x666   : > { %v4773_v33 = vmul.f32 1.442695, %v4758_v46 }
 0x667   : > { %v4771_v29 = vmul.f32 1.442695, %v4757_v41 }
 0x668   : > { %6052 = vpow2.f32 %v4773_v33 }
 0x669   : > { %6054 = vpow2.f32 %v4771_v29 }
 0x66b   : > { %v6049_v53 = vpop.eup %6048 }
 0x66c   : > { %v6051_v21 = vpop.eup %6050  ;;  %v4804_v45 = vmax.f32 %v6049_v53, 1e-07 }
 0x66d   : > { %v4803_v55 = vmax.f32 %v6051_v21, 1e-07 }
 0x66e   : > { %v4812_v13 = vmin.f32 %v4804_v45, 0.9999999 }
 0x66f   : > { %v4811_v15 = vmin.f32 %v4803_v55, 0.9999999 }
 0x670   : > { %4949 = vst.msk [vmem:[%s9653_s24 + $0x28] sm:$0xff] %vm1663_vm3, %v4812_v13 }
 0x671   : > { %4948 = vst.msk [vmem:[%s9653_s24 + $0x20] sm:$0xff] %vm1663_vm3, %v4811_v15 }
 0x672   : > { %v6053_v6 = vpop.eup %6052 }
 0x673   : > { %v6055_v28 = vpop.eup %6054  ;;  %v4782_v31 = vadd.f32 1.0, %v6053_v6 }
 0x674   : > { %v4781_v2 = vadd.f32 1.0, %v6055_v28 }
 0x675   : > { %6056 = vrcp.f32 %v4782_v31 }
 0x676   : > { %6058 = vrcp.f32 %v4781_v2 }
 0x67f   : > { %v6057_v57 = vpop.eup %6056 }
 0x680   : > { %v6059_v0 = vpop.eup %6058  ;;  %v4806_v3 = vmax.f32 %v6057_v57, 1e-07 }
 0x681   : > { %v4805_v62 = vmax.f32 %v6059_v0, 1e-07 }
 0x682   : > { %v4814_v54 = vmin.f32 %v4806_v3, 0.9999999 }
 0x683   : > { %v4813_v27 = vmin.f32 %v4805_v62, 0.9999999 }
 0x684   : > { %4951 = vst.msk [vmem:[%s9653_s24 + $0x38] sm:$0xff] %vm1663_vm3, %v4814_v54 }
 0x685   : > { %4950 = vst.msk [vmem:[%s9653_s24 + $0x30] sm:$0xff] %vm1663_vm3, %v4813_v27 }
 0x686 PF: > { %s15_s15 = sadd.s32 1, %s6068_s15  }
 0x687   : > { %p12_p5 = scmp.ge.s32.totalorder %s15_s15, 4  }
 0x689   :  { %14 = sbr.rel (!%p12_p5) target bundleno = 1 (0x1), region = 82 }

</bundles_post_ra>
